<compile_context>
chip_gen: v6e
topology: v6e:2x2x1
jax: 0.10.0
libtpu: 0.0.40
codegen_flags: <defaults>
</compile_context>

<pallas_src>
import functools

import jax
import jax.numpy as jnp
from jax.experimental import pallas as pl
from jax.experimental.pallas import tpu as pltpu

LN_EPS = 1e-5   # torch.nn.LayerNorm default
LANE = 128


def _round_up(n, m):
    return ((n + m - 1) // m) * m


def _pick_row_tile(n, max_tile=1024):
    # >= 2 grid steps whenever possible so v7x's two TensorCores both get
    # work, with tiles large enough to amortize the ~0.35us per-step overhead.
    tile = min(max_tile, _round_up(max(pl.cdiv(n, 2), 1), 16))
    return max(tile, 16)


def mlp_kernel(n_out_real, matmul_dtype, x_ref, w1_ref, w2_ref, w3_ref,
               bh_ref, lo_ref, o_ref):
    # Coalesced small operands: bh = [b1; b2], lo = [b3; gamma; beta].
    b1 = bh_ref[0:1, :]
    b2 = bh_ref[1:2, :]
    b3 = lo_ref[0:1, :]
    gamma = lo_ref[1:2, :]
    beta = lo_ref[2:3, :]

    # Cast x to the matmul dtype inside the kernel (cheap VPU op) instead of
    # materializing a padded copy in HBM from the wrapper.
    x = x_ref[...].astype(matmul_dtype)

    # Hidden layer 1: Linear (MXU, f32 accumulate) + ReLU (f32 VPU).
    h = jnp.dot(x, w1_ref[...], preferred_element_type=jnp.float32)
    h = jnp.maximum(h + b1, 0.0)
    # Hidden layer 2.
    h = jnp.dot(h.astype(matmul_dtype), w2_ref[...],
                preferred_element_type=jnp.float32)
    h = jnp.maximum(h + b2, 0.0)
    # Output projection.
    y = jnp.dot(h.astype(matmul_dtype), w3_ref[...],
                preferred_element_type=jnp.float32)
    y = y + b3

    # LayerNorm over the true (unpadded) feature width, two-pass variance
    # (matches PyTorch; avoids E[y^2]-E[y]^2 cancellation). Padded lanes of y
    # are exactly zero (zero-padded W3 columns / b3), so the mean sum only
    # sees real features; the variance sum masks padded lanes explicitly
    # because (0 - mean) != 0 there.
    inv_n = 1.0 / n_out_real
    mean = jnp.sum(y, axis=-1, keepdims=True) * inv_n
    d = y - mean
    if y.shape[-1] != int(n_out_real):
        lane_ids = jax.lax.broadcasted_iota(jnp.int32, y.shape, 1)
        d_m = jnp.where(lane_ids < int(n_out_real), d, 0.0)
    else:
        d_m = d
    var = jnp.sum(d_m * d_m, axis=-1, keepdims=True) * inv_n
    y_hat = d * jax.lax.rsqrt(var + LN_EPS)
    # Padded gamma/beta lanes are zero, so padded output lanes stay zero.
    o_ref[...] = (y_hat * gamma + beta).astype(o_ref.dtype)


@functools.partial(jax.jit,
                   static_argnames=("matmul_dtype", "out_dtype", "row_tile"))
def mlp_forward(x, params, *, matmul_dtype=jnp.bfloat16,
                out_dtype=jnp.float32, row_tile=None):
    """x: [N, in_dim] float32 -> [N, out_dim] out_dtype.

    matmul_dtype=jnp.bfloat16 (default) runs the three matmuls on the MXU in
    bf16 with f32 accumulation (documented deviation from the module's f32
    matmuls); pass jnp.float32 for exact module semantics.
    out_dtype=jnp.bfloat16 halves the dominant HBM store stream if the
    downstream GNN block accepts bf16.
    """
    w1, b1, w2, b2, w3, b3, gamma, beta = params
    n, in_dim = x.shape
    hidden_dim = w1.shape[1]
    out_dim = w3.shape[1]

    # Lane-dense padding of hidden/output feature dims only (x stays as-is;
    # its full in_dim is used as the block's last dim).
    hid_p = _round_up(hidden_dim, LANE)
    out_p = _round_up(out_dim, LANE)

    if row_tile is None:
        row_tile = _pick_row_tile(n)
    grid_len = pl.cdiv(n, row_tile)   # ragged last block handled by Pallas

    def pad2(a, rows, cols):
        return jnp.pad(a, ((0, rows - a.shape[0]), (0, cols - a.shape[1])))

    w1p = pad2(w1, in_dim, hid_p).astype(matmul_dtype)
    w2p = pad2(w2, hid_p, hid_p).astype(matmul_dtype)
    w3p = pad2(w3, hid_p, out_p).astype(matmul_dtype)
    bias_h = jnp.concatenate(
        [pad2(b1, 1, hid_p), pad2(b2, 1, hid_p)], axis=0)               # (2, hid_p)
    ln_out = jnp.concatenate(
        [pad2(b3, 1, out_p), pad2(gamma, 1, out_p), pad2(beta, 1, out_p)],
        axis=0)                                                          # (3, out_p)

    mm_bytes = jnp.dtype(matmul_dtype).itemsize
    o_bytes = jnp.dtype(out_dtype).itemsize
    weight_bytes = (in_dim * hid_p + hid_p * hid_p + hid_p * out_p) * mm_bytes

    # Resident operands have constant index_maps; double-buffering them only
    # wastes VMEM. Only bother requesting single-buffering when they are big
    # enough to matter (large hidden dims on v7x's 64 MiB VMEM).
    single_buffer_weights = weight_bytes >= (8 << 20)

    def resident(shape):
        kwargs = {}
        if single_buffer_weights:
            kwargs["pipeline_mode"] = pl.Buffered(1)
        return pl.BlockSpec(shape, lambda i: (0, 0), **kwargs)

    # VMEM budget (bytes): double-buffered x / out tiles, resident weights,
    # sublane-padded bias/LN rows, plus the f32 h / y intermediates. Cap at
    # 48 MiB to leave Mosaic headroom under v7x's 64 MiB per-TC VMEM.
    w_bufs = 1 if single_buffer_weights else 2
    bytes_needed = (
        2 * row_tile * in_dim * x.dtype.itemsize
        + 2 * row_tile * out_p * o_bytes
        + w_bufs * weight_bytes
        + 2 * 8 * (hid_p + out_p) * 4
        + row_tile * (2 * hid_p + out_p) * 4
    )
    vmem_limit = min(48 * 1024 * 1024,
                     max(16 * 1024 * 1024, int(1.5 * bytes_needed)))

    flops = 2 * n * (in_dim * hidden_dim + hidden_dim * hidden_dim
                     + hidden_dim * out_dim)
    bytes_accessed = (n * in_dim * x.dtype.itemsize
                      + weight_bytes
                      + (2 * hid_p + 3 * out_p) * 4
                      + n * out_p * o_bytes)
    cost = pl.CostEstimate(flops=flops, transcendentals=n,
                           bytes_accessed=bytes_accessed)

    out = pl.pallas_call(
        functools.partial(mlp_kernel, float(out_dim), matmul_dtype),
        out_shape=jax.ShapeDtypeStruct((n, out_p), out_dtype),
        grid_spec=pltpu.PrefetchScalarGridSpec(
            num_scalar_prefetch=0,
            grid=(grid_len,),
            in_specs=[
                pl.BlockSpec((row_tile, in_dim), lambda i: (i, 0)),  # x tile
                resident((in_dim, hid_p)),                           # W1
                resident((hid_p, hid_p)),                            # W2
                resident((hid_p, out_p)),                            # W3
                resident((2, hid_p)),                                # [b1; b2]
                resident((3, out_p)),                                # [b3; g; b]
            ],
            out_specs=pl.BlockSpec((row_tile, out_p), lambda i: (i, 0)),
        ),
        compiler_params=pltpu.CompilerParams(
            dimension_semantics=("parallel",),
            vmem_limit_bytes=vmem_limit,
        ),
        cost_estimate=cost,
    )(x, w1p, w2p, w3p, bias_h, ln_out)

    if out_p != out_dim:
        out = out[:, :out_dim]   # only copies when out_dim isn't lane-aligned
    return out


def init_params(key, in_dim, hidden_dim, out_dim):
    """Deterministic synthetic parameters (Kaiming-ish uniform, like torch)."""
    ks = jax.random.split(key, 6)

    def linear(kw, kb, fan_in, fan_out):
        bound = 1.0 / jnp.sqrt(fan_in)
        w = jax.random.uniform(kw, (fan_in, fan_out), jnp.float32, -bound, bound)
        b = jax.random.uniform(kb, (1, fan_out), jnp.float32, -bound, bound)
        return w, b

    w1, b1 = linear(ks[0], ks[1], in_dim, hidden_dim)
    w2, b2 = linear(ks[2], ks[3], hidden_dim, hidden_dim)
    w3, b3 = linear(ks[4], ks[5], hidden_dim, out_dim)
    gamma = jnp.ones((1, out_dim), jnp.float32)
    beta = jnp.zeros((1, out_dim), jnp.float32)
    return (w1, b1, w2, b2, w3, b3, gamma, beta)


def mlp_reference(x, params, matmul_dtype=jnp.float32):
    """Pure-JAX reference; matmul_dtype lets us emulate the bf16 MXU path."""
    w1, b1, w2, b2, w3, b3, gamma, beta = params

    def dot(a, w):
        return jnp.dot(a.astype(matmul_dtype), w.astype(matmul_dtype),
                       preferred_element_type=jnp.float32)

    h = jnp.maximum(dot(x, w1) + b1, 0.0)
    h = jnp.maximum(dot(h, w2) + b2, 0.0)
    y = dot(h, w3) + b3
    mean = jnp.mean(y, axis=-1, keepdims=True)
    var = jnp.mean((y - mean) ** 2, axis=-1, keepdims=True)
    return (y - mean) * jax.lax.rsqrt(var + LN_EPS) * gamma + beta


if __name__ == "__main__":
    # Module defaults: hidden_dim=128, out_dim=128. in_dim=64 exercises the
    # non-128 input width (x block uses the full 64-wide last dim, no padded
    # copy). N=2048 -> row_tile=1024, grid=(2,) -> one big step per v7x TC.
    N, IN_DIM, HIDDEN_DIM, OUT_DIM = 2048, 64, 128, 128

    key = jax.random.PRNGKey(0)
    kx, kp = jax.random.split(key)
    x = jax.random.normal(kx, (N, IN_DIM), jnp.float32)
    params = init_params(kp, IN_DIM, HIDDEN_DIM, OUT_DIM)

    # Default (bf16 MXU) path.
    out = jax.block_until_ready(mlp_forward(x, params))
    assert out.shape == (N, OUT_DIM) and out.dtype == jnp.float32

    # Tight check against a reference using the same bf16 matmul inputs.
    ref_bf16 = mlp_reference(x, params, matmul_dtype=jnp.bfloat16)
    assert jnp.allclose(out, ref_bf16, atol=2e-2, rtol=2e-2)
    # Loose check against exact f32 module semantics (bf16 rounding only).
    ref_f32 = mlp_reference(x, params, matmul_dtype=jnp.float32)
    assert jnp.allclose(out, ref_f32, atol=8e-2, rtol=0.0)

    # Exact-semantics (f32 matmul) path, tight tolerance.
    out_f32 = jax.block_until_ready(
        mlp_forward(x, params, matmul_dtype=jnp.float32))
    assert jnp.allclose(out_f32, ref_f32, atol=2e-3, rtol=2e-3)

    # TODO(synk): torch.utils.checkpoint only affects the backward pass
    # (recompute-in-bwd); forward semantics are identical, so it is a no-op here.
    print("KERNEL_OK")
</pallas_src>

<mosaic_0001>
module attributes {stable_mosaic.version = 11 : i64} {
  func.func @mlp_kernel(%arg0: i32, %arg1: memref<1024x64xf32, #tpu.memory_space<vmem>>, %arg2: memref<64x128xbf16, #tpu.memory_space<vmem>>, %arg3: memref<128x128xbf16, #tpu.memory_space<vmem>>, %arg4: memref<128x128xbf16, #tpu.memory_space<vmem>>, %arg5: memref<2x128xf32, #tpu.memory_space<vmem>>, %arg6: memref<3x128xf32, #tpu.memory_space<vmem>>, %arg7: memref<1024x128xf32, #tpu.memory_space<vmem>>) attributes {dimension_semantics = [#tpu.dimension_semantics<parallel>], iteration_bounds = array<i64: 2>, scalar_prefetch = 0 : i64, scratch_operands = 0 : i64, tpu.core_type = #tpu.core_type<tc>, window_params = [{transform_indices = @transform_0, window_bounds = array<i64: 1024, 64>}, {pipeline_mode = #tpu.pipeline_mode<synchronous>, transform_indices = @transform_1, window_bounds = array<i64: 64, 128>}, {pipeline_mode = #tpu.pipeline_mode<synchronous>, transform_indices = @transform_2, window_bounds = array<i64: 128, 128>}, {pipeline_mode = #tpu.pipeline_mode<synchronous>, transform_indices = @transform_3, window_bounds = array<i64: 128, 128>}, {pipeline_mode = #tpu.pipeline_mode<synchronous>, transform_indices = @transform_4, window_bounds = array<i64: 2, 128>}, {pipeline_mode = #tpu.pipeline_mode<synchronous>, transform_indices = @transform_5, window_bounds = array<i64: 3, 128>}, {transform_indices = @transform_6, window_bounds = array<i64: 1024, 128>}]} {
    %c0 = arith.constant 0 : index
    %c0_0 = arith.constant 0 : index
    %0 = vector.load %arg5[%c0, %c0_0] : memref<2x128xf32, #tpu.memory_space<vmem>>, vector<1x128xf32>
    %c1 = arith.constant 1 : index
    %c0_1 = arith.constant 0 : index
    %1 = vector.load %arg5[%c1, %c0_1] : memref<2x128xf32, #tpu.memory_space<vmem>>, vector<1x128xf32>
    %c0_2 = arith.constant 0 : index
    %c0_3 = arith.constant 0 : index
    %2 = vector.load %arg6[%c0_2, %c0_3] : memref<3x128xf32, #tpu.memory_space<vmem>>, vector<1x128xf32>
    %c1_4 = arith.constant 1 : index
    %c0_5 = arith.constant 0 : index
    %3 = vector.load %arg6[%c1_4, %c0_5] : memref<3x128xf32, #tpu.memory_space<vmem>>, vector<1x128xf32>
    %c2 = arith.constant 2 : index
    %c0_6 = arith.constant 0 : index
    %4 = vector.load %arg6[%c2, %c0_6] : memref<3x128xf32, #tpu.memory_space<vmem>>, vector<1x128xf32>
    %c0_7 = arith.constant 0 : index
    %c0_8 = arith.constant 0 : index
    %5 = vector.load %arg1[%c0_7, %c0_8] : memref<1024x64xf32, #tpu.memory_space<vmem>>, vector<1024x64xf32>
    %6 = arith.truncf %5 : vector<1024x64xf32> to vector<1024x64xbf16>
    %c0_9 = arith.constant 0 : index
    %c0_10 = arith.constant 0 : index
    %7 = vector.load %arg2[%c0_9, %c0_10] : memref<64x128xbf16, #tpu.memory_space<vmem>>, vector<64x128xbf16>
    %cst = arith.constant dense<0.000000e+00> : vector<1024x128xf32>
    %8 = tpu.matmul %6, %7, %cst {dimension_numbers = #tpu.dot_dimension_numbers<[1], [0], [0], [1], [0, 0, 1, 1], [], []>} : vector<1024x64xbf16>, vector<64x128xbf16>, vector<1024x128xf32> -> vector<1024x128xf32>
    %9 = vector.broadcast %0 : vector<1x128xf32> to vector<1024x128xf32>
    %10 = arith.addf %8, %9 : vector<1024x128xf32>
    %cst_11 = arith.constant 0.000000e+00 : f32
    %11 = vector.broadcast %cst_11 : f32 to vector<1024x128xf32>
    %12 = arith.maximumf %10, %11 : vector<1024x128xf32>
    %13 = arith.truncf %12 : vector<1024x128xf32> to vector<1024x128xbf16>
    %c0_12 = arith.constant 0 : index
    %c0_13 = arith.constant 0 : index
    %14 = vector.load %arg3[%c0_12, %c0_13] : memref<128x128xbf16, #tpu.memory_space<vmem>>, vector<128x128xbf16>
    %cst_14 = arith.constant dense<0.000000e+00> : vector<1024x128xf32>
    %15 = tpu.matmul %13, %14, %cst_14 {dimension_numbers = #tpu.dot_dimension_numbers<[1], [0], [0], [1], [0, 0, 1, 1], [], []>} : vector<1024x128xbf16>, vector<128x128xbf16>, vector<1024x128xf32> -> vector<1024x128xf32>
    %16 = vector.broadcast %1 : vector<1x128xf32> to vector<1024x128xf32>
    %17 = arith.addf %15, %16 : vector<1024x128xf32>
    %cst_15 = arith.constant 0.000000e+00 : f32
    %18 = vector.broadcast %cst_15 : f32 to vector<1024x128xf32>
    %19 = arith.maximumf %17, %18 : vector<1024x128xf32>
    %20 = arith.truncf %19 : vector<1024x128xf32> to vector<1024x128xbf16>
    %c0_16 = arith.constant 0 : index
    %c0_17 = arith.constant 0 : index
    %21 = vector.load %arg4[%c0_16, %c0_17] : memref<128x128xbf16, #tpu.memory_space<vmem>>, vector<128x128xbf16>
    %cst_18 = arith.constant dense<0.000000e+00> : vector<1024x128xf32>
    %22 = tpu.matmul %20, %21, %cst_18 {dimension_numbers = #tpu.dot_dimension_numbers<[1], [0], [0], [1], [0, 0, 1, 1], [], []>} : vector<1024x128xbf16>, vector<128x128xbf16>, vector<1024x128xf32> -> vector<1024x128xf32>
    %23 = vector.broadcast %2 : vector<1x128xf32> to vector<1024x128xf32>
    %24 = arith.addf %22, %23 : vector<1024x128xf32>
    %cst_19 = arith.constant dense<0.000000e+00> : vector<1024xf32>
    %25 = vector.multi_reduction <add>, %24, %cst_19 [1] : vector<1024x128xf32> to vector<1024xf32>
    %26 = vector.shape_cast %25 : vector<1024xf32> to vector<1024x1xf32>
    %cst_20 = arith.constant 7.812500e-03 : f32
    %27 = vector.broadcast %cst_20 : f32 to vector<1024x1xf32>
    %28 = arith.mulf %26, %27 : vector<1024x1xf32>
    %29 = vector.broadcast %28 : vector<1024x1xf32> to vector<1024x128xf32>
    %30 = arith.subf %24, %29 : vector<1024x128xf32>
    %31 = arith.mulf %30, %30 : vector<1024x128xf32>
    %cst_21 = arith.constant dense<0.000000e+00> : vector<1024xf32>
    %32 = vector.multi_reduction <add>, %31, %cst_21 [1] : vector<1024x128xf32> to vector<1024xf32>
    %33 = vector.shape_cast %32 : vector<1024xf32> to vector<1024x1xf32>
    %cst_22 = arith.constant 7.812500e-03 : f32
    %34 = vector.broadcast %cst_22 : f32 to vector<1024x1xf32>
    %35 = arith.mulf %33, %34 : vector<1024x1xf32>
    %cst_23 = arith.constant 9.99999974E-6 : f32
    %36 = vector.broadcast %cst_23 : f32 to vector<1024x1xf32>
    %37 = arith.addf %35, %36 : vector<1024x1xf32>
    %38 = math.rsqrt %37 : vector<1024x1xf32>
    %39 = vector.broadcast %38 : vector<1024x1xf32> to vector<1024x128xf32>
    %40 = arith.mulf %30, %39 : vector<1024x128xf32>
    %41 = vector.broadcast %3 : vector<1x128xf32> to vector<1024x128xf32>
    %42 = arith.mulf %40, %41 : vector<1024x128xf32>
    %43 = vector.broadcast %4 : vector<1x128xf32> to vector<1024x128xf32>
    %44 = arith.addf %42, %43 : vector<1024x128xf32>
    %c0_24 = arith.constant 0 : index
    %c0_25 = arith.constant 0 : index
    %45 = vector.load %arg7[%c0_24, %c0_25] : memref<1024x128xf32, #tpu.memory_space<vmem>>, vector<1024x128xf32>
    tpu.vector_store %arg7[%c0_24, %c0_25], %44 {strides = array<i32>} : memref<1024x128xf32, #tpu.memory_space<vmem>>, vector<1024x128xf32>,
    return
  }
  func.func @transform_0(%arg0: i32) -> (i32, i32) {
    %c0_i32 = arith.constant 0 : i32
    %c0_i32_0 = arith.constant 0 : i32
    return %arg0, %c0_i32 : i32, i32
  }
  func.func @transform_1(%arg0: i32) -> (i32, i32) {
    %c0_i32 = arith.constant 0 : i32
    %c0_i32_0 = arith.constant 0 : i32
    %c0_i32_1 = arith.constant 0 : i32
    return %c0_i32, %c0_i32_0 : i32, i32
  }
  func.func @transform_2(%arg0: i32) -> (i32, i32) {
    %c0_i32 = arith.constant 0 : i32
    %c0_i32_0 = arith.constant 0 : i32
    %c0_i32_1 = arith.constant 0 : i32
    return %c0_i32, %c0_i32_0 : i32, i32
  }
  func.func @transform_3(%arg0: i32) -> (i32, i32) {
    %c0_i32 = arith.constant 0 : i32
    %c0_i32_0 = arith.constant 0 : i32
    %c0_i32_1 = arith.constant 0 : i32
    return %c0_i32, %c0_i32_0 : i32, i32
  }
  func.func @transform_4(%arg0: i32) -> (i32, i32) {
    %c0_i32 = arith.constant 0 : i32
    %c0_i32_0 = arith.constant 0 : i32
    %c0_i32_1 = arith.constant 0 : i32
    return %c0_i32, %c0_i32_0 : i32, i32
  }
  func.func @transform_5(%arg0: i32) -> (i32, i32) {
    %c0_i32 = arith.constant 0 : i32
    %c0_i32_0 = arith.constant 0 : i32
    %c0_i32_1 = arith.constant 0 : i32
    return %c0_i32, %c0_i32_0 : i32, i32
  }
  func.func @transform_6(%arg0: i32) -> (i32, i32) {
    %c0_i32 = arith.constant 0 : i32
    %c0_i32_0 = arith.constant 0 : i32
    return %arg0, %c0_i32 : i32, i32
  }
}

</mosaic_0001>

<bundles_post_ra>
// kernel: mlp_forward.1
= control target key start
LH: loop header
LB: loop body
LE: loop exit
PB: predicated region body
PF: predicated region fallthrough
CT: control target
= control target key end

     0   :  { %11 = vsyncpa [#allocation3], 0  ;;  %s8728_s0 = inlined_call_operand.vmem [shape: f32[2048,64], index: 0, kind: input, shape index: {}]   ;;  %s8729_s1 = inlined_call_operand.vmem [shape: bf16[64,128], index: 1, kind: input, shape index: {}]   ;;  %s8730_s2 = inlined_call_operand.vmem [shape: bf16[128,128], index: 2, kind: input, shape index: {}]   ;;  %s8731_s3 = inlined_call_operand.vmem [shape: bf16[128,128], index: 3, kind: input, shape index: {}]   ;;  %s8732_s4 = inlined_call_operand.vmem [shape: f32[2,128], index: 4, kind: input, shape index: {}]   ;;  %s8733_s5 = inlined_call_operand.vmem [shape: f32[3,128], index: 5, kind: input, shape index: {}]   ;;  %s8734_s6 = inlined_call_operand.hbm [shape: f32[2048,128], index: 6, kind: output, shape index: {}]  }
   0x1   :  { %13 = vsyncpa [#allocation3 + $0x1], 0  ;;  %s5883_s21 = smov 0   ;;  %s5885_s22 = smov 0  }
   0x2   :  { %s5887_s23 = smov 0   ;;  %s5889_s24 = smov 0  }
   0x3 LB: > { %s5904_s25 = sadd.s32 4294967295, %s5843_s24   ;;  %s4711_s26 = sadd.s32 4294967294, %s5843_s24   ;;  %s5843_s24 = sphi %s5889_s24, %s9208_s24   ;;  %s5839_s23 = sphi %s5887_s23, %s9207_s23   ;;  %s5835_s22 = sphi %s5885_s22, %s9206_s22   ;;  %s5831_s21 = sphi %s5883_s21, %s9205_s21  }
   0x4   : > { %s5908_s27 = sadd.s32 1, %s5843_s24   ;;  %s157_s28 = sadd.s32 1, %s5839_s23 }
   0x5   : > { %s154_s29 = ssub.s32 %s5843_s24, %s5908_s27  ;;  %p167_p0 = scmp.ne.s32.totalorder %s5839_s23, %s5835_s22 }
   0x6   : > { %p155_p1 = scmp.eq.s32.totalorder %s154_s29, 0  ;;  %p168_p2 = scmp.eq.s32.totalorder %s5904_s25, 1 }
   0x7   : > { %p173_p3 = scmp.ne.s32.totalorder %s5835_s22, %s5831_s21  ;;  %p174_p4 = scmp.eq.s32.totalorder %s4711_s26, 1 }
   0x8   : > { %s5919_s30 = scalar_select %p155_p1, %s5839_s23, %s157_s28  }
   0x9   : > { %p5921_p5 = por %p168_p2, %p167_p0  ;;  %p5925_p6 = por %p174_p4, %p173_p3 }
   0xa   : > { %p4714_p7 = scmp.ge.s32.totalorder %s5843_s24, 1  ;;  %p216_p8 = scmp.lt.s32.totalorder %s5843_s24, 3 }
   0xc   : > { %p217_p9 = pnand %p4714_p7, %p216_p8 }
   0xe   : > { %220 = sbr.rel (%p217_p9) target bundleno = 1331 (0x533), region = 44 }
  0x13   : > { %v5498_v0 = vld [vmem:[%s8729_s1 + $0x18] sm:$0xff]   ;;  %s4716_s11 = sshll.u32 %s5904_s25, 7  ;;  %v5499_v1 = vld [vmem:[%s8729_s1 + $0x10] sm:$0xff]   ;;  %v5500_v2 = vld [vmem:[%s8729_s1 + $0x8] sm:$0xff]   ;;  %vm487_vm0 = vcmask 523264   ;;  %s243_s28 = sand.u32 1, %s5835_s22  }
  0x14   : > { %p247_p10 = scmp.lt.s32.totalorder %s4716_s11, 255  ;;  %5025 = vmatprep.subr.bf16.mxu0 %v5498_v0  ;;  %5449 = vmatprep.subr.bf16.mxu1 %v5498_v0  ;;  %v5501_v5 = vld [vmem:[%s8729_s1] sm:$0xff]   ;;  %v5502_v11 = vld [vmem:[%s8730_s2 + $0x38] sm:$0xff]   ;;  %v5503_v27 = vld [vmem:[%s8730_s2 + $0x30] sm:$0xff]   ;;  %s4715_s10 = sshll.u32 %s243_s28, 10 }
  0x15   : > { %5026 = vmatpush3.bf16.msra.mxu0 %v5498_v0  ;;  %5453 = vmatpush3.bf16.msra.mxu1 %v5498_v0  ;;  %v5504_v34 = vld [vmem:[%s8730_s2 + $0x28] sm:$0xff]   ;;  %v5505_v54 = vld [vmem:[%s8730_s2 + $0x20] sm:$0xff]   ;;  %v5506_v60 = vld [vmem:[%s8730_s2 + $0x18] sm:$0xff]   ;;  %s7519_s13 = scalar_lea.vmem [#allocation2], %s4715_s10  ;;  %s4812_s12 = sshll.u32 %s5904_s25, 14 }
  0x16   : > { %s9210_s11 = smov (!%p247_p10, %s4716_s11), 255  ;;  %5027 = vmatprep.subr.bf16.mxu0 %v5499_v1  ;;  %5450 = vmatprep.subr.bf16.mxu1 %v5499_v1  ;;  %s4649_s14 = sshll.u32 %s7519_s13, 4  ;;  %s8682_s14 = int_to_ptr.vmem [resolvable:$true] %s4649_s14 }
  0x17   : > { %s4717_s16 = sshll.u32 %s9210_s11, 3  ;;  %s8688_s25 = scalar_lea.sflag [#allocation3], %s243_s28 }
  0x18   : > { %s5944_s19 = scalar_lea.vmem %s8728_s0, %s4717_s16  ;;  %s8680_s16 = scalar_lea.hbm %s8734_s6, %s4812_s12 }
  0x19   : > { %5028 = vmatpush3.bf16.msra.mxu0 %v5499_v1  ;;  %v259_v3 = vld [vmem:[%s5944_s19] sm:$0xff]  ;;  %v260_v4 = vld [vmem:[%s5944_s19 + $0x8] sm:$0xff]  ;;  %5454 = vmatpush3.bf16.msra.mxu1 %v5499_v1  ;;  %v261_v7 = vld [vmem:[%s5944_s19 + $0x10] sm:$0xff]  ;;  %s5783_s17 = scalar_lea.vmem %s8682_s14, 16384  ;;  %s5845_s18 = smov [#allocation2]  }
  0x1a   : > { %5029 = vmatprep.subr.bf16.mxu0 %v5500_v2  ;;  %v387_v6 = vpack.c.bf16 %v260_v4, %v259_v3  ;;  %5451 = vmatprep.subr.bf16.mxu1 %v5500_v2  ;;  %v262_v8 = vld [vmem:[%s5944_s19 + $0x18] sm:$0xff]  ;;  %v263_v9 = vld [vmem:[%s5944_s19 + $0x20] sm:$0xff]  ;;  %v264_v10 = vld [vmem:[%s5944_s19 + $0x28] sm:$0xff]  ;;  %p5784_p11 = scmp.ne.s32.totalorder %s8682_s14, %s5783_s17  ;;  %s5787_s20 = sshll.u32 %s5845_s18, 4  ;;  %s5788_s20 = int_to_ptr.vmem [resolvable:$false] %s5787_s20 }
  0x1b   : > { %v388_v12 = vpack.c.bf16 %v262_v8, %v261_v7  ;;  %v389_v13 = vpack.c.bf16 %v264_v10, %v263_v9  ;;  %v265_v14 = vld [vmem:[%s5944_s19 + $0x30] sm:$0xff]  ;;  %v266_v15 = vld [vmem:[%s5944_s19 + $0x38] sm:$0xff]  ;;  %v323_v16 = vld [vmem:[%s5944_s19 + $0x200] sm:$0xff]  ;;  %s5789_s26 = scalar_lea.vmem %s5788_s20, 32768  ;;  %p5790_p0 = scmp.lt.s32.totalorder %s8682_s14, %s5788_s20 }
  0x1c   : > { %5033 = vmatprep.mubr.msk.bf16.mxu0 %vm487_vm0, %v387_v6  ;;  %v267_v17 = vld [vmem:[%s5944_s19 + $0x40] sm:$0xff]  ;;  %v268_v18 = vld [vmem:[%s5944_s19 + $0x48] sm:$0xff]  ;;  %v325_v21 = vld [vmem:[%s5944_s19 + $0x210] sm:$0xff]  ;;  %v390_v23 = vpack.c.bf16 %v266_v15, %v265_v14  ;;  %p5785_p12 = pnand %p5784_p11, %p5921_p5  ;;  %p5791_p1 = scmp.lt.s32.totalorder %s5789_s26, %s5783_s17 }
  0x1d   : > { %5030 = vmatpush3.bf16.msra.mxu0 %v5500_v2  ;;  %5455 = vmatpush3.bf16.msra.mxu1 %v5500_v2  ;;  %v324_v19 = vld [vmem:[%s5944_s19 + $0x208] sm:$0xff]  ;;  %v326_v22 = vld [vmem:[%s5944_s19 + $0x218] sm:$0xff]  ;;  %v327_v25 = vld [vmem:[%s5944_s19 + $0x220] sm:$0xff]  ;;  %v391_v28 = vpack.c.bf16 %v268_v18, %v267_v17 }
  0x1e   : > { %5031 = vmatprep.subr.bf16.mxu0 %v5501_v5  ;;  %5452 = vmatprep.subr.bf16.mxu1 %v5501_v5  ;;  %v419_v20 = vpack.c.bf16 %v324_v19, %v323_v16  ;;  %v420_v24 = vpack.c.bf16 %v326_v22, %v325_v21  ;;  %v328_v26 = vld [vmem:[%s5944_s19 + $0x228] sm:$0xff]  ;;  %v329_v30 = vld [vmem:[%s5944_s19 + $0x230] sm:$0xff]  ;;  %v330_v31 = vld [vmem:[%s5944_s19 + $0x238] sm:$0xff]  ;;  %p5786_p13 = pneg %p5785_p12  ;;  %p5792_p2 = por %p5791_p1, %p5790_p0 }
  0x1f   : > { %v421_v29 = vpack.c.bf16 %v328_v26, %v327_v25  ;;  %v331_v32 = vld [vmem:[%s5944_s19 + $0x240] sm:$0xff]  ;;  %v332_v33 = vld [vmem:[%s5944_s19 + $0x248] sm:$0xff]  ;;  %v269_v35 = vld [vmem:[%s5944_s19 + $0x50] sm:$0xff]  ;;  %v422_v39 = vpack.c.bf16 %v330_v31, %v329_v30 }
  0x20   : > { %5097 = vmatprep.mubr.msk.bf16.mxu1 %vm487_vm0, %v419_v20  ;;  %v270_v36 = vld [vmem:[%s5944_s19 + $0x58] sm:$0xff]  ;;  %v271_v37 = vld [vmem:[%s5944_s19 + $0x60] sm:$0xff]  ;;  %v272_v38 = vld [vmem:[%s5944_s19 + $0x68] sm:$0xff]  ;;  %v423_v40 = vpack.c.bf16 %v332_v33, %v331_v32  ;;  %p5793_p3 = pnand %p5792_p2, %p5786_p13 }
  0x21   : > { %5032 = vmatpush3.bf16.msra.mxu0 %v5501_v5  ;;  %5456 = vmatpush3.bf16.msra.mxu1 %v5501_v5  ;;  %v392_v41 = vpack.c.bf16 %v270_v36, %v269_v35  ;;  %v393_v42 = vpack.c.bf16 %v272_v38, %v271_v37  ;;  %v333_v43 = vld [vmem:[%s5944_s19 + $0x250] sm:$0xff]  ;;  %v334_v44 = vld [vmem:[%s5944_s19 + $0x258] sm:$0xff]  ;;  %v335_v45 = vld [vmem:[%s5944_s19 + $0x260] sm:$0xff] }
  0x22   : > { %5161 = vmatprep.subr.bf16.mxu1 %v5502_v11  ;;  %v336_v46 = vld [vmem:[%s5944_s19 + $0x268] sm:$0xff]  ;;  %v273_v47 = vld [vmem:[%s5944_s19 + $0x70] sm:$0xff]  ;;  %v274_v48 = vld [vmem:[%s5944_s19 + $0x78] sm:$0xff]  ;;  %v424_v51 = vpack.c.bf16 %v334_v44, %v333_v43 }
  0x23   : > { %v275_v49 = vld [vmem:[%s5944_s19 + $0x80] sm:$0xff]  ;;  %v276_v50 = vld [vmem:[%s5944_s19 + $0x88] sm:$0xff]  ;;  %v425_v52 = vpack.c.bf16 %v336_v46, %v335_v45  ;;  %v394_v53 = vpack.c.bf16 %v274_v48, %v273_v47  ;;  %v337_v56 = vld [vmem:[%s5944_s19 + $0x270] sm:$0xff] }
  0x24   : > { %5034 = vmatmul.mubr.msk.bf16.vlgmr.msra.gmra.mxu0 %vm487_vm0, %v388_v12  ;;  %5098 = vmatmul.mubr.msk.bf16.vlgmr.msra.gmra.mxu1 %vm487_vm0, %v420_v24  ;;  %v395_v55 = vpack.c.bf16 %v276_v50, %v275_v49  ;;  %v338_v57 = vld [vmem:[%s5944_s19 + $0x278] sm:$0xff]  ;;  %v339_v58 = vld [vmem:[%s5944_s19 + $0x280] sm:$0xff]  ;;  %v340_v59 = vld [vmem:[%s5944_s19 + $0x288] sm:$0xff] }
  0x25   : > { %5037 = vmatprep.mubr.msk.bf16.mxu0 %vm487_vm0, %v389_v13  ;;  %5162 = vmatpush3.bf16.msra.mxu1 %v5502_v11  ;;  %v277_v61 = vld [vmem:[%s5944_s19 + $0x90] sm:$0xff]  ;;  %v278_v62 = vld [vmem:[%s5944_s19 + $0x98] sm:$0xff]  ;;  %v279_v63 = vld [vmem:[%s5944_s19 + $0xa0] sm:$0xff]  ;;  %v426_v1 = vpack.c.bf16 %v338_v57, %v337_v56  ;;  %v427_v2 = vpack.c.bf16 %v340_v59, %v339_v58 }
  0x26   : > { %5101 = vmatprep.mubr.msk.bf16.mxu1 %vm487_vm0, %v421_v29  ;;  %5163 = vmatprep.subr.bf16.mxu1 %v5503_v27  ;;  %v280_v0 = vld [vmem:[%s5944_s19 + $0xa8] sm:$0xff]  ;;  %v5507_v3 = vld [vmem:[%s8730_s2 + $0x10] sm:$0xff]   ;;  %v396_v4 = vpack.c.bf16 %v278_v62, %v277_v61  ;;  %v342_v7 = vld [vmem:[%s5944_s19 + $0x298] sm:$0xff] }
  0x27   : > { %v397_v5 = vpack.c.bf16 %v280_v0, %v279_v63  ;;  %v341_v6 = vld [vmem:[%s5944_s19 + $0x290] sm:$0xff]  ;;  %v5508_v8 = vld [vmem:[%s8730_s2 + $0x8] sm:$0xff]   ;;  %v343_v9 = vld [vmem:[%s5944_s19 + $0x2a0] sm:$0xff] }
  0x28   : > { %v344_v10 = vld [vmem:[%s5944_s19 + $0x2a8] sm:$0xff]  ;;  %v281_v11 = vld [vmem:[%s5944_s19 + $0xb0] sm:$0xff]  ;;  %v282_v12 = vld [vmem:[%s5944_s19 + $0xb8] sm:$0xff]  ;;  %v428_v15 = vpack.c.bf16 %v342_v7, %v341_v6 }
  0x29   : > { %5164 = vmatpush3.bf16.msra.mxu1 %v5503_v27  ;;  %v283_v13 = vld [vmem:[%s5944_s19 + $0xc0] sm:$0xff]  ;;  %v284_v14 = vld [vmem:[%s5944_s19 + $0xc8] sm:$0xff]  ;;  %v429_v16 = vpack.c.bf16 %v344_v10, %v343_v9  ;;  %v398_v18 = vpack.c.bf16 %v282_v12, %v281_v11  ;;  %v345_v20 = vld [vmem:[%s5944_s19 + $0x2b0] sm:$0xff] }
  0x2a   : > { %5165 = vmatprep.subr.bf16.mxu1 %v5504_v34  ;;  %v5509_v17 = vld [vmem:[%s8730_s2] sm:$0xff]   ;;  %v399_v19 = vpack.c.bf16 %v284_v14, %v283_v13  ;;  %v346_v21 = vld [vmem:[%s5944_s19 + $0x2b8] sm:$0xff]  ;;  %v285_v24 = vld [vmem:[%s5944_s19 + $0xd0] sm:$0xff] }
  0x2b   : > { %v347_v22 = vld [vmem:[%s5944_s19 + $0x2c0] sm:$0xff]  ;;  %v286_v25 = vld [vmem:[%s5944_s19 + $0xd8] sm:$0xff]  ;;  %v288_v27 = vld [vmem:[%s5944_s19 + $0xe8] sm:$0xff] }
  0x2c   : > { %5038 = vmatmul.mubr.msk.bf16.gmra.mxu0 %vm487_vm0, %v390_v23  ;;  %5102 = vmatmul.mubr.msk.bf16.gmra.mxu1 %vm487_vm0, %v422_v39  ;;  %v348_v23 = vld [vmem:[%s5944_s19 + $0x2c8] sm:$0xff]  ;;  %v287_v26 = vld [vmem:[%s5944_s19 + $0xe0] sm:$0xff]  ;;  %v400_v30 = vpack.c.bf16 %v286_v25, %v285_v24  ;;  %v349_v32 = vld [vmem:[%s5944_s19 + $0x2d0] sm:$0xff] }
  0x2d   : > { %5041 = vmatprep.mubr.msk.bf16.mxu0 %vm487_vm0, %v391_v28  ;;  %5105 = vmatprep.mubr.msk.bf16.mxu1 %vm487_vm0, %v423_v40  ;;  %v430_v28 = vpack.c.bf16 %v346_v21, %v345_v20  ;;  %v431_v29 = vpack.c.bf16 %v348_v23, %v347_v22  ;;  %v401_v31 = vpack.c.bf16 %v288_v27, %v287_v26  ;;  %v350_v33 = vld [vmem:[%s5944_s19 + $0x2d8] sm:$0xff]  ;;  %v352_v35 = vld [vmem:[%s5944_s19 + $0x2e8] sm:$0xff]  ;;  %v289_v36 = vld [vmem:[%s5944_s19 + $0xf0] sm:$0xff] }
  0x2e   : > { %5166 = vmatpush3.bf16.msra.mxu1 %v5504_v34  ;;  %v351_v34 = vld [vmem:[%s5944_s19 + $0x2e0] sm:$0xff]  ;;  %v290_v37 = vld [vmem:[%s5944_s19 + $0xf8] sm:$0xff]  ;;  %v292_v39 = vld [vmem:[%s5944_s19 + $0x108] sm:$0xff]  ;;  %v432_v40 = vpack.c.bf16 %v350_v33, %v349_v32 }
  0x2f   : > { %5167 = vmatprep.subr.bf16.mxu1 %v5505_v54  ;;  %v291_v38 = vld [vmem:[%s5944_s19 + $0x100] sm:$0xff]  ;;  %v353_v44 = vld [vmem:[%s5944_s19 + $0x2f0] sm:$0xff]  ;;  %v354_v45 = vld [vmem:[%s5944_s19 + $0x2f8] sm:$0xff] }
  0x30   : > { %v403_v43 = vpack.c.bf16 %v292_v39, %v291_v38  ;;  %v355_v46 = vld [vmem:[%s5944_s19 + $0x300] sm:$0xff]  ;;  %v356_v47 = vld [vmem:[%s5944_s19 + $0x308] sm:$0xff]  ;;  %v293_v48 = vld [vmem:[%s5944_s19 + $0x110] sm:$0xff] }
  0x31   : > { %v294_v49 = vld [vmem:[%s5944_s19 + $0x118] sm:$0xff]  ;;  %v295_v50 = vld [vmem:[%s5944_s19 + $0x120] sm:$0xff]  ;;  %v357_v56 = vld [vmem:[%s5944_s19 + $0x310] sm:$0xff] }
  0x32   : > { %5168 = vmatpush3.bf16.msra.mxu1 %v5505_v54  ;;  %v404_v54 = vpack.c.bf16 %v294_v49, %v293_v48  ;;  %v358_v57 = vld [vmem:[%s5944_s19 + $0x318] sm:$0xff]  ;;  %v359_v58 = vld [vmem:[%s5944_s19 + $0x320] sm:$0xff]  ;;  %v360_v59 = vld [vmem:[%s5944_s19 + $0x328] sm:$0xff] }
  0x33   : > { %5169 = vmatprep.subr.bf16.mxu1 %v5506_v60  ;;  %v298_v61 = vld [vmem:[%s5944_s19 + $0x138] sm:$0xff]  ;;  %v299_v62 = vld [vmem:[%s5944_s19 + $0x140] sm:$0xff]  ;;  %v300_v63 = vld [vmem:[%s5944_s19 + $0x148] sm:$0xff]  ;;  %v436_v0 = vpack.c.bf16 %v358_v57, %v357_v56 }
  0x34   : > { %5042 = vmatmul.mubr.msk.bf16.gmra.mxu0 %vm487_vm0, %v392_v41  ;;  %5106 = vmatmul.mubr.msk.bf16.gmra.mxu1 %vm487_vm0, %v424_v51  ;;  %v433_v41 = vpack.c.bf16 %v352_v35, %v351_v34  ;;  %v296_v51 = vld [vmem:[%s5944_s19 + $0x128] sm:$0xff]  ;;  %v363_v6 = vld [vmem:[%s5944_s19 + $0x340] sm:$0xff]  ;;  %v302_v9 = vld [vmem:[%s5944_s19 + $0x158] sm:$0xff] }
  0x35   : > { %5045 = vmatprep.mubr.msk.bf16.mxu0 %vm487_vm0, %v393_v42  ;;  %5109 = vmatprep.mubr.msk.bf16.mxu1 %vm487_vm0, %v425_v52  ;;  %v402_v42 = vpack.c.bf16 %v290_v37, %v289_v36  ;;  %v434_v52 = vpack.c.bf16 %v354_v45, %v353_v44  ;;  %v364_v7 = vld [vmem:[%s5944_s19 + $0x348] sm:$0xff]  ;;  %v303_v10 = vld [vmem:[%s5944_s19 + $0x160] sm:$0xff]  ;;  %v305_v20 = vld [vmem:[%s5944_s19 + $0x170] sm:$0xff] }
  0x36   : > { %5170 = vmatpush3.bf16.msra.mxu1 %v5506_v60  ;;  %v297_v60 = vld [vmem:[%s5944_s19 + $0x130] sm:$0xff]  ;;  %v304_v11 = vld [vmem:[%s5944_s19 + $0x168] sm:$0xff]  ;;  %v439_v13 = vpack.c.bf16 %v364_v7, %v363_v6  ;;  %v306_v21 = vld [vmem:[%s5944_s19 + $0x178] sm:$0xff] }
  0x37   : > { %5171 = vmatprep.subr.bf16.mxu1 %v5507_v3  ;;  %v307_v22 = vld [vmem:[%s5944_s19 + $0x180] sm:$0xff]  ;;  %v308_v23 = vld [vmem:[%s5944_s19 + $0x188] sm:$0xff]  ;;  %v410_v26 = vpack.c.bf16 %v306_v21, %v305_v20  ;;  %v309_v32 = vld [vmem:[%s5944_s19 + $0x190] sm:$0xff] }
  0x38   : > { %v411_v27 = vpack.c.bf16 %v308_v23, %v307_v22  ;;  %v310_v33 = vld [vmem:[%s5944_s19 + $0x198] sm:$0xff]  ;;  %v311_v34 = vld [vmem:[%s5944_s19 + $0x1a0] sm:$0xff]  ;;  %v312_v35 = vld [vmem:[%s5944_s19 + $0x1a8] sm:$0xff] }
  0x39   : > { %v412_v38 = vpack.c.bf16 %v310_v33, %v309_v32  ;;  %v413_v39 = vpack.c.bf16 %v312_v35, %v311_v34  ;;  %v313_v44 = vld [vmem:[%s5944_s19 + $0x1b0] sm:$0xff]  ;;  %v314_v45 = vld [vmem:[%s5944_s19 + $0x1b8] sm:$0xff] }
  0x3a   : > { %5172 = vmatpush3.bf16.msra.mxu1 %v5507_v3  ;;  %v407_v3 = vpack.c.bf16 %v300_v63, %v299_v62  ;;  %v317_v56 = vld [vmem:[%s5944_s19 + $0x1d0] sm:$0xff]  ;;  %v318_v57 = vld [vmem:[%s5944_s19 + $0x1d8] sm:$0xff] }
  0x3b   : > { %5173 = vmatprep.subr.bf16.mxu1 %v5508_v8  ;;  %v416_v62 = vpack.c.bf16 %v318_v57, %v317_v56 }
  0x3c   : > { %5046 = vmatmul.mubr.msk.bf16.gmra.mxu0 %vm487_vm0, %v394_v53  ;;  %5110 = vmatmul.mubr.msk.bf16.gmra.mxu1 %vm487_vm0, %v426_v1  ;;  %v435_v53 = vpack.c.bf16 %v356_v47, %v355_v46  ;;  %v437_v1 = vpack.c.bf16 %v360_v59, %v359_v58  ;;  %v315_v46 = vld [vmem:[%s5944_s19 + $0x1c0] sm:$0xff]  ;;  %v316_v47 = vld [vmem:[%s5944_s19 + $0x1c8] sm:$0xff] }
  0x3d   : > { %5049 = vmatprep.mubr.msk.bf16.mxu0 %vm487_vm0, %v395_v55  ;;  %5113 = vmatprep.mubr.msk.bf16.mxu1 %vm487_vm0, %v427_v2  ;;  %v405_v55 = vpack.c.bf16 %v296_v51, %v295_v50  ;;  %v406_v2 = vpack.c.bf16 %v298_v61, %v297_v60  ;;  %v414_v50 = vpack.c.bf16 %v314_v45, %v313_v44  ;;  %v319_v58 = vld [vmem:[%s5944_s19 + $0x1e0] sm:$0xff]  ;;  %v320_v59 = vld [vmem:[%s5944_s19 + $0x1e8] sm:$0xff] }
  0x3e   : > { %5174 = vmatpush3.bf16.msra.mxu1 %v5508_v8  ;;  %v301_v8 = vld [vmem:[%s5944_s19 + $0x150] sm:$0xff]  ;;  %v415_v51 = vpack.c.bf16 %v316_v47, %v315_v46  ;;  %v417_v63 = vpack.c.bf16 %v320_v59, %v319_v58 }
  0x3f   : > { %5175 = vmatprep.subr.bf16.mxu1 %v5509_v17  ;;  %v408_v14 = vpack.c.bf16 %v302_v9, %v301_v8  ;;  %v385_v9 = vld [vmem:[%s5944_s19 + $0x3f0] sm:$0xff] }
  0x42   : > { %5176 = vmatpush3.bf16.msra.mxu1 %v5509_v17  ;;  %v366_v17 = vld [vmem:[%s5944_s19 + $0x358] sm:$0xff] }
  0x44   : > { %5050 = vmatmul.mubr.msk.bf16.gmra.mxu0 %vm487_vm0, %v396_v4  ;;  %5114 = vmatmul.mubr.msk.bf16.gmra.mxu1 %vm487_vm0, %v428_v15  ;;  %v361_v4 = vld [vmem:[%s5944_s19 + $0x330] sm:$0xff]  ;;  %v409_v15 = vpack.c.bf16 %v304_v11, %v303_v10  ;;  %v386_v10 = vld [vmem:[%s5944_s19 + $0x3f8] sm:$0xff] }
  0x45   : > { %5053 = vmatprep.mubr.msk.bf16.mxu0 %vm487_vm0, %v397_v5  ;;  %5117 = vmatprep.mubr.msk.bf16.mxu1 %vm487_vm0, %v429_v16  ;;  %v362_v5 = vld [vmem:[%s5944_s19 + $0x338] sm:$0xff]  ;;  %v365_v16 = vld [vmem:[%s5944_s19 + $0x350] sm:$0xff]  ;;  %v450_v11 = vpack.c.bf16 %v386_v10, %v385_v9 }
  0x46   : > { %v438_v12 = vpack.c.bf16 %v362_v5, %v361_v4  ;;  %v440_v24 = vpack.c.bf16 %v366_v17, %v365_v16  ;;  %v321_v4 = vld [vmem:[%s5944_s19 + $0x1f0] sm:$0xff]  ;;  %v322_v5 = vld [vmem:[%s5944_s19 + $0x1f8] sm:$0xff]  ;;  %v6177_v17 = vld [vmem:[%s8732_s4] ss:$0 sm:$0xff] }
  0x47   : > { %v418_v8 = vpack.c.bf16 %v322_v5, %v321_v4 }
  0x4c   : > { %5054 = vmatmul.mubr.msk.bf16.gmra.mxu0 %vm487_vm0, %v398_v18  ;;  %5118 = vmatmul.mubr.msk.bf16.gmra.mxu1 %vm487_vm0, %v430_v28  ;;  %v367_v18 = vld [vmem:[%s5944_s19 + $0x360] sm:$0xff]  ;;  %v369_v28 = vld [vmem:[%s5944_s19 + $0x370] sm:$0xff] }
  0x4d   : > { %5057 = vmatprep.mubr.msk.bf16.mxu0 %vm487_vm0, %v399_v19  ;;  %5121 = vmatprep.mubr.msk.bf16.mxu1 %vm487_vm0, %v431_v29  ;;  %v368_v19 = vld [vmem:[%s5944_s19 + $0x368] sm:$0xff]  ;;  %v370_v29 = vld [vmem:[%s5944_s19 + $0x378] sm:$0xff] }
  0x4e   : > { %v441_v25 = vpack.c.bf16 %v368_v19, %v367_v18  ;;  %v442_v36 = vpack.c.bf16 %v370_v29, %v369_v28 }
  0x54   : > { %5058 = vmatmul.mubr.msk.bf16.gmra.mxu0 %vm487_vm0, %v400_v30  ;;  %5122 = vmatmul.mubr.msk.bf16.gmra.mxu1 %vm487_vm0, %v432_v40  ;;  %v371_v30 = vld [vmem:[%s5944_s19 + $0x380] sm:$0xff]  ;;  %v373_v40 = vld [vmem:[%s5944_s19 + $0x390] sm:$0xff] }
  0x55   : > { %5061 = vmatprep.mubr.msk.bf16.mxu0 %vm487_vm0, %v401_v31  ;;  %5125 = vmatprep.mubr.msk.bf16.mxu1 %vm487_vm0, %v433_v41  ;;  %v372_v31 = vld [vmem:[%s5944_s19 + $0x388] sm:$0xff]  ;;  %v374_v41 = vld [vmem:[%s5944_s19 + $0x398] sm:$0xff] }
  0x56   : > { %v443_v37 = vpack.c.bf16 %v372_v31, %v371_v30  ;;  %v444_v48 = vpack.c.bf16 %v374_v41, %v373_v40 }
  0x5c   : > { %5062 = vmatmul.mubr.msk.bf16.gmra.mxu0 %vm487_vm0, %v402_v42  ;;  %5126 = vmatmul.mubr.msk.bf16.gmra.mxu1 %vm487_vm0, %v434_v52  ;;  %v375_v42 = vld [vmem:[%s5944_s19 + $0x3a0] sm:$0xff]  ;;  %v377_v52 = vld [vmem:[%s5944_s19 + $0x3b0] sm:$0xff] }
  0x5d   : > { %5065 = vmatprep.mubr.msk.bf16.mxu0 %vm487_vm0, %v403_v43  ;;  %5129 = vmatprep.mubr.msk.bf16.mxu1 %vm487_vm0, %v435_v53  ;;  %v376_v43 = vld [vmem:[%s5944_s19 + $0x3a8] sm:$0xff]  ;;  %v378_v53 = vld [vmem:[%s5944_s19 + $0x3b8] sm:$0xff] }
  0x5e   : > { %v445_v49 = vpack.c.bf16 %v376_v43, %v375_v42  ;;  %v446_v60 = vpack.c.bf16 %v378_v53, %v377_v52 }
  0x64   : > { %5066 = vmatmul.mubr.msk.bf16.gmra.mxu0 %vm487_vm0, %v404_v54  ;;  %5130 = vmatmul.mubr.msk.bf16.gmra.mxu1 %vm487_vm0, %v436_v0  ;;  %v379_v54 = vld [vmem:[%s5944_s19 + $0x3c0] sm:$0xff]  ;;  %v381_v0 = vld [vmem:[%s5944_s19 + $0x3d0] sm:$0xff] }
  0x65   : > { %5069 = vmatprep.mubr.msk.bf16.mxu0 %vm487_vm0, %v405_v55  ;;  %5133 = vmatprep.mubr.msk.bf16.mxu1 %vm487_vm0, %v437_v1  ;;  %v380_v55 = vld [vmem:[%s5944_s19 + $0x3c8] sm:$0xff]  ;;  %v382_v1 = vld [vmem:[%s5944_s19 + $0x3d8] sm:$0xff] }
  0x66   : > { %v447_v61 = vpack.c.bf16 %v380_v55, %v379_v54  ;;  %v448_v6 = vpack.c.bf16 %v382_v1, %v381_v0 }
  0x6c   : > { %5070 = vmatmul.mubr.msk.bf16.gmra.mxu0 %vm487_vm0, %v406_v2  ;;  %5134 = vmatmul.mubr.msk.bf16.gmra.mxu1 %vm487_vm0, %v438_v12  ;;  %v383_v2 = vld [vmem:[%s5944_s19 + $0x3e0] sm:$0xff]  ;;  %v5510_v12 = vld [vmem:[%s8731_s3 + $0x38] sm:$0xff]  }
  0x6d   : > { %5073 = vmatprep.mubr.msk.bf16.mxu0 %vm487_vm0, %v407_v3  ;;  %5137 = vmatprep.mubr.msk.bf16.mxu1 %vm487_vm0, %v439_v13  ;;  %v384_v3 = vld [vmem:[%s5944_s19 + $0x3e8] sm:$0xff]  ;;  %v5511_v13 = vld [vmem:[%s8731_s3 + $0x30] sm:$0xff]  }
  0x6e   : > { %v449_v7 = vpack.c.bf16 %v384_v3, %v383_v2  ;;  %5305 = vmatprep.subr.bf16.mxu0 %v5510_v12 }
  0x6f   : > { %5306 = vmatpush3.bf16.msra.mxu0 %v5510_v12 }
  0x70   : > { %5307 = vmatprep.subr.bf16.mxu0 %v5511_v13 }
  0x73   : > { %5308 = vmatpush3.bf16.msra.mxu0 %v5511_v13 }
  0x74   : > { %5074 = vmatmul.mubr.msk.bf16.gmra.mxu0 %vm487_vm0, %v408_v14  ;;  %5138 = vmatmul.mubr.msk.bf16.gmra.mxu1 %vm487_vm0, %v440_v24  ;;  %v5512_v14 = vld [vmem:[%s8731_s3 + $0x28] sm:$0xff]  }
  0x75   : > { %5077 = vmatprep.mubr.msk.bf16.mxu0 %vm487_vm0, %v409_v15  ;;  %5141 = vmatprep.mubr.msk.bf16.mxu1 %vm487_vm0, %v441_v25  ;;  %v5513_v25 = vld [vmem:[%s8731_s3 + $0x20] sm:$0xff]  }
  0x76   : > { %5309 = vmatprep.subr.bf16.mxu0 %v5512_v14 }
  0x77   : > { %5310 = vmatpush3.bf16.msra.mxu0 %v5512_v14 }
  0x78   : > { %5311 = vmatprep.subr.bf16.mxu0 %v5513_v25 }
  0x7b   : > { %5312 = vmatpush3.bf16.msra.mxu0 %v5513_v25 }
  0x7c   : > { %5078 = vmatmul.mubr.msk.bf16.gmra.mxu0 %vm487_vm0, %v410_v26  ;;  %5142 = vmatmul.mubr.msk.bf16.gmra.mxu1 %vm487_vm0, %v442_v36 }
  0x7d   : > { %5081 = vmatprep.mubr.msk.bf16.mxu0 %vm487_vm0, %v411_v27  ;;  %5145 = vmatprep.mubr.msk.bf16.mxu1 %vm487_vm0, %v443_v37 }
  0x84   : > { %5082 = vmatmul.mubr.msk.bf16.gmra.mxu0 %vm487_vm0, %v412_v38  ;;  %5146 = vmatmul.mubr.msk.bf16.gmra.mxu1 %vm487_vm0, %v444_v48 }
  0x85   : > { %5085 = vmatprep.mubr.msk.bf16.mxu0 %vm487_vm0, %v413_v39  ;;  %5149 = vmatprep.mubr.msk.bf16.mxu1 %vm487_vm0, %v445_v49 }
  0x8c   : > { %5086 = vmatmul.mubr.msk.bf16.gmra.mxu0 %vm487_vm0, %v414_v50  ;;  %5150 = vmatmul.mubr.msk.bf16.gmra.mxu1 %vm487_vm0, %v446_v60 }
  0x8d   : > { %5089 = vmatprep.mubr.msk.bf16.mxu0 %vm487_vm0, %v415_v51  ;;  %5153 = vmatprep.mubr.msk.bf16.mxu1 %vm487_vm0, %v447_v61 }
  0x94   : > { %5090 = vmatmul.mubr.msk.bf16.gmra.mxu0 %vm487_vm0, %v416_v62  ;;  %5154 = vmatmul.mubr.msk.bf16.gmra.mxu1 %vm487_vm0, %v448_v6  ;;  %v5514_v62 = vld [vmem:[%s8731_s3 + $0x18] sm:$0xff]  }
  0x95   : > { %5093 = vmatprep.mubr.msk.bf16.mxu0 %vm487_vm0, %v417_v63  ;;  %5157 = vmatprep.mubr.msk.bf16.mxu1 %vm487_vm0, %v449_v7 }
  0x96   : > { %5313 = vmatprep.subr.bf16.mxu0 %v5514_v62 }
  0x97   : > { %5314 = vmatpush3.bf16.msra.mxu0 %v5514_v62 }
  0x9c   : > { %5094 = vmatmul.mubr.msk.bf16.gmra.mxu0 %vm487_vm0, %v418_v8  ;;  %5158 = vmatmul.mubr.msk.bf16.gmra.mxu1 %vm487_vm0, %v450_v11 }
  0xe4   : > { %v5035_v15 = vpop.f32.mrf.mxu0  ;;  %v6182_v23 = vpop.f32.mrf.mxu1 }
  0xe5   : > { %v723_v21 = vadd.f32 %v5035_v15, %v6177_v17 }
  0xe6   : > { %v714_v16 = vpop.f32.mrf.mxu0  ;;  %v6188_v28 = vpop.f32.mrf.mxu1 }
  0xe7   : > { %v715_v19 = vadd.f32 %v6177_v17, %v714_v16  ;;  %v1227_v31 = vmax.f32 %v723_v21, 0.0 }
  0xe8   : > { %v5036_v18 = vpop.f32.mrf.mxu0  ;;  %v6190_v33 = vpop.f32.mrf.mxu1 }
  0xe9   : > { %v726_v20 = vadd.f32 %v5036_v18, %v6177_v17  ;;  %v1225_v29 = vmax.f32 %v715_v19, 0.0 }
  0xea   : > { %v717_v22 = vpop.f32.mrf.mxu0  ;;  %v6192_v37 = vpop.f32.mrf.mxu1 }
  0xeb   : > { %v718_v24 = vadd.f32 %v6177_v17, %v717_v22  ;;  %v1228_v26 = vmax.f32 %v726_v20, 0.0 }
  0xec   : > { %v5039_v27 = vpop.f32.mrf.mxu0  ;;  %v6197_v42 = vpop.f32.mrf.mxu1 }
  0xed   : > { %v1226_v30 = vmax.f32 %v718_v24, 0.0  ;;  %v1354_v35 = vpack.c.bf16 %v1228_v26, %v1227_v31  ;;  %v739_v40 = vadd.f32 %v5039_v27, %v6177_v17 }
  0xee   : > { %v730_v32 = vpop.f32.mrf.mxu0  ;;  %v6200_v46 = vpop.f32.mrf.mxu1 }
  0xef   : > { %v1353_v34 = vpack.c.bf16 %v1226_v30, %v1225_v29  ;;  %v731_v38 = vadd.f32 %v6177_v17, %v730_v32  ;;  %v1231_v49 = vmax.f32 %v739_v40, 0.0  ;;  %v5515_v40 = vld [vmem:[%s8731_s3 + $0x10] sm:$0xff]  }
  0xf0   : > { %v5040_v36 = vpop.f32.mrf.mxu0  ;;  %v6202_v51 = vpop.f32.mrf.mxu1  ;;  %5315 = vmatprep.subr.bf16.mxu0 %v5515_v40 }
  0xf1   : > { %v742_v39 = vadd.f32 %v5040_v36, %v6177_v17  ;;  %5177 = vmatprep.mubr.bf16.mxu1 %v1353_v34  ;;  %v1229_v47 = vmax.f32 %v731_v38, 0.0  ;;  %5316 = vmatpush3.bf16.msra.mxu0 %v5515_v40 }
  0xf2   : > { %v733_v41 = vpop.f32.mrf.mxu0  ;;  %5178 = vmatmul.mubr.bf16.vlgmr.msra.gmra.mxu1 %v1354_v35  ;;  %v6204_v55 = vpop.f32.mrf.mxu1 }
  0xf3   : > { %v734_v43 = vadd.f32 %v6177_v17, %v733_v41  ;;  %v1232_v44 = vmax.f32 %v742_v39, 0.0 }
  0xf4   : > { %v5043_v45 = vpop.f32.mrf.mxu0  ;;  %v6209_v60 = vpop.f32.mrf.mxu1 }
  0xf5   : > { %v1230_v48 = vmax.f32 %v734_v43, 0.0  ;;  %v1356_v53 = vpack.c.bf16 %v1232_v44, %v1231_v49  ;;  %v755_v58 = vadd.f32 %v5043_v45, %v6177_v17 }
  0xf6   : > { %v746_v50 = vpop.f32.mrf.mxu0  ;;  %v6215_v1 = vpop.f32.mrf.mxu1 }
  0xf7   : > { %v1355_v52 = vpack.c.bf16 %v1230_v48, %v1229_v47  ;;  %v747_v56 = vadd.f32 %v6177_v17, %v746_v50  ;;  %v1235_v4 = vmax.f32 %v755_v58, 0.0 }
  0xf8   : > { %v5044_v54 = vpop.f32.mrf.mxu0  ;;  %v6217_v6 = vpop.f32.mrf.mxu1 }
  0xf9   : > { %v758_v57 = vadd.f32 %v5044_v54, %v6177_v17  ;;  %5181 = vmatprep.mubr.bf16.mxu1 %v1355_v52  ;;  %v1233_v2 = vmax.f32 %v747_v56, 0.0 }
  0xfa   : > { %v749_v59 = vpop.f32.mrf.mxu0  ;;  %5182 = vmatmul.mubr.bf16.gmra.mxu1 %v1356_v53  ;;  %v6219_v10 = vpop.f32.mrf.mxu1 }
  0xfb   : > { %v750_v61 = vadd.f32 %v6177_v17, %v749_v59  ;;  %v1236_v63 = vmax.f32 %v758_v57, 0.0 }
  0xfc   : > { %v5047_v0 = vpop.f32.mrf.mxu0  ;;  %v6224_v15 = vpop.f32.mrf.mxu1 }
  0xfd   : > { %v1234_v3 = vmax.f32 %v750_v61, 0.0  ;;  %v1358_v8 = vpack.c.bf16 %v1236_v63, %v1235_v4  ;;  %v771_v13 = vadd.f32 %v5047_v0, %v6177_v17 }
  0xfe   : > { %v762_v5 = vpop.f32.mrf.mxu0  ;;  %v6227_v20 = vpop.f32.mrf.mxu1 }
  0xff   : > { %v1357_v7 = vpack.c.bf16 %v1234_v3, %v1233_v2  ;;  %v763_v11 = vadd.f32 %v6177_v17, %v762_v5  ;;  %v1239_v24 = vmax.f32 %v771_v13, 0.0 }
 0x100   : > { %v5048_v9 = vpop.f32.mrf.mxu0  ;;  %v6229_v26 = vpop.f32.mrf.mxu1 }
 0x101   : > { %v774_v12 = vadd.f32 %v5048_v9, %v6177_v17  ;;  %5185 = vmatprep.mubr.bf16.mxu1 %v1357_v7  ;;  %v1237_v21 = vmax.f32 %v763_v11, 0.0 }
 0x102   : > { %v765_v14 = vpop.f32.mrf.mxu0  ;;  %5186 = vmatmul.mubr.bf16.gmra.mxu1 %v1358_v8  ;;  %v6231_v31 = vpop.f32.mrf.mxu1 }
 0x103   : > { %v766_v16 = vadd.f32 %v6177_v17, %v765_v14  ;;  %v1240_v18 = vmax.f32 %v774_v12, 0.0 }
 0x104   : > { %v5051_v19 = vpop.f32.mrf.mxu0  ;;  %v6236_v38 = vpop.f32.mrf.mxu1 }
 0x105   : > { %v1238_v22 = vmax.f32 %v766_v16, 0.0  ;;  %v1360_v29 = vpack.c.bf16 %v1240_v18, %v1239_v24  ;;  %v787_v35 = vadd.f32 %v5051_v19, %v6177_v17 }
 0x106   : > { %v778_v25 = vpop.f32.mrf.mxu0  ;;  %v6242_v44 = vpop.f32.mrf.mxu1 }
 0x107   : > { %v1359_v27 = vpack.c.bf16 %v1238_v22, %v1237_v21  ;;  %v779_v32 = vadd.f32 %v6177_v17, %v778_v25  ;;  %v1243_v48 = vmax.f32 %v787_v35, 0.0  ;;  %v5516_v25 = vld [vmem:[%s8731_s3 + $0x8] sm:$0xff]  }
 0x108   : > { %v5052_v30 = vpop.f32.mrf.mxu0  ;;  %v6244_v50 = vpop.f32.mrf.mxu1  ;;  %5317 = vmatprep.subr.bf16.mxu0 %v5516_v25 }
 0x109   : > { %v790_v34 = vadd.f32 %v5052_v30, %v6177_v17  ;;  %5189 = vmatprep.mubr.bf16.mxu1 %v1359_v27  ;;  %v1241_v45 = vmax.f32 %v779_v32, 0.0  ;;  %5318 = vmatpush3.bf16.msra.mxu0 %v5516_v25 }
 0x10a   : > { %v781_v36 = vpop.f32.mrf.mxu0  ;;  %5190 = vmatmul.mubr.bf16.gmra.mxu1 %v1360_v29  ;;  %v6246_v56 = vpop.f32.mrf.mxu1 }
 0x10b   : > { %v782_v39 = vadd.f32 %v6177_v17, %v781_v36  ;;  %v1244_v41 = vmax.f32 %v790_v34, 0.0 }
 0x10c   : > { %v5055_v43 = vpop.f32.mrf.mxu0  ;;  %v6251_v62 = vpop.f32.mrf.mxu1 }
 0x10d   : > { %v1242_v47 = vmax.f32 %v782_v39, 0.0  ;;  %v1362_v53 = vpack.c.bf16 %v1244_v41, %v1243_v48  ;;  %v803_v59 = vadd.f32 %v5055_v43, %v6177_v17 }
 0x10e   : > { %v794_v49 = vpop.f32.mrf.mxu0  ;;  %v6254_v3 = vpop.f32.mrf.mxu1 }
 0x10f   : > { %v1361_v52 = vpack.c.bf16 %v1242_v47, %v1241_v45  ;;  %v795_v57 = vadd.f32 %v6177_v17, %v794_v49  ;;  %v1247_v7 = vmax.f32 %v803_v59, 0.0 }
 0x110   : > { %v5056_v54 = vpop.f32.mrf.mxu0  ;;  %v6256_v9 = vpop.f32.mrf.mxu1 }
 0x111   : > { %v806_v58 = vadd.f32 %v5056_v54, %v6177_v17  ;;  %5193 = vmatprep.mubr.bf16.mxu1 %v1361_v52  ;;  %v1245_v4 = vmax.f32 %v795_v57, 0.0 }
 0x112   : > { %v797_v61 = vpop.f32.mrf.mxu0  ;;  %5194 = vmatmul.mubr.bf16.gmra.mxu1 %v1362_v53  ;;  %v6258_v14 = vpop.f32.mrf.mxu1 }
 0x113   : > { %v798_v63 = vadd.f32 %v6177_v17, %v797_v61  ;;  %v1248_v0 = vmax.f32 %v806_v58, 0.0 }
 0x114   : > { %v5059_v2 = vpop.f32.mrf.mxu0  ;;  %v6263_v22 = vpop.f32.mrf.mxu1 }
 0x115   : > { %v1246_v5 = vmax.f32 %v798_v63, 0.0  ;;  %v1364_v12 = vpack.c.bf16 %v1248_v0, %v1247_v7  ;;  %v819_v19 = vadd.f32 %v5059_v2, %v6177_v17 }
 0x116   : > { %v810_v8 = vpop.f32.mrf.mxu0  ;;  %v6269_v30 = vpop.f32.mrf.mxu1 }
 0x117   : > { %v1363_v11 = vpack.c.bf16 %v1246_v5, %v1245_v4  ;;  %v811_v16 = vadd.f32 %v6177_v17, %v810_v8  ;;  %v1251_v35 = vmax.f32 %v819_v19, 0.0 }
 0x118   : > { %v5060_v13 = vpop.f32.mrf.mxu0  ;;  %v6271_v39 = vpop.f32.mrf.mxu1 }
 0x119   : > { %v822_v18 = vadd.f32 %v5060_v13, %v6177_v17  ;;  %5197 = vmatprep.mubr.bf16.mxu1 %v1363_v11  ;;  %v1249_v32 = vmax.f32 %v811_v16, 0.0 }
 0x11a   : > { %v813_v21 = vpop.f32.mrf.mxu0  ;;  %5198 = vmatmul.mubr.bf16.gmra.mxu1 %v1364_v12  ;;  %v6273_v45 = vpop.f32.mrf.mxu1 }
 0x11b   : > { %v814_v24 = vadd.f32 %v6177_v17, %v813_v21  ;;  %v1252_v27 = vmax.f32 %v822_v18, 0.0  ;;  %v5517_v18 = vld [vmem:[%s8731_s3] sm:$0xff]  }
 0x11c   : > { %v5063_v29 = vpop.f32.mrf.mxu0  ;;  %v6279_v58 = vpop.f32.mrf.mxu1  ;;  %5319 = vmatprep.subr.bf16.mxu0 %v5517_v18 }
 0x11d   : > { %v1250_v34 = vmax.f32 %v814_v24, 0.0  ;;  %v1366_v41 = vpack.c.bf16 %v1252_v27, %v1251_v35  ;;  %v835_v49 = vadd.f32 %v5063_v29, %v6177_v17  ;;  %5320 = vmatpush3.bf16.msra.mxu0 %v5517_v18 }
 0x11e   : > { %v826_v36 = vpop.f32.mrf.mxu0  ;;  %v6281_v7 = vpop.f32.mrf.mxu1 }
 0x11f   : > { %v1365_v40 = vpack.c.bf16 %v1250_v34, %v1249_v32  ;;  %v827_v47 = vadd.f32 %v6177_v17, %v826_v36  ;;  %v1255_v63 = vmax.f32 %v835_v49, 0.0 }
 0x120   : > { %v5064_v43 = vpop.f32.mrf.mxu0  ;;  %v6290_v24 = vpop.f32.mrf.mxu1 }
 0x121   : > { %v838_v48 = vadd.f32 %v5064_v43, %v6177_v17  ;;  %5201 = vmatprep.mubr.bf16.mxu1 %v1365_v40  ;;  %v1253_v59 = vmax.f32 %v827_v47, 0.0 }
 0x122   : > { %v829_v52 = vpop.f32.mrf.mxu0  ;;  %5202 = vmatmul.mubr.bf16.gmra.mxu1 %v1366_v41  ;;  %v6292_v40 = vpop.f32.mrf.mxu1 }
 0x123   : > { %v830_v53 = vadd.f32 %v6177_v17, %v829_v52  ;;  %v1256_v54 = vmax.f32 %v838_v48, 0.0 }
 0x124   : > { %v5067_v57 = vpop.f32.mrf.mxu0 }
 0x125   : > { %v1254_v61 = vmax.f32 %v830_v53, 0.0  ;;  %v1368_v4 = vpack.c.bf16 %v1256_v54, %v1255_v63  ;;  %v851_v12 = vadd.f32 %v5067_v57, %v6177_v17  ;;  %v6298_v54 = vpop.f32.mrf.mxu1 }
 0x126   : > { %v842_v0 = vpop.f32.mrf.mxu0 }
 0x127   : > { %v1367_v2 = vpack.c.bf16 %v1254_v61, %v1253_v59  ;;  %v843_v8 = vadd.f32 %v6177_v17, %v842_v0  ;;  %v1259_v29 = vmax.f32 %v851_v12, 0.0 }
 0x128   : > { %v5068_v5 = vpop.f32.mrf.mxu0 }
 0x129   : > { %v854_v11 = vadd.f32 %v5068_v5, %v6177_v17  ;;  %5205 = vmatprep.mubr.bf16.mxu1 %v1367_v2  ;;  %v1257_v25 = vmax.f32 %v843_v8, 0.0  ;;  %v6300_v5 = vpop.f32.mrf.mxu1 }
 0x12a   : > { %v845_v13 = vpop.f32.mrf.mxu0  ;;  %5206 = vmatmul.mubr.bf16.gmra.mxu1 %v1368_v4 }
 0x12b   : > { %v846_v16 = vadd.f32 %v6177_v17, %v845_v13  ;;  %v1260_v19 = vmax.f32 %v854_v11, 0.0 }
 0x12c   : > { %v5071_v21 = vpop.f32.mrf.mxu0 }
 0x12d   : > { %v1258_v27 = vmax.f32 %v846_v16, 0.0  ;;  %v1370_v35 = vpack.c.bf16 %v1260_v19, %v1259_v29  ;;  %v867_v47 = vadd.f32 %v5071_v21, %v6177_v17  ;;  %v6306_v21 = vpop.f32.mrf.mxu1 }
 0x12e   : > { %v858_v32 = vpop.f32.mrf.mxu0 }
 0x12f   : > { %v1369_v34 = vpack.c.bf16 %v1258_v27, %v1257_v25  ;;  %v859_v41 = vadd.f32 %v6177_v17, %v858_v32  ;;  %v1263_v61 = vmax.f32 %v867_v47, 0.0 }
 0x130   : > { %v5072_v36 = vpop.f32.mrf.mxu0 }
 0x131   : > { %v870_v43 = vadd.f32 %v5072_v36, %v6177_v17  ;;  %5209 = vmatprep.mubr.bf16.mxu1 %v1369_v34  ;;  %v1261_v57 = vmax.f32 %v859_v41, 0.0  ;;  %v6308_v41 = vpop.f32.mrf.mxu1 }
 0x132   : > { %v861_v48 = vpop.f32.mrf.mxu0  ;;  %5210 = vmatmul.mubr.bf16.gmra.mxu1 %v1370_v35 }
 0x133   : > { %v862_v49 = vadd.f32 %v6177_v17, %v861_v48  ;;  %v1264_v52 = vmax.f32 %v870_v43, 0.0 }
 0x134   : > { %v5075_v53 = vpop.f32.mrf.mxu0 }
 0x135   : > { %v1262_v59 = vmax.f32 %v862_v49, 0.0  ;;  %v1372_v2 = vpack.c.bf16 %v1264_v52, %v1263_v61  ;;  %v883_v12 = vadd.f32 %v5075_v53, %v6177_v17 }
 0x136   : > { %v874_v63 = vpop.f32.mrf.mxu0 }
 0x137   : > { %v1371_v0 = vpack.c.bf16 %v1262_v59, %v1261_v57  ;;  %v875_v8 = vadd.f32 %v6177_v17, %v874_v63  ;;  %v1267_v29 = vmax.f32 %v883_v12, 0.0  ;;  %v6314_v59 = vpop.f32.mrf.mxu1 }
 0x138   : > { %v5076_v4 = vpop.f32.mrf.mxu0 }
 0x139   : > { %v886_v11 = vadd.f32 %v5076_v4, %v6177_v17  ;;  %5213 = vmatprep.mubr.bf16.mxu1 %v1371_v0  ;;  %v1265_v25 = vmax.f32 %v875_v8, 0.0  ;;  %v6316_v12 = vpop.f32.mrf.mxu1 }
 0x13a   : > { %v877_v13 = vpop.f32.mrf.mxu0  ;;  %5214 = vmatmul.mubr.bf16.gmra.mxu1 %v1372_v2 }
 0x13b   : > { %v878_v16 = vadd.f32 %v6177_v17, %v877_v13  ;;  %v1268_v18 = vmax.f32 %v886_v11, 0.0 }
 0x13c   : > { %v5079_v19 = vpop.f32.mrf.mxu0 }
 0x13d   : > { %v1266_v27 = vmax.f32 %v878_v16, 0.0  ;;  %v1374_v35 = vpack.c.bf16 %v1268_v18, %v1267_v29  ;;  %v899_v48 = vadd.f32 %v5079_v19, %v6177_v17 }
 0x13e   : > { %v890_v32 = vpop.f32.mrf.mxu0 }
 0x13f   : > { %v1373_v34 = vpack.c.bf16 %v1266_v27, %v1265_v25  ;;  %v891_v43 = vadd.f32 %v6177_v17, %v890_v32  ;;  %v1271_v0 = vmax.f32 %v899_v48, 0.0  ;;  %v6322_v32 = vpop.f32.mrf.mxu1 }
 0x140   : > { %v5080_v36 = vpop.f32.mrf.mxu0 }
 0x141   : > { %v902_v47 = vadd.f32 %v5080_v36, %v6177_v17  ;;  %5217 = vmatprep.mubr.bf16.mxu1 %v1373_v34  ;;  %v1269_v61 = vmax.f32 %v891_v43, 0.0 }
 0x142   : > { %v893_v49 = vpop.f32.mrf.mxu0  ;;  %5218 = vmatmul.mubr.bf16.gmra.mxu1 %v1374_v35 }
 0x143   : > { %v894_v52 = vadd.f32 %v6177_v17, %v893_v49  ;;  %v1272_v53 = vmax.f32 %v902_v47, 0.0 }
 0x144   : > { %v5083_v57 = vpop.f32.mrf.mxu0 }
 0x145   : > { %v1270_v63 = vmax.f32 %v894_v52, 0.0  ;;  %v1376_v8 = vpack.c.bf16 %v1272_v53, %v1271_v0  ;;  %v915_v18 = vadd.f32 %v5083_v57, %v6177_v17  ;;  %v6324_v52 = vpop.f32.mrf.mxu1 }
 0x146   : > { %v906_v2 = vpop.f32.mrf.mxu0 }
 0x147   : > { %v1375_v4 = vpack.c.bf16 %v1270_v63, %v1269_v61  ;;  %v907_v13 = vadd.f32 %v6177_v17, %v906_v2  ;;  %v1275_v36 = vmax.f32 %v915_v18, 0.0 }
 0x148   : > { %v5084_v11 = vpop.f32.mrf.mxu0 }
 0x149   : > { %v918_v16 = vadd.f32 %v5084_v11, %v6177_v17  ;;  %5221 = vmatprep.mubr.bf16.mxu1 %v1375_v4  ;;  %v1273_v34 = vmax.f32 %v907_v13, 0.0 }
 0x14a   : > { %v909_v19 = vpop.f32.mrf.mxu0  ;;  %5222 = vmatmul.mubr.bf16.gmra.mxu1 %v1376_v8  ;;  %v6330_v8 = vpop.f32.mrf.mxu1 }
 0x14b   : > { %v910_v25 = vadd.f32 %v6177_v17, %v909_v19  ;;  %v1276_v27 = vmax.f32 %v918_v16, 0.0 }
 0x14c   : > { %v5087_v29 = vpop.f32.mrf.mxu0 }
 0x14d   : > { %v1274_v35 = vmax.f32 %v910_v25, 0.0  ;;  %v1378_v48 = vpack.c.bf16 %v1276_v27, %v1275_v36  ;;  %v931_v61 = vadd.f32 %v5087_v29, %v6177_v17 }
 0x14e   : > { %v922_v43 = vpop.f32.mrf.mxu0 }
 0x14f   : > { %v1377_v47 = vpack.c.bf16 %v1274_v35, %v1273_v34  ;;  %v923_v53 = vadd.f32 %v6177_v17, %v922_v43  ;;  %v1279_v16 = vmax.f32 %v931_v61, 0.0  ;;  %v6332_v34 = vpop.f32.mrf.mxu1 }
 0x150   : > { %v5088_v49 = vpop.f32.mrf.mxu0 }
 0x151   : > { %v934_v57 = vadd.f32 %v5088_v49, %v6177_v17  ;;  %5225 = vmatprep.mubr.bf16.mxu1 %v1377_v47  ;;  %v1277_v11 = vmax.f32 %v923_v53, 0.0  ;;  %v6338_v53 = vpop.f32.mrf.mxu1 }
 0x152   : > { %v925_v63 = vpop.f32.mrf.mxu0  ;;  %5226 = vmatmul.mubr.bf16.gmra.mxu1 %v1378_v48 }
 0x153   : > { %v926_v0 = vadd.f32 %v6177_v17, %v925_v63  ;;  %v1280_v2 = vmax.f32 %v934_v57, 0.0 }
 0x154   : > { %v5091_v4 = vpop.f32.mrf.mxu0 }
 0x155   : > { %v1278_v13 = vmax.f32 %v926_v0, 0.0  ;;  %v1380_v25 = vpack.c.bf16 %v1280_v2, %v1279_v16  ;;  %v947_v36 = vadd.f32 %v5091_v4, %v6177_v17  ;;  %v6340_v16 = vpop.f32.mrf.mxu1  ;;  %v971_v4 = vadd.f32 %v6177_v17, %v6188_v28 }
 0x156   : > { %v938_v18 = vpop.f32.mrf.mxu0 }
 0x157   : > { %v1379_v19 = vpack.c.bf16 %v1278_v13, %v1277_v11  ;;  %v939_v35 = vadd.f32 %v6177_v17, %v938_v18  ;;  %v1283_v63 = vmax.f32 %v947_v36, 0.0  ;;  %v974_v18 = vadd.f32 %v6177_v17, %v6192_v37 }
 0x158   : > { %v5092_v27 = vpop.f32.mrf.mxu0 }
 0x159   : > { %v950_v29 = vadd.f32 %v5092_v27, %v6177_v17  ;;  %5229 = vmatprep.mubr.bf16.mxu1 %v1379_v19  ;;  %v1281_v57 = vmax.f32 %v939_v35, 0.0 }
 0x15a   : > { %v941_v43 = vpop.f32.mrf.mxu0  ;;  %5230 = vmatmul.mubr.bf16.gmra.mxu1 %v1380_v25 }
 0x15b   : > { %v942_v47 = vadd.f32 %v6177_v17, %v941_v43  ;;  %v1284_v48 = vmax.f32 %v950_v29, 0.0  ;;  %v6350_v43 = vpop.f32.mrf.mxu1 }
 0x15c   : > { %v5095_v49 = vpop.f32.mrf.mxu0 }
 0x15d   : > { %v1282_v61 = vmax.f32 %v942_v47, 0.0  ;;  %v1382_v11 = vpack.c.bf16 %v1284_v48, %v1283_v63  ;;  %v963_v27 = vadd.f32 %v5095_v49, %v6177_v17  ;;  %v1289_v47 = vmax.f32 %v971_v4, 0.0 }
 0x15e   : > { %v954_v0 = vpop.f32.mrf.mxu0  ;;  %v1290_v48 = vmax.f32 %v974_v18, 0.0  ;;  %v979_v63 = vadd.f32 %v6182_v23, %v6177_v17 }
 0x15f   : > { %v1381_v2 = vpack.c.bf16 %v1282_v61, %v1281_v57  ;;  %v955_v19 = vadd.f32 %v6177_v17, %v954_v0  ;;  %v1287_v61 = vmax.f32 %v963_v27, 0.0  ;;  %v982_v0 = vadd.f32 %v6190_v33, %v6177_v17 }
 0x160   : > { %v5096_v13 = vpop.f32.mrf.mxu0  ;;  %v1385_v4 = vpack.c.bf16 %v1290_v48, %v1289_v47  ;;  %v1291_v18 = vmax.f32 %v979_v63, 0.0  ;;  %v1014_v63 = vadd.f32 %v6217_v6, %v6177_v17  ;;  %v1027_v6 = vadd.f32 %v6224_v15, %v6177_v17 }
 0x161   : > { %v966_v25 = vadd.f32 %v5096_v13, %v6177_v17  ;;  %5233 = vmatprep.mubr.bf16.mxu1 %v1381_v2  ;;  %v1285_v28 = vmax.f32 %v955_v19, 0.0  ;;  %v6356_v2 = vpop.f32.mrf.mxu1  ;;  %v990_v13 = vadd.f32 %v6177_v17, %v6204_v55  ;;  %v1292_v19 = vmax.f32 %v982_v0, 0.0 }
 0x162   : > { %v957_v35 = vpop.f32.mrf.mxu0  ;;  %5234 = vmatmul.mubr.bf16.gmra.mxu1 %v1382_v11  ;;  %v987_v11 = vadd.f32 %v6177_v17, %v6200_v46  ;;  %v998_v46 = vadd.f32 %v6202_v51, %v6177_v17  ;;  %v1003_v55 = vadd.f32 %v6177_v17, %v6215_v1  ;;  %v1011_v51 = vadd.f32 %v6209_v60, %v6177_v17 }
 0x163   : > { %v958_v29 = vadd.f32 %v6177_v17, %v957_v35  ;;  %v1288_v36 = vmax.f32 %v966_v25, 0.0  ;;  %v6362_v25 = vpop.f32.mrf.mxu1  ;;  %v1294_v27 = vmax.f32 %v990_v13, 0.0  ;;  %v1386_v33 = vpack.c.bf16 %v1292_v19, %v1291_v18 }
 0x164   : > { %v1293_v23 = vmax.f32 %v987_v11, 0.0  ;;  %v995_v35 = vadd.f32 %v6197_v42, %v6177_v17  ;;  %v1022_v0 = vadd.f32 %v6177_v17, %v6231_v31  ;;  %v1299_v11 = vmax.f32 %v1011_v51, 0.0 }
 0x165   : > { %v1286_v57 = vmax.f32 %v958_v29, 0.0  ;;  %v1384_v49 = vpack.c.bf16 %v1288_v36, %v1287_v61  ;;  %v6368_v29 = vpop.f32.mrf.mxu1  ;;  %v1006_v36 = vadd.f32 %v6177_v17, %v6219_v10  ;;  %v1297_v61 = vmax.f32 %v1003_v55, 0.0 }
 0x166   : > { %v1387_v47 = vpack.c.bf16 %v1294_v27, %v1293_v23  ;;  %v1295_v48 = vmax.f32 %v995_v35, 0.0  ;;  %v1019_v10 = vadd.f32 %v6177_v17, %v6227_v20  ;;  %v1300_v13 = vmax.f32 %v1014_v63, 0.0 }
 0x167   : > { %v1383_v37 = vpack.c.bf16 %v1286_v57, %v1285_v28  ;;  %v1296_v28 = vmax.f32 %v998_v46, 0.0  ;;  %v6374_v57 = vpop.f32.mrf.mxu1  ;;  %v1298_v42 = vmax.f32 %v1006_v36, 0.0  ;;  %v1302_v60 = vmax.f32 %v1022_v0, 0.0 }
 0x168   : > { %v1301_v18 = vmax.f32 %v1019_v10, 0.0  ;;  %v1390_v19 = vpack.c.bf16 %v1300_v13, %v1299_v11  ;;  %v1030_v23 = vadd.f32 %v6229_v26, %v6177_v17  ;;  %v1035_v31 = vadd.f32 %v6177_v17, %v6242_v44 }
 0x169   : > { %5237 = vmatprep.mubr.bf16.mxu1 %v1383_v37  ;;  %v1388_v37 = vpack.c.bf16 %v1296_v28, %v1295_v48  ;;  %v6380_v1 = vpop.f32.mrf.mxu1  ;;  %v1038_v27 = vadd.f32 %v6177_v17, %v6246_v56  ;;  %v1303_v35 = vmax.f32 %v1027_v6, 0.0  ;;  %v1043_v26 = vadd.f32 %v6236_v38, %v6177_v17 }
 0x16a   : > { %5238 = vmatmul.mubr.bf16.gmra.mxu1 %v1384_v49  ;;  %v1389_v49 = vpack.c.bf16 %v1298_v42, %v1297_v61  ;;  %v1304_v46 = vmax.f32 %v1030_v23, 0.0  ;;  %v1305_v36 = vmax.f32 %v1035_v31, 0.0  ;;  %v1046_v48 = vadd.f32 %v6244_v50, %v6177_v17 }
 0x16b   : > { %5241 = vmatprep.mubr.bf16.mxu1 %v1385_v4  ;;  %v6386_v4 = vpop.f32.mrf.mxu1  ;;  %v1306_v15 = vmax.f32 %v1038_v27, 0.0  ;;  %v1051_v56 = vadd.f32 %v6177_v17, %v6254_v3  ;;  %v1054_v28 = vadd.f32 %v6177_v17, %v6258_v14  ;;  %v1307_v42 = vmax.f32 %v1043_v26, 0.0 }
 0x16c   : > { %v1059_v50 = vadd.f32 %v6251_v62, %v6177_v17  ;;  %v1062_v0 = vadd.f32 %v6256_v9, %v6177_v17  ;;  %v1067_v14 = vadd.f32 %v6177_v17, %v6269_v30  ;;  %v1075_v9 = vadd.f32 %v6263_v22, %v6177_v17 }
 0x16d   : > { %v6392_v20 = vpop.f32.mrf.mxu1  ;;  %v1393_v61 = vpack.c.bf16 %v1306_v15, %v1305_v36  ;;  %v1309_v63 = vmax.f32 %v1051_v56, 0.0  ;;  %v1310_v38 = vmax.f32 %v1054_v28, 0.0  ;;  %v1078_v23 = vadd.f32 %v6271_v39, %v6177_v17 }
 0x16e   : > { %v1311_v13 = vmax.f32 %v1059_v50, 0.0  ;;  %v1086_v31 = vadd.f32 %v6177_v17, %v6292_v40  ;;  %v1091_v39 = vadd.f32 %v6279_v58, %v6177_v17  ;;  %v1099_v40 = vadd.f32 %v6177_v17, %v6300_v5 }
 0x16f   : > { %v6398_v55 = vpop.f32.mrf.mxu1  ;;  %v1395_v11 = vpack.c.bf16 %v1310_v38, %v1309_v63  ;;  %v1102_v26 = vadd.f32 %v6177_v17, %v6308_v41  ;;  %v1110_v63 = vadd.f32 %v6306_v21, %v6177_v17  ;;  %v1115_v41 = vadd.f32 %v6177_v17, %v6316_v12 }
 0x170   : > { %v1318_v22 = vmax.f32 %v1086_v31, 0.0  ;;  %v1319_v56 = vmax.f32 %v1091_v39, 0.0  ;;  %v1118_v38 = vadd.f32 %v6177_v17, %v6324_v52  ;;  %v1123_v21 = vadd.f32 %v6314_v59, %v6177_v17 }
 0x171   : > { %v6404_v44 = vpop.f32.mrf.mxu1  ;;  %v1322_v58 = vmax.f32 %v1102_v26, 0.0  ;;  %v1131_v52 = vadd.f32 %v6177_v17, %v6332_v34  ;;  %v1150_v39 = vadd.f32 %v6177_v17, %v6368_v29 }
 0x172   : > { %5242 = vmatmul.mubr.bf16.gmra.mxu1 %v1386_v33  ;;  %v1391_v33 = vpack.c.bf16 %v1302_v60, %v1301_v18  ;;  %v1312_v18 = vmax.f32 %v1062_v0, 0.0  ;;  %v1324_v0 = vmax.f32 %v1110_v63, 0.0 }
 0x173   : > { %5245 = vmatprep.mubr.bf16.mxu1 %v1387_v47  ;;  %v1392_v47 = vpack.c.bf16 %v1304_v46, %v1303_v35  ;;  %v6410_v51 = vpop.f32.mrf.mxu1  ;;  %v1316_v35 = vmax.f32 %v1078_v23, 0.0 }
 0x174   : > { %v1396_v6 = vpack.c.bf16 %v1312_v18, %v1311_v13  ;;  %v1126_v13 = vadd.f32 %v6322_v32, %v6177_v17  ;;  %v1134_v18 = vadd.f32 %v6177_v17, %v6340_v16  ;;  %v6473_v32 = vld [vmem:[%s8732_s4 + $0x1] ss:$0 sm:$0xff] }
 0x175   : > { %v6416_v3 = vpop.f32.mrf.mxu1 }
 0x176   : > { %v1330_v59 = vmax.f32 %v1134_v18, 0.0 }
 0x177   : > { %v6422_v60 = vpop.f32.mrf.mxu1 }
 0x179   : > { %v6428_v30 = vpop.f32.mrf.mxu1 }
 0x17a   : > { %5246 = vmatmul.mubr.bf16.gmra.mxu1 %v1388_v37  ;;  %v1308_v37 = vmax.f32 %v1046_v48, 0.0 }
 0x17b   : > { %5249 = vmatprep.mubr.bf16.mxu1 %v1389_v49  ;;  %v1070_v49 = vadd.f32 %v6177_v17, %v6273_v45  ;;  %v1083_v45 = vadd.f32 %v6177_v17, %v6281_v7  ;;  %v6434_v46 = vpop.f32.mrf.mxu1 }
 0x17c   : > { %v1394_v10 = vpack.c.bf16 %v1308_v37, %v1307_v42  ;;  %v1321_v42 = vmax.f32 %v1099_v40, 0.0 }
 0x17d   : > { %v1314_v62 = vmax.f32 %v1070_v49, 0.0  ;;  %v1317_v36 = vmax.f32 %v1083_v45, 0.0  ;;  %v6440_v7 = vpop.f32.mrf.mxu1  ;;  %v1325_v49 = vmax.f32 %v1115_v41, 0.0  ;;  %v1329_v45 = vmax.f32 %v1131_v52, 0.0 }
 0x17f   : > { %v1399_v48 = vpack.c.bf16 %v1318_v22, %v1317_v36  ;;  %v1405_v40 = vpack.c.bf16 %v1330_v59, %v1329_v45 }
 0x182   : > { %5250 = vmatmul.mubr.bf16.gmra.mxu1 %v1390_v19  ;;  %v1313_v19 = vmax.f32 %v1067_v14, 0.0 }
 0x183   : > { %5253 = vmatprep.mubr.bf16.mxu1 %v1391_v33  ;;  %v1315_v33 = vmax.f32 %v1075_v9, 0.0  ;;  %v1328_v9 = vmax.f32 %v1126_v13, 0.0 }
 0x184   : > { %v1397_v27 = vpack.c.bf16 %v1314_v62, %v1313_v19 }
 0x185   : > { %v1398_v15 = vpack.c.bf16 %v1316_v35, %v1315_v33  ;;  %v1139_v33 = vadd.f32 %v6330_v8, %v6177_v17  ;;  %v1142_v35 = vadd.f32 %v6338_v53, %v6177_v17 }
 0x187   : > { %v1332_v53 = vmax.f32 %v1142_v35, 0.0 }
 0x18a   : > { %5254 = vmatmul.mubr.bf16.gmra.mxu1 %v1392_v47  ;;  %v1094_v47 = vadd.f32 %v6290_v24, %v6177_v17  ;;  %v1107_v24 = vadd.f32 %v6298_v54, %v6177_v17  ;;  %v1326_v54 = vmax.f32 %v1118_v38, 0.0 }
 0x18b   : > { %5257 = vmatprep.mubr.bf16.mxu1 %v1393_v61  ;;  %v6446_v61 = vpop.f32.mrf.mxu1 }
 0x18c   : > { %v1320_v28 = vmax.f32 %v1094_v47, 0.0  ;;  %v1323_v50 = vmax.f32 %v1107_v24, 0.0  ;;  %v1403_v19 = vpack.c.bf16 %v1326_v54, %v1325_v49  ;;  %v1334_v24 = vmax.f32 %v1150_v39, 0.0 }
 0x18d   : > { %v6452_v5 = vpop.f32.mrf.mxu1 }
 0x18e   : > { %v1400_v37 = vpack.c.bf16 %v1320_v28, %v1319_v56  ;;  %v1331_v28 = vmax.f32 %v1139_v33, 0.0 }
 0x18f   : > { %v6458_v14 = vpop.f32.mrf.mxu1 }
 0x191   : > { %v6464_v12 = vpop.f32.mrf.mxu1 }
 0x192   : > { %5258 = vmatmul.mubr.bf16.gmra.mxu1 %v1394_v10  ;;  %v1401_v10 = vpack.c.bf16 %v1322_v58, %v1321_v42 }
 0x193   : > { %5261 = vmatprep.mubr.bf16.mxu1 %v1395_v11  ;;  %v1402_v11 = vpack.c.bf16 %v1324_v0, %v1323_v50  ;;  %v1155_v50 = vadd.f32 %v6350_v43, %v6177_v17  ;;  %v1158_v0 = vadd.f32 %v6362_v25, %v6177_v17 }
 0x195   : > { %v1335_v25 = vmax.f32 %v1155_v50, 0.0 }
 0x19a   : > { %5262 = vmatmul.mubr.bf16.gmra.mxu1 %v1396_v6  ;;  %v1327_v6 = vmax.f32 %v1123_v21, 0.0  ;;  %v1166_v21 = vadd.f32 %v6177_v17, %v6392_v20 }
 0x19b   : > { %5265 = vmatprep.mubr.bf16.mxu1 %v1397_v27 }
 0x19c   : > { %v1404_v16 = vpack.c.bf16 %v1328_v9, %v1327_v6  ;;  %v1336_v6 = vmax.f32 %v1158_v0, 0.0  ;;  %v1338_v59 = vmax.f32 %v1166_v21, 0.0 }
 0x1a2   : > { %5266 = vmatmul.mubr.bf16.gmra.mxu1 %v1398_v15  ;;  %v1147_v15 = vadd.f32 %v6177_v17, %v6356_v2 }
 0x1a3   : > { %5269 = vmatprep.mubr.bf16.mxu1 %v1399_v48 }
 0x1aa   : > { %5270 = vmatmul.mubr.bf16.gmra.mxu1 %v1400_v37  ;;  %v1333_v37 = vmax.f32 %v1147_v15, 0.0 }
 0x1ab   : > { %5273 = vmatprep.mubr.bf16.mxu1 %v1401_v10  ;;  %v1406_v10 = vpack.c.bf16 %v1332_v53, %v1331_v28 }
 0x1ac   : > { %v1407_v52 = vpack.c.bf16 %v1334_v24, %v1333_v37 }
 0x1b2   : > { %v5179_v62 = vpop.f32.mrf.mxu1  ;;  %5274 = vmatmul.mubr.bf16.gmra.mxu1 %v1402_v11  ;;  %v1163_v11 = vadd.f32 %v6177_v17, %v6380_v1 }
 0x1b3   : > { %5277 = vmatprep.mubr.bf16.mxu1 %v1403_v19  ;;  %v1528_v36 = vadd.f32 %v5179_v62, %v6473_v32 }
 0x1b4   : > { %v1519_v23 = vpop.f32.mrf.mxu1  ;;  %v1337_v45 = vmax.f32 %v1163_v11, 0.0 }
 0x1b5   : > { %v1520_v34 = vadd.f32 %v6473_v32, %v1519_v23  ;;  %v2032_v42 = vmax.f32 %v1528_v36, 0.0 }
 0x1b6   : > { %v5180_v31 = vpop.f32.mrf.mxu1 }
 0x1b7   : > { %v1531_v27 = vadd.f32 %v5180_v31, %v6473_v32  ;;  %v2030_v56 = vmax.f32 %v1520_v34, 0.0 }
 0x1b8   : > { %v1522_v22 = vpop.f32.mrf.mxu1 }
 0x1b9   : > { %v1523_v47 = vadd.f32 %v6473_v32, %v1522_v22  ;;  %v2033_v26 = vmax.f32 %v1531_v27, 0.0  ;;  %v1408_v27 = vpack.c.bf16 %v1336_v6, %v1335_v25 }
 0x1ba   : > { %v5183_v48 = vpop.f32.mrf.mxu1  ;;  %5278 = vmatmul.mubr.bf16.gmra.mxu1 %v1404_v16  ;;  %v6504_v16 = vld [vmem:[%s8732_s4] ss:$0 sm:$0xff] }
 0x1bb   : > { %v2031_v8 = vmax.f32 %v1523_v47, 0.0  ;;  %5281 = vmatprep.mubr.bf16.mxu1 %v1405_v40  ;;  %v2159_v2 = vpack.c.bf16 %v2033_v26, %v2032_v42  ;;  %v1544_v49 = vadd.f32 %v5183_v48, %v6473_v32  ;;  %v1171_v33 = vadd.f32 %v6504_v16, %v6374_v57 }
 0x1bc   : > { %v1535_v58 = vpop.f32.mrf.mxu1  ;;  %v1174_v35 = vadd.f32 %v6504_v16, %v6386_v4  ;;  %v1179_v15 = vadd.f32 %v6504_v16, %v6404_v44  ;;  %v1182_v39 = vadd.f32 %v6504_v16, %v6416_v3  ;;  %v1409_v40 = vpack.c.bf16 %v1338_v59, %v1337_v45 }
 0x1bd   : > { %v2158_v63 = vpack.c.bf16 %v2031_v8, %v2030_v56  ;;  %v1536_v29 = vadd.f32 %v6473_v32, %v1535_v58  ;;  %v2036_v9 = vmax.f32 %v1544_v49, 0.0  ;;  %v1339_v4 = vmax.f32 %v1171_v33, 0.0 }
 0x1be   : > { %v5184_v41 = vpop.f32.mrf.mxu1  ;;  %v1340_v8 = vmax.f32 %v1174_v35, 0.0  ;;  %v1341_v42 = vmax.f32 %v1179_v15, 0.0  ;;  %v1342_v58 = vmax.f32 %v1182_v39, 0.0  ;;  %v1195_v50 = vadd.f32 %v6504_v16, %v6428_v30 }
 0x1bf   : > { %v1547_v38 = vadd.f32 %v5184_v41, %v6473_v32  ;;  %5321 = vmatprep.mubr.bf16.mxu0 %v2158_v63  ;;  %v2034_v43 = vmax.f32 %v1536_v29, 0.0  ;;  %v1187_v41 = vadd.f32 %v6504_v16, %v6398_v55  ;;  %v1190_v29 = vadd.f32 %v6504_v16, %v6410_v51 }
 0x1c0   : > { %v1538_v54 = vpop.f32.mrf.mxu1  ;;  %5322 = vmatmul.mubr.bf16.vlgmr.msra.gmra.mxu0 %v2159_v2  ;;  %v1410_v2 = vpack.c.bf16 %v1340_v8, %v1339_v4  ;;  %v1198_v0 = vadd.f32 %v6504_v16, %v6440_v7  ;;  %v1203_v45 = vadd.f32 %v6504_v16, %v6422_v60  ;;  %v1206_v59 = vadd.f32 %v6504_v16, %v6434_v46 }
 0x1c1   : > { %v1539_v13 = vadd.f32 %v6473_v32, %v1538_v54  ;;  %v2037_v18 = vmax.f32 %v1547_v38, 0.0  ;;  %v1411_v54 = vpack.c.bf16 %v1342_v58, %v1341_v42  ;;  %v1343_v51 = vmax.f32 %v1187_v41, 0.0 }
 0x1c2   : > { %v5187_v19 = vpop.f32.mrf.mxu1  ;;  %5282 = vmatmul.mubr.bf16.gmra.mxu1 %v1406_v10  ;;  %v1347_v46 = vmax.f32 %v1203_v45, 0.0  ;;  %v1219_v4 = vadd.f32 %v6504_v16, %v6446_v61  ;;  %v1222_v8 = vadd.f32 %v6504_v16, %v6458_v14 }
 0x1c3   : > { %v2035_v62 = vmax.f32 %v1539_v13, 0.0  ;;  %5285 = vmatprep.mubr.bf16.mxu1 %v1407_v52  ;;  %v2161_v1 = vpack.c.bf16 %v2037_v18, %v2036_v9  ;;  %v1560_v36 = vadd.f32 %v5187_v19, %v6473_v32  ;;  %v1344_v52 = vmax.f32 %v1190_v29, 0.0 }
 0x1c4   : > { %v1551_v23 = vpop.f32.mrf.mxu1 }
 0x1c5   : > { %v2160_v31 = vpack.c.bf16 %v2035_v62, %v2034_v43  ;;  %v1552_v17 = vadd.f32 %v6473_v32, %v1551_v23  ;;  %v2040_v28 = vmax.f32 %v1560_v36, 0.0  ;;  %v1345_v43 = vmax.f32 %v1195_v50, 0.0 }
 0x1c6   : > { %v5188_v34 = vpop.f32.mrf.mxu1  ;;  %v1346_v62 = vmax.f32 %v1198_v0, 0.0  ;;  %v1412_v23 = vpack.c.bf16 %v1344_v52, %v1343_v51 }
 0x1c7   : > { %v1563_v20 = vadd.f32 %v5188_v34, %v6473_v32  ;;  %5325 = vmatprep.mubr.bf16.mxu0 %v2160_v31  ;;  %v2038_v57 = vmax.f32 %v1552_v17, 0.0  ;;  %v1211_v34 = vadd.f32 %v6504_v16, %v6452_v5  ;;  %v1214_v17 = vadd.f32 %v6504_v16, %v6464_v12 }
 0x1c8   : > { %v1554_v22 = vpop.f32.mrf.mxu1  ;;  %5326 = vmatmul.mubr.bf16.gmra.mxu0 %v2161_v1 }
 0x1c9   : > { %v1555_v47 = vadd.f32 %v6473_v32, %v1554_v22  ;;  %v2041_v26 = vmax.f32 %v1563_v20, 0.0  ;;  %v1348_v22 = vmax.f32 %v1206_v59, 0.0 }
 0x1ca   : > { %v5191_v48 = vpop.f32.mrf.mxu1  ;;  %5286 = vmatmul.mubr.bf16.gmra.mxu1 %v1408_v27  ;;  %v1413_v27 = vpack.c.bf16 %v1346_v62, %v1345_v43 }
 0x1cb   : > { %v2039_v56 = vmax.f32 %v1555_v47, 0.0  ;;  %5289 = vmatprep.mubr.bf16.mxu1 %v1409_v40  ;;  %v2163_v44 = vpack.c.bf16 %v2041_v26, %v2040_v28  ;;  %v1576_v38 = vadd.f32 %v5191_v48, %v6473_v32  ;;  %v1349_v47 = vmax.f32 %v1211_v34, 0.0 }
 0x1cc   : > { %v1567_v53 = vpop.f32.mrf.mxu1  ;;  %v1350_v40 = vmax.f32 %v1214_v17, 0.0 }
 0x1cd   : > { %v2162_v37 = vpack.c.bf16 %v2039_v56, %v2038_v57  ;;  %v1568_v3 = vadd.f32 %v6473_v32, %v1567_v53  ;;  %v2044_v18 = vmax.f32 %v1576_v38, 0.0  ;;  %v1414_v56 = vpack.c.bf16 %v1348_v22, %v1347_v46 }
 0x1ce   : > { %v5192_v24 = vpop.f32.mrf.mxu1  ;;  %v1415_v58 = vpack.c.bf16 %v1350_v40, %v1349_v47 }
 0x1cf   : > { %v1579_v63 = vadd.f32 %v5192_v24, %v6473_v32  ;;  %5329 = vmatprep.mubr.bf16.mxu0 %v2162_v37  ;;  %v2042_v55 = vmax.f32 %v1568_v3, 0.0 }
 0x1d0   : > { %v1570_v10 = vpop.f32.mrf.mxu1  ;;  %5330 = vmatmul.mubr.bf16.gmra.mxu0 %v2163_v44 }
 0x1d1   : > { %v1571_v49 = vadd.f32 %v6473_v32, %v1570_v10  ;;  %v2045_v11 = vmax.f32 %v1579_v63, 0.0  ;;  %v1351_v63 = vmax.f32 %v1219_v4, 0.0 }
 0x1d2   : > { %v5195_v21 = vpop.f32.mrf.mxu1  ;;  %5290 = vmatmul.mubr.bf16.gmra.mxu1 %v1410_v2  ;;  %v1352_v2 = vmax.f32 %v1222_v8, 0.0 }
 0x1d3   : > { %v2043_v13 = vmax.f32 %v1571_v49, 0.0  ;;  %5293 = vmatprep.mubr.bf16.mxu1 %v1411_v54  ;;  %v2165_v30 = vpack.c.bf16 %v2045_v11, %v2044_v18  ;;  %v1592_v31 = vadd.f32 %v5195_v21, %v6473_v32 }
 0x1d4   : > { %v1583_v19 = vpop.f32.mrf.mxu1  ;;  %v1416_v50 = vpack.c.bf16 %v1352_v2, %v1351_v63 }
 0x1d5   : > { %v2164_v25 = vpack.c.bf16 %v2043_v13, %v2042_v55  ;;  %v1584_v7 = vadd.f32 %v6473_v32, %v1583_v19  ;;  %v2048_v15 = vmax.f32 %v1592_v31, 0.0 }
 0x1d6   : > { %v5196_v6 = vpop.f32.mrf.mxu1 }
 0x1d7   : > { %v1595_v9 = vadd.f32 %v5196_v6, %v6473_v32  ;;  %5333 = vmatprep.mubr.bf16.mxu0 %v2164_v25  ;;  %v2046_v60 = vmax.f32 %v1584_v7, 0.0 }
 0x1d8   : > { %v1586_v1 = vpop.f32.mrf.mxu1  ;;  %5334 = vmatmul.mubr.bf16.gmra.mxu0 %v2165_v30 }
 0x1d9   : > { %v1587_v20 = vadd.f32 %v6473_v32, %v1586_v1  ;;  %v2049_v33 = vmax.f32 %v1595_v9, 0.0 }
 0x1da   : > { %v5199_v35 = vpop.f32.mrf.mxu1  ;;  %5294 = vmatmul.mubr.bf16.gmra.mxu1 %v1412_v23 }
 0x1db   : > { %v2047_v36 = vmax.f32 %v1587_v20, 0.0  ;;  %5297 = vmatprep.mubr.bf16.mxu1 %v1413_v27  ;;  %v2167_v5 = vpack.c.bf16 %v2049_v33, %v2048_v15  ;;  %v1608_v28 = vadd.f32 %v5199_v35, %v6473_v32 }
 0x1dc   : > { %v1599_v39 = vpop.f32.mrf.mxu1 }
 0x1dd   : > { %v2166_v26 = vpack.c.bf16 %v2047_v36, %v2046_v60  ;;  %v1600_v12 = vadd.f32 %v6473_v32, %v1599_v39  ;;  %v2052_v41 = vmax.f32 %v1608_v28, 0.0 }
 0x1de   : > { %v5200_v48 = vpop.f32.mrf.mxu1 }
 0x1df   : > { %v1611_v57 = vadd.f32 %v5200_v48, %v6473_v32  ;;  %5337 = vmatprep.mubr.bf16.mxu0 %v2166_v26  ;;  %v2050_v24 = vmax.f32 %v1600_v12, 0.0 }
 0x1e0   : > { %v1602_v53 = vpop.f32.mrf.mxu1  ;;  %5338 = vmatmul.mubr.bf16.gmra.mxu0 %v2167_v5 }
 0x1e1   : > { %v1603_v42 = vadd.f32 %v6473_v32, %v1602_v53  ;;  %v2053_v37 = vmax.f32 %v1611_v57, 0.0 }
 0x1e2   : > { %v5203_v44 = vpop.f32.mrf.mxu1  ;;  %5298 = vmatmul.mubr.bf16.gmra.mxu1 %v1414_v56 }
 0x1e3   : > { %v2051_v3 = vmax.f32 %v1603_v42, 0.0  ;;  %5301 = vmatprep.mubr.bf16.mxu1 %v1415_v58  ;;  %v2169_v38 = vpack.c.bf16 %v2053_v37, %v2052_v41  ;;  %v1624_v0 = vadd.f32 %v5203_v44, %v6473_v32 }
 0x1e4   : > { %v1615_v61 = vpop.f32.mrf.mxu1 }
 0x1e5   : > { %v2168_v29 = vpack.c.bf16 %v2051_v3, %v2050_v24  ;;  %v1616_v16 = vadd.f32 %v6473_v32, %v1615_v61  ;;  %v2056_v51 = vmax.f32 %v1624_v0, 0.0 }
 0x1e6   : > { %v5204_v14 = vpop.f32.mrf.mxu1 }
 0x1e7   : > { %v1627_v10 = vadd.f32 %v5204_v14, %v6473_v32  ;;  %5341 = vmatprep.mubr.bf16.mxu0 %v2168_v29  ;;  %v2054_v55 = vmax.f32 %v1616_v16, 0.0 }
 0x1e8   : > { %v1618_v49 = vpop.f32.mrf.mxu1  ;;  %5342 = vmatmul.mubr.bf16.gmra.mxu0 %v2169_v38 }
 0x1e9   : > { %v1619_v54 = vadd.f32 %v6473_v32, %v1618_v49  ;;  %v2057_v11 = vmax.f32 %v1627_v10, 0.0 }
 0x1ea   : > { %v5207_v21 = vpop.f32.mrf.mxu1  ;;  %5302 = vmatmul.mubr.bf16.gmra.mxu1 %v1416_v50 }
 0x1eb   : > { %v2055_v13 = vmax.f32 %v1619_v54, 0.0  ;;  %v2171_v19 = vpack.c.bf16 %v2057_v11, %v2056_v51  ;;  %v1640_v30 = vadd.f32 %v5207_v21, %v6473_v32 }
 0x1ec   : > { %v1631_v52 = vpop.f32.mrf.mxu1 }
 0x1ed   : > { %v2170_v18 = vpack.c.bf16 %v2055_v13, %v2054_v55  ;;  %v1632_v62 = vadd.f32 %v6473_v32, %v1631_v52  ;;  %v2060_v31 = vmax.f32 %v1640_v30, 0.0 }
 0x1ee   : > { %v5208_v43 = vpop.f32.mrf.mxu1 }
 0x1ef   : > { %v1643_v25 = vadd.f32 %v5208_v43, %v6473_v32  ;;  %5345 = vmatprep.mubr.bf16.mxu0 %v2170_v18  ;;  %v2058_v45 = vmax.f32 %v1632_v62, 0.0 }
 0x1f0   : > { %v1634_v6 = vpop.f32.mrf.mxu1  ;;  %5346 = vmatmul.mubr.bf16.gmra.mxu0 %v2171_v19 }
 0x1f1   : > { %v1635_v7 = vadd.f32 %v6473_v32, %v1634_v6  ;;  %v2061_v9 = vmax.f32 %v1643_v25, 0.0 }
 0x1f2   : > { %v5211_v23 = vpop.f32.mrf.mxu1 }
 0x1f3   : > { %v2059_v59 = vmax.f32 %v1635_v7, 0.0  ;;  %v2173_v17 = vpack.c.bf16 %v2061_v9, %v2060_v31  ;;  %v1656_v35 = vadd.f32 %v5211_v23, %v6473_v32 }
 0x1f4   : > { %v1647_v1 = vpop.f32.mrf.mxu1 }
 0x1f5   : > { %v2172_v34 = vpack.c.bf16 %v2059_v59, %v2058_v45  ;;  %v1648_v27 = vadd.f32 %v6473_v32, %v1647_v1  ;;  %v2064_v47 = vmax.f32 %v1656_v35, 0.0 }
 0x1f6   : > { %v5212_v20 = vpop.f32.mrf.mxu1 }
 0x1f7   : > { %v1659_v33 = vadd.f32 %v5212_v20, %v6473_v32  ;;  %5349 = vmatprep.mubr.bf16.mxu0 %v2172_v34  ;;  %v2062_v15 = vmax.f32 %v1648_v27, 0.0 }
 0x1f8   : > { %v1650_v60 = vpop.f32.mrf.mxu1  ;;  %5350 = vmatmul.mubr.bf16.gmra.mxu0 %v2173_v17 }
 0x1f9   : > { %v1651_v36 = vadd.f32 %v6473_v32, %v1650_v60  ;;  %v2065_v46 = vmax.f32 %v1659_v33, 0.0 }
 0x1fa   : > { %v5215_v22 = vpop.f32.mrf.mxu1 }
 0x1fb   : > { %v2063_v39 = vmax.f32 %v1651_v36, 0.0  ;;  %v2175_v5 = vpack.c.bf16 %v2065_v46, %v2064_v47  ;;  %v1672_v56 = vadd.f32 %v5215_v22, %v6473_v32 }
 0x1fc   : > { %v1663_v40 = vpop.f32.mrf.mxu1 }
 0x1fd   : > { %v2174_v26 = vpack.c.bf16 %v2063_v39, %v2062_v15  ;;  %v1664_v12 = vadd.f32 %v6473_v32, %v1663_v40  ;;  %v2068_v37 = vmax.f32 %v1672_v56, 0.0 }
 0x1fe   : > { %v5216_v48 = vpop.f32.mrf.mxu1 }
 0x1ff   : > { %v1675_v57 = vadd.f32 %v5216_v48, %v6473_v32  ;;  %5353 = vmatprep.mubr.bf16.mxu0 %v2174_v26  ;;  %v2066_v42 = vmax.f32 %v1664_v12, 0.0 }
 0x200   : > { %v1666_v4 = vpop.f32.mrf.mxu1  ;;  %5354 = vmatmul.mubr.bf16.gmra.mxu0 %v2175_v5 }
 0x201   : > { %v1667_v8 = vadd.f32 %v6473_v32, %v1666_v4  ;;  %v2069_v28 = vmax.f32 %v1675_v57, 0.0 }
 0x202   : > { %v5219_v53 = vpop.f32.mrf.mxu1 }
 0x203   : > { %v2067_v58 = vmax.f32 %v1667_v8, 0.0  ;;  %v2177_v3 = vpack.c.bf16 %v2069_v28, %v2068_v37  ;;  %v1688_v61 = vadd.f32 %v5219_v53, %v6473_v32 }
 0x204   : > { %v1679_v44 = vpop.f32.mrf.mxu1 }
 0x205   : > { %v2176_v24 = vpack.c.bf16 %v2067_v58, %v2066_v42  ;;  %v1680_v2 = vadd.f32 %v6473_v32, %v1679_v44  ;;  %v2072_v0 = vmax.f32 %v1688_v61, 0.0 }
 0x206   : > { %v5220_v63 = vpop.f32.mrf.mxu1 }
 0x207   : > { %v1691_v41 = vadd.f32 %v5220_v63, %v6473_v32  ;;  %5357 = vmatprep.mubr.bf16.mxu0 %v2176_v24  ;;  %v2070_v10 = vmax.f32 %v1680_v2, 0.0 }
 0x208   : > { %v1682_v29 = vpop.f32.mrf.mxu1  ;;  %5358 = vmatmul.mubr.bf16.gmra.mxu0 %v2177_v3 }
 0x209   : > { %v1683_v38 = vadd.f32 %v6473_v32, %v1682_v29  ;;  %v2073_v14 = vmax.f32 %v1691_v41, 0.0 }
 0x20a   : > { %v5223_v16 = vpop.f32.mrf.mxu1 }
 0x20b   : > { %v2071_v50 = vmax.f32 %v1683_v38, 0.0  ;;  %v2179_v11 = vpack.c.bf16 %v2073_v14, %v2072_v0  ;;  %v1704_v51 = vadd.f32 %v5223_v16, %v6473_v32 }
 0x20c   : > { %v1695_v49 = vpop.f32.mrf.mxu1 }
 0x20d   : > { %v2178_v54 = vpack.c.bf16 %v2071_v50, %v2070_v10  ;;  %v1696_v55 = vadd.f32 %v6473_v32, %v1695_v49  ;;  %v2076_v30 = vmax.f32 %v1704_v51, 0.0 }
 0x20e   : > { %v5224_v21 = vpop.f32.mrf.mxu1 }
 0x20f   : > { %v1707_v13 = vadd.f32 %v5224_v21, %v6473_v32  ;;  %5361 = vmatprep.mubr.bf16.mxu0 %v2178_v54  ;;  %v2074_v62 = vmax.f32 %v1696_v55, 0.0 }
 0x210   : > { %v1698_v52 = vpop.f32.mrf.mxu1  ;;  %5362 = vmatmul.mubr.bf16.gmra.mxu0 %v2179_v11 }
 0x211   : > { %v1699_v18 = vadd.f32 %v6473_v32, %v1698_v52  ;;  %v2077_v19 = vmax.f32 %v1707_v13, 0.0 }
 0x212   : > { %v5227_v43 = vpop.f32.mrf.mxu1 }
 0x213   : > { %v2075_v25 = vmax.f32 %v1699_v18, 0.0  ;;  %v2181_v9 = vpack.c.bf16 %v2077_v19, %v2076_v30  ;;  %v1720_v31 = vadd.f32 %v5227_v43, %v6473_v32 }
 0x214   : > { %v1711_v6 = vpop.f32.mrf.mxu1 }
 0x215   : > { %v2180_v7 = vpack.c.bf16 %v2075_v25, %v2074_v62  ;;  %v1712_v45 = vadd.f32 %v6473_v32, %v1711_v6  ;;  %v2080_v35 = vmax.f32 %v1720_v31, 0.0 }
 0x216   : > { %v5228_v23 = vpop.f32.mrf.mxu1 }
 0x217   : > { %v1723_v59 = vadd.f32 %v5228_v23, %v6473_v32  ;;  %5365 = vmatprep.mubr.bf16.mxu0 %v2180_v7  ;;  %v2078_v27 = vmax.f32 %v1712_v45, 0.0 }
 0x218   : > { %v1714_v1 = vpop.f32.mrf.mxu1  ;;  %5366 = vmatmul.mubr.bf16.gmra.mxu0 %v2181_v9 }
 0x219   : > { %v1715_v34 = vadd.f32 %v6473_v32, %v1714_v1  ;;  %v2081_v17 = vmax.f32 %v1723_v59, 0.0 }
 0x21a   : > { %v5231_v20 = vpop.f32.mrf.mxu1 }
 0x21b   : > { %v2079_v33 = vmax.f32 %v1715_v34, 0.0  ;;  %v2183_v46 = vpack.c.bf16 %v2081_v17, %v2080_v35  ;;  %v1736_v47 = vadd.f32 %v5231_v20, %v6473_v32 }
 0x21c   : > { %v1727_v60 = vpop.f32.mrf.mxu1 }
 0x21d   : > { %v2182_v36 = vpack.c.bf16 %v2079_v33, %v2078_v27  ;;  %v1728_v15 = vadd.f32 %v6473_v32, %v1727_v60  ;;  %v2084_v56 = vmax.f32 %v1736_v47, 0.0 }
 0x21e   : > { %v5232_v22 = vpop.f32.mrf.mxu1 }
 0x21f   : > { %v1739_v39 = vadd.f32 %v5232_v22, %v6473_v32  ;;  %5369 = vmatprep.mubr.bf16.mxu0 %v2182_v36  ;;  %v2082_v12 = vmax.f32 %v1728_v15, 0.0 }
 0x220   : > { %v1730_v40 = vpop.f32.mrf.mxu1  ;;  %5370 = vmatmul.mubr.bf16.gmra.mxu0 %v2183_v46 }
 0x221   : > { %v1731_v26 = vadd.f32 %v6473_v32, %v1730_v40  ;;  %v2085_v5 = vmax.f32 %v1739_v39, 0.0 }
 0x222   : > { %v5235_v48 = vpop.f32.mrf.mxu1 }
 0x223   : > { %v2083_v57 = vmax.f32 %v1731_v26, 0.0  ;;  %v2185_v28 = vpack.c.bf16 %v2085_v5, %v2084_v56  ;;  %v1752_v37 = vadd.f32 %v5235_v48, %v6473_v32 }
 0x224   : > { %v1743_v4 = vpop.f32.mrf.mxu1 }
 0x225   : > { %v2184_v8 = vpack.c.bf16 %v2083_v57, %v2082_v12  ;;  %v1744_v42 = vadd.f32 %v6473_v32, %v1743_v4  ;;  %v2088_v61 = vmax.f32 %v1752_v37, 0.0 }
 0x226   : > { %v5236_v53 = vpop.f32.mrf.mxu1 }
 0x227   : > { %v1755_v58 = vadd.f32 %v5236_v53, %v6473_v32  ;;  %5373 = vmatprep.mubr.bf16.mxu0 %v2184_v8  ;;  %v2086_v2 = vmax.f32 %v1744_v42, 0.0 }
 0x228   : > { %v1746_v44 = vpop.f32.mrf.mxu1  ;;  %5374 = vmatmul.mubr.bf16.gmra.mxu0 %v2185_v28 }
 0x229   : > { %v1747_v24 = vadd.f32 %v6473_v32, %v1746_v44  ;;  %v2089_v3 = vmax.f32 %v1755_v58, 0.0 }
 0x22a   : > { %v5239_v63 = vpop.f32.mrf.mxu1 }
 0x22b   : > { %v2087_v41 = vmax.f32 %v1747_v24, 0.0  ;;  %v2187_v14 = vpack.c.bf16 %v2089_v3, %v2088_v61  ;;  %v1768_v0 = vadd.f32 %v5239_v63, %v6473_v32 }
 0x22c   : > { %v1759_v29 = vpop.f32.mrf.mxu1 }
 0x22d   : > { %v2186_v38 = vpack.c.bf16 %v2087_v41, %v2086_v2  ;;  %v1760_v10 = vadd.f32 %v6473_v32, %v1759_v29  ;;  %v2092_v51 = vmax.f32 %v1768_v0, 0.0 }
 0x22e   : > { %v5240_v16 = vpop.f32.mrf.mxu1 }
 0x22f   : > { %v1771_v50 = vadd.f32 %v5240_v16, %v6473_v32  ;;  %5377 = vmatprep.mubr.bf16.mxu0 %v2186_v38  ;;  %v2090_v55 = vmax.f32 %v1760_v10, 0.0 }
 0x230   : > { %v1762_v49 = vpop.f32.mrf.mxu1  ;;  %5378 = vmatmul.mubr.bf16.gmra.mxu0 %v2187_v14 }
 0x231   : > { %v1763_v54 = vadd.f32 %v6473_v32, %v1762_v49  ;;  %v2093_v11 = vmax.f32 %v1771_v50, 0.0 }
 0x232   : > { %v5243_v21 = vpop.f32.mrf.mxu1 }
 0x233   : > { %v2091_v13 = vmax.f32 %v1763_v54, 0.0  ;;  %v2189_v19 = vpack.c.bf16 %v2093_v11, %v2092_v51  ;;  %v1784_v30 = vadd.f32 %v5243_v21, %v6473_v32 }
 0x234   : > { %v1775_v52 = vpop.f32.mrf.mxu1 }
 0x235   : > { %v2188_v18 = vpack.c.bf16 %v2091_v13, %v2090_v55  ;;  %v1776_v62 = vadd.f32 %v6473_v32, %v1775_v52  ;;  %v2096_v31 = vmax.f32 %v1784_v30, 0.0 }
 0x236   : > { %v5244_v43 = vpop.f32.mrf.mxu1 }
 0x237   : > { %v1787_v25 = vadd.f32 %v5244_v43, %v6473_v32  ;;  %5381 = vmatprep.mubr.bf16.mxu0 %v2188_v18  ;;  %v2094_v45 = vmax.f32 %v1776_v62, 0.0 }
 0x238   : > { %v1778_v6 = vpop.f32.mrf.mxu1  ;;  %5382 = vmatmul.mubr.bf16.gmra.mxu0 %v2189_v19 }
 0x239   : > { %v1779_v7 = vadd.f32 %v6473_v32, %v1778_v6  ;;  %v2097_v9 = vmax.f32 %v1787_v25, 0.0 }
 0x23a   : > { %v5247_v23 = vpop.f32.mrf.mxu1 }
 0x23b   : > { %v2095_v59 = vmax.f32 %v1779_v7, 0.0  ;;  %v2191_v17 = vpack.c.bf16 %v2097_v9, %v2096_v31  ;;  %v1800_v35 = vadd.f32 %v5247_v23, %v6473_v32 }
 0x23c   : > { %v1791_v1 = vpop.f32.mrf.mxu1 }
 0x23d   : > { %v2190_v34 = vpack.c.bf16 %v2095_v59, %v2094_v45  ;;  %v1792_v27 = vadd.f32 %v6473_v32, %v1791_v1  ;;  %v2100_v47 = vmax.f32 %v1800_v35, 0.0 }
 0x23e   : > { %v5248_v20 = vpop.f32.mrf.mxu1 }
 0x23f   : > { %v1803_v33 = vadd.f32 %v5248_v20, %v6473_v32  ;;  %5385 = vmatprep.mubr.bf16.mxu0 %v2190_v34  ;;  %v2098_v15 = vmax.f32 %v1792_v27, 0.0 }
 0x240   : > { %v1794_v60 = vpop.f32.mrf.mxu1  ;;  %5386 = vmatmul.mubr.bf16.gmra.mxu0 %v2191_v17 }
 0x241   : > { %v1795_v36 = vadd.f32 %v6473_v32, %v1794_v60  ;;  %v2101_v46 = vmax.f32 %v1803_v33, 0.0 }
 0x242   : > { %v5251_v22 = vpop.f32.mrf.mxu1 }
 0x243   : > { %v2099_v39 = vmax.f32 %v1795_v36, 0.0  ;;  %v2193_v5 = vpack.c.bf16 %v2101_v46, %v2100_v47  ;;  %v1816_v56 = vadd.f32 %v5251_v22, %v6473_v32 }
 0x244   : > { %v1807_v40 = vpop.f32.mrf.mxu1 }
 0x245   : > { %v2192_v26 = vpack.c.bf16 %v2099_v39, %v2098_v15  ;;  %v1808_v12 = vadd.f32 %v6473_v32, %v1807_v40  ;;  %v2104_v37 = vmax.f32 %v1816_v56, 0.0 }
 0x246   : > { %v5252_v48 = vpop.f32.mrf.mxu1 }
 0x247   : > { %v1819_v57 = vadd.f32 %v5252_v48, %v6473_v32  ;;  %5389 = vmatprep.mubr.bf16.mxu0 %v2192_v26  ;;  %v2102_v42 = vmax.f32 %v1808_v12, 0.0 }
 0x248   : > { %v1810_v4 = vpop.f32.mrf.mxu1  ;;  %5390 = vmatmul.mubr.bf16.gmra.mxu0 %v2193_v5 }
 0x249   : > { %v1811_v8 = vadd.f32 %v6473_v32, %v1810_v4  ;;  %v2105_v28 = vmax.f32 %v1819_v57, 0.0 }
 0x24a   : > { %v5255_v53 = vpop.f32.mrf.mxu1 }
 0x24b   : > { %v2103_v58 = vmax.f32 %v1811_v8, 0.0  ;;  %v2195_v3 = vpack.c.bf16 %v2105_v28, %v2104_v37  ;;  %v1832_v61 = vadd.f32 %v5255_v53, %v6473_v32 }
 0x24c   : > { %v1823_v44 = vpop.f32.mrf.mxu1 }
 0x24d   : > { %v2194_v24 = vpack.c.bf16 %v2103_v58, %v2102_v42  ;;  %v1824_v2 = vadd.f32 %v6473_v32, %v1823_v44  ;;  %v2108_v0 = vmax.f32 %v1832_v61, 0.0 }
 0x24e   : > { %v5256_v63 = vpop.f32.mrf.mxu1 }
 0x24f   : > { %v1835_v41 = vadd.f32 %v5256_v63, %v6473_v32  ;;  %5393 = vmatprep.mubr.bf16.mxu0 %v2194_v24  ;;  %v2106_v10 = vmax.f32 %v1824_v2, 0.0 }
 0x250   : > { %v1826_v29 = vpop.f32.mrf.mxu1  ;;  %5394 = vmatmul.mubr.bf16.gmra.mxu0 %v2195_v3 }
 0x251   : > { %v1827_v38 = vadd.f32 %v6473_v32, %v1826_v29  ;;  %v2109_v14 = vmax.f32 %v1835_v41, 0.0 }
 0x252   : > { %v5259_v16 = vpop.f32.mrf.mxu1 }
 0x253   : > { %v2107_v50 = vmax.f32 %v1827_v38, 0.0  ;;  %v2197_v11 = vpack.c.bf16 %v2109_v14, %v2108_v0  ;;  %v1848_v51 = vadd.f32 %v5259_v16, %v6473_v32 }
 0x254   : > { %v1839_v49 = vpop.f32.mrf.mxu1 }
 0x255   : > { %v2196_v54 = vpack.c.bf16 %v2107_v50, %v2106_v10  ;;  %v1840_v55 = vadd.f32 %v6473_v32, %v1839_v49  ;;  %v2112_v30 = vmax.f32 %v1848_v51, 0.0 }
 0x256   : > { %v5260_v21 = vpop.f32.mrf.mxu1 }
 0x257   : > { %v1851_v13 = vadd.f32 %v5260_v21, %v6473_v32  ;;  %5397 = vmatprep.mubr.bf16.mxu0 %v2196_v54  ;;  %v2110_v62 = vmax.f32 %v1840_v55, 0.0 }
 0x258   : > { %v1842_v52 = vpop.f32.mrf.mxu1  ;;  %5398 = vmatmul.mubr.bf16.gmra.mxu0 %v2197_v11 }
 0x259   : > { %v1843_v18 = vadd.f32 %v6473_v32, %v1842_v52  ;;  %v2113_v19 = vmax.f32 %v1851_v13, 0.0 }
 0x25a   : > { %v5263_v43 = vpop.f32.mrf.mxu1 }
 0x25b   : > { %v2111_v25 = vmax.f32 %v1843_v18, 0.0  ;;  %v2199_v9 = vpack.c.bf16 %v2113_v19, %v2112_v30  ;;  %v1864_v31 = vadd.f32 %v5263_v43, %v6473_v32 }
 0x25c   : > { %v1855_v6 = vpop.f32.mrf.mxu1 }
 0x25d   : > { %v2198_v7 = vpack.c.bf16 %v2111_v25, %v2110_v62  ;;  %v1856_v45 = vadd.f32 %v6473_v32, %v1855_v6  ;;  %v2116_v35 = vmax.f32 %v1864_v31, 0.0  ;;  %v6627_v62 = vld [vmem:[%s8733_s5] ss:$0 sm:$0xff] }
 0x25e   : > { %v5264_v23 = vpop.f32.mrf.mxu1 }
 0x25f   : > { %v1867_v59 = vadd.f32 %v5264_v23, %v6473_v32  ;;  %5401 = vmatprep.mubr.bf16.mxu0 %v2198_v7  ;;  %v2114_v27 = vmax.f32 %v1856_v45, 0.0 }
 0x260   : > { %v1858_v1 = vpop.f32.mrf.mxu1  ;;  %5402 = vmatmul.mubr.bf16.gmra.mxu0 %v2199_v9 }
 0x261   : > { %v1859_v34 = vadd.f32 %v6473_v32, %v1858_v1  ;;  %v2117_v17 = vmax.f32 %v1867_v59, 0.0 }
 0x262   : > { %v5267_v20 = vpop.f32.mrf.mxu1 }
 0x263   : > { %v2115_v33 = vmax.f32 %v1859_v34, 0.0  ;;  %v2201_v46 = vpack.c.bf16 %v2117_v17, %v2116_v35  ;;  %v1880_v47 = vadd.f32 %v5267_v20, %v6473_v32 }
 0x264   : > { %v1871_v60 = vpop.f32.mrf.mxu1 }
 0x265   : > { %v2200_v36 = vpack.c.bf16 %v2115_v33, %v2114_v27  ;;  %v1872_v15 = vadd.f32 %v6473_v32, %v1871_v60  ;;  %v2120_v56 = vmax.f32 %v1880_v47, 0.0 }
 0x266   : > { %v5268_v22 = vpop.f32.mrf.mxu1 }
 0x267   : > { %v1883_v39 = vadd.f32 %v5268_v22, %v6473_v32  ;;  %5405 = vmatprep.mubr.bf16.mxu0 %v2200_v36  ;;  %v2118_v12 = vmax.f32 %v1872_v15, 0.0 }
 0x268   : > { %v1874_v40 = vpop.f32.mrf.mxu1  ;;  %5406 = vmatmul.mubr.bf16.gmra.mxu0 %v2201_v46 }
 0x269   : > { %v1875_v26 = vadd.f32 %v6473_v32, %v1874_v40  ;;  %v2121_v5 = vmax.f32 %v1883_v39, 0.0 }
 0x26a   : > { %v5271_v48 = vpop.f32.mrf.mxu1 }
 0x26b   : > { %v2119_v57 = vmax.f32 %v1875_v26, 0.0  ;;  %v2203_v28 = vpack.c.bf16 %v2121_v5, %v2120_v56  ;;  %v1896_v37 = vadd.f32 %v5271_v48, %v6473_v32 }
 0x26c   : > { %v1887_v4 = vpop.f32.mrf.mxu1 }
 0x26d   : > { %v2202_v8 = vpack.c.bf16 %v2119_v57, %v2118_v12  ;;  %v1888_v42 = vadd.f32 %v6473_v32, %v1887_v4  ;;  %v2124_v61 = vmax.f32 %v1896_v37, 0.0 }
 0x26e   : > { %v5272_v53 = vpop.f32.mrf.mxu1 }
 0x26f   : > { %v1899_v58 = vadd.f32 %v5272_v53, %v6473_v32  ;;  %5409 = vmatprep.mubr.bf16.mxu0 %v2202_v8  ;;  %v2122_v2 = vmax.f32 %v1888_v42, 0.0 }
 0x270   : > { %v1890_v44 = vpop.f32.mrf.mxu1  ;;  %5410 = vmatmul.mubr.bf16.gmra.mxu0 %v2203_v28 }
 0x271   : > { %v1891_v24 = vadd.f32 %v6473_v32, %v1890_v44  ;;  %v2125_v3 = vmax.f32 %v1899_v58, 0.0 }
 0x272   : > { %v5275_v63 = vpop.f32.mrf.mxu1 }
 0x273   : > { %v2123_v41 = vmax.f32 %v1891_v24, 0.0  ;;  %v2205_v14 = vpack.c.bf16 %v2125_v3, %v2124_v61  ;;  %v1912_v0 = vadd.f32 %v5275_v63, %v6473_v32 }
 0x274   : > { %v1903_v29 = vpop.f32.mrf.mxu1 }
 0x275   : > { %v2204_v38 = vpack.c.bf16 %v2123_v41, %v2122_v2  ;;  %v1904_v10 = vadd.f32 %v6473_v32, %v1903_v29  ;;  %v2128_v51 = vmax.f32 %v1912_v0, 0.0  ;;  %v6666_v41 = vld [vmem:[%s8732_s4 + $0x1] ss:$0 sm:$0xff] }
 0x276   : > { %v5276_v16 = vpop.f32.mrf.mxu1 }
 0x277   : > { %v1915_v50 = vadd.f32 %v5276_v16, %v6473_v32  ;;  %5413 = vmatprep.mubr.bf16.mxu0 %v2204_v38  ;;  %v2126_v55 = vmax.f32 %v1904_v10, 0.0 }
 0x278   : > { %v1906_v49 = vpop.f32.mrf.mxu1  ;;  %5414 = vmatmul.mubr.bf16.gmra.mxu0 %v2205_v14 }
 0x279   : > { %v1907_v54 = vadd.f32 %v6473_v32, %v1906_v49  ;;  %v2129_v11 = vmax.f32 %v1915_v50, 0.0 }
 0x27a   : > { %v5279_v21 = vpop.f32.mrf.mxu1 }
 0x27b   : > { %v2127_v13 = vmax.f32 %v1907_v54, 0.0  ;;  %v2207_v19 = vpack.c.bf16 %v2129_v11, %v2128_v51  ;;  %v1928_v6 = vadd.f32 %v5279_v21, %v6473_v32 }
 0x27c   : > { %v1919_v52 = vpop.f32.mrf.mxu1 }
 0x27d   : > { %v2206_v18 = vpack.c.bf16 %v2127_v13, %v2126_v55  ;;  %v1920_v25 = vadd.f32 %v6473_v32, %v1919_v52  ;;  %v2132_v27 = vmax.f32 %v1928_v6, 0.0 }
 0x27e   : > { %v5280_v43 = vpop.f32.mrf.mxu1 }
 0x27f   : > { %v1931_v30 = vadd.f32 %v5280_v43, %v6473_v32  ;;  %5417 = vmatprep.mubr.bf16.mxu0 %v2206_v18  ;;  %v2130_v34 = vmax.f32 %v1920_v25, 0.0 }
 0x280   : > { %v1922_v7 = vpop.f32.mrf.mxu1  ;;  %v5323_v9 = vpop.f32.mrf.mxu0  ;;  %5418 = vmatmul.mubr.bf16.gmra.mxu0 %v2207_v19 }
 0x281   : > { %v1923_v23 = vadd.f32 %v6473_v32, %v1922_v7  ;;  %v6634_v45 = vadd.f32 %v5323_v9, %v6627_v62  ;;  %v2133_v59 = vmax.f32 %v1931_v30, 0.0 }
 0x282   : > { %v5283_v31 = vpop.f32.mrf.mxu1  ;;  %v2324_v1 = vpop.f32.mrf.mxu0 }
 0x283   : > { %v2131_v17 = vmax.f32 %v1923_v23, 0.0  ;;  %v6637_v20 = vadd.f32 %v6627_v62, %v2324_v1  ;;  %2839 = vadd.xlane.f32.xlu1 %v6634_v45  ;;  %v2209_v46 = vpack.c.bf16 %v2133_v59, %v2132_v27  ;;  %v1944_v26 = vadd.f32 %v5283_v31, %v6473_v32 }
 0x284   : > { %v1935_v33 = vpop.f32.mrf.mxu1  ;;  %v5324_v35 = vpop.f32.mrf.mxu0 }
 0x285   : > { %v2208_v60 = vpack.c.bf16 %v2131_v17, %v2130_v34  ;;  %v6641_v36 = vadd.f32 %v5324_v35, %v6627_v62  ;;  %2835 = vadd.xlane.f32.xlu0 %v6637_v20  ;;  %v1936_v39 = vadd.f32 %v6473_v32, %v1935_v33  ;;  %v2136_v42 = vmax.f32 %v1944_v26, 0.0 }
 0x286   : > { %v5284_v22 = vpop.f32.mrf.mxu1  ;;  %v2327_v15 = vpop.f32.mrf.mxu0 }
 0x287   : > { %v1947_v47 = vadd.f32 %v5284_v22, %v6473_v32  ;;  %5421 = vmatprep.mubr.bf16.mxu0 %v2208_v60  ;;  %2841 = vadd.xlane.f32.xlu1 %v6641_v36  ;;  %v6648_v40 = vadd.f32 %v6627_v62, %v2327_v15  ;;  %v2134_v8 = vmax.f32 %v1936_v39, 0.0 }
 0x288   : > { %v1938_v5 = vpop.f32.mrf.mxu1  ;;  %v5327_v48 = vpop.f32.mrf.mxu0  ;;  %5422 = vmatmul.mubr.bf16.gmra.mxu0 %v2209_v46 }
 0x289   : > { %v1939_v12 = vadd.f32 %v6473_v32, %v1938_v5  ;;  %2837 = vadd.xlane.f32.xlu0 %v6648_v40  ;;  %v2137_v57 = vmax.f32 %v1947_v47, 0.0  ;;  %v6654_v53 = vadd.f32 %v5327_v48, %v6627_v62 }
 0x28a   : > { %v5287_v56 = vpop.f32.mrf.mxu1  ;;  %v2340_v4 = vpop.f32.mrf.mxu0 }
 0x28b   : > { %v2135_v28 = vmax.f32 %v1939_v12, 0.0  ;;  %v2211_v32 = vpack.c.bf16 %v2137_v57, %v2136_v42  ;;  %v6661_v2 = vadd.f32 %v6627_v62, %v2340_v4  ;;  %v1960_v38 = vadd.f32 %v6666_v41, %v5287_v56 }
 0x28c   : > { %v1951_v58 = vpop.f32.mrf.mxu1  ;;  %v5328_v37 = vpop.f32.mrf.mxu0 }
 0x28d   : > { %v2210_v44 = vpack.c.bf16 %v2135_v28, %v2134_v8  ;;  %v6657_v24 = vadd.f32 %v5328_v37, %v6627_v62  ;;  %2847 = vadd.xlane.f32.xlu0 %v6654_v53  ;;  %v1952_v61 = vadd.f32 %v6666_v41, %v1951_v58  ;;  %v2140_v13 = vmax.f32 %v1960_v38, 0.0 }
 0x28e   : > { %v5288_v3 = vpop.f32.mrf.mxu1  ;;  %v2343_v63 = vpop.f32.mrf.mxu0 }
 0x28f   : > { %v1963_v29 = vadd.f32 %v6666_v41, %v5288_v3  ;;  %5425 = vmatprep.mubr.bf16.mxu0 %v2210_v44  ;;  %2849 = vadd.xlane.f32.xlu1 %v6657_v24  ;;  %v6675_v50 = vadd.f32 %v6627_v62, %v2343_v63  ;;  %v2138_v11 = vmax.f32 %v1952_v61, 0.0 }
 0x290   : > { %v1954_v14 = vpop.f32.mrf.mxu1  ;;  %v5331_v16 = vpop.f32.mrf.mxu0  ;;  %5426 = vmatmul.mubr.bf16.gmra.mxu0 %v2211_v32 }
 0x291   : > { %v1955_v10 = vadd.f32 %v6666_v41, %v1954_v14  ;;  %2843 = vadd.xlane.f32.xlu0 %v6661_v2  ;;  %v2141_v0 = vmax.f32 %v1963_v29, 0.0  ;;  %v6678_v55 = vadd.f32 %v5331_v16, %v6627_v62 }
 0x292   : > { %v5291_v49 = vpop.f32.mrf.mxu1  ;;  %v2356_v54 = vpop.f32.mrf.mxu0 }
 0x293   : > { %v2139_v21 = vmax.f32 %v1955_v10, 0.0  ;;  %2845 = vadd.xlane.f32.xlu1 %v6675_v50  ;;  %v2213_v43 = vpack.c.bf16 %v2141_v0, %v2140_v13  ;;  %v6686_v6 = vadd.f32 %v6627_v62, %v2356_v54  ;;  %v1976_v23 = vadd.f32 %v6666_v41, %v5291_v49 }
 0x294   : > { %v1967_v51 = vpop.f32.mrf.mxu1  ;;  %v5332_v52 = vpop.f32.mrf.mxu0 }
 0x295   : > { %v2212_v18 = vpack.c.bf16 %v2139_v21, %v2138_v11  ;;  %v6682_v19 = vadd.f32 %v5332_v52, %v6627_v62  ;;  %2855 = vadd.xlane.f32.xlu0 %v6678_v55  ;;  %v1968_v7 = vadd.f32 %v6666_v41, %v1967_v51  ;;  %v2144_v22 = vmax.f32 %v1976_v23, 0.0 }
 0x296   : > { %v5292_v25 = vpop.f32.mrf.mxu1  ;;  %v2359_v30 = vpop.f32.mrf.mxu0 }
 0x297   : > { %v1979_v9 = vadd.f32 %v6666_v41, %v5292_v25  ;;  %5429 = vmatprep.mubr.bf16.mxu0 %v2212_v18  ;;  %2857 = vadd.xlane.f32.xlu1 %v6682_v19  ;;  %v6695_v34 = vadd.f32 %v6627_v62, %v2359_v30  ;;  %v2142_v35 = vmax.f32 %v1968_v7, 0.0 }
 0x298   : > { %v1970_v59 = vpop.f32.mrf.mxu1  ;;  %v5335_v31 = vpop.f32.mrf.mxu0  ;;  %5430 = vmatmul.mubr.bf16.gmra.mxu0 %v2213_v43 }
 0x299   : > { %v1971_v1 = vadd.f32 %v6666_v41, %v1970_v59  ;;  %2851 = vadd.xlane.f32.xlu0 %v6686_v6  ;;  %v2145_v17 = vmax.f32 %v1979_v9, 0.0  ;;  %v6698_v46 = vadd.f32 %v5335_v31, %v6627_v62 }
 0x29a   : > { %v5295_v27 = vpop.f32.mrf.mxu1  ;;  %v2372_v33 = vpop.f32.mrf.mxu0 }
 0x29b   : > { %v2143_v60 = vmax.f32 %v1971_v1, 0.0  ;;  %2853 = vadd.xlane.f32.xlu1 %v6695_v34  ;;  %v2215_v5 = vpack.c.bf16 %v2145_v17, %v2144_v22  ;;  %v6706_v57 = vadd.f32 %v6627_v62, %v2372_v33  ;;  %v1992_v8 = vadd.f32 %v6666_v41, %v5295_v27 }
 0x29c   : > { %v1983_v15 = vpop.f32.mrf.mxu1  ;;  %v5336_v39 = vpop.f32.mrf.mxu0 }
 0x29d   : > { %v2214_v47 = vpack.c.bf16 %v2143_v60, %v2142_v35  ;;  %v6702_v26 = vadd.f32 %v5336_v39, %v6627_v62  ;;  %2863 = vadd.xlane.f32.xlu0 %v6698_v46  ;;  %v1984_v56 = vadd.f32 %v6666_v41, %v1983_v15  ;;  %v2148_v38 = vmax.f32 %v1992_v8, 0.0 }
 0x29e   : > { %v5296_v48 = vpop.f32.mrf.mxu1  ;;  %v2375_v12 = vpop.f32.mrf.mxu0 }
 0x29f   : > { %v1995_v4 = vadd.f32 %v6666_v41, %v5296_v48  ;;  %5433 = vmatprep.mubr.bf16.mxu0 %v2214_v47  ;;  %2865 = vadd.xlane.f32.xlu1 %v6702_v26  ;;  %v6715_v37 = vadd.f32 %v6627_v62, %v2375_v12  ;;  %v2146_v63 = vmax.f32 %v1984_v56, 0.0 }
 0x2a0   : > { %v1986_v28 = vpop.f32.mrf.mxu1  ;;  %v5339_v42 = vpop.f32.mrf.mxu0  ;;  %5434 = vmatmul.mubr.bf16.gmra.mxu0 %v2215_v5 }
 0x2a1   : > { %v1987_v58 = vadd.f32 %v6666_v41, %v1986_v28  ;;  %2859 = vadd.xlane.f32.xlu0 %v6706_v57  ;;  %v2149_v44 = vmax.f32 %v1995_v4, 0.0  ;;  %v6718_v29 = vadd.f32 %v5339_v42, %v6627_v62 }
 0x2a2   : > { %v5299_v32 = vpop.f32.mrf.mxu1  ;;  %v2388_v3 = vpop.f32.mrf.mxu0 }
 0x2a3   : > { %v2147_v61 = vmax.f32 %v1987_v58, 0.0  ;;  %2861 = vadd.xlane.f32.xlu1 %v6715_v37  ;;  %v2217_v49 = vpack.c.bf16 %v2149_v44, %v2148_v38  ;;  %v6726_v21 = vadd.f32 %v6627_v62, %v2388_v3  ;;  %v2008_v52 = vadd.f32 %v6666_v41, %v5299_v32 }
 0x2a4   : > { %v1999_v14 = vpop.f32.mrf.mxu1  ;;  %v5340_v16 = vpop.f32.mrf.mxu0 }
 0x2a5   : > { %v2216_v10 = vpack.c.bf16 %v2147_v61, %v2146_v63  ;;  %v6722_v0 = vadd.f32 %v5340_v16, %v6627_v62  ;;  %2871 = vadd.xlane.f32.xlu0 %v6718_v29  ;;  %v2000_v13 = vadd.f32 %v6666_v41, %v1999_v14  ;;  %v2152_v17 = vmax.f32 %v2008_v52, 0.0 }
 0x2a6   : > { %v5300_v54 = vpop.f32.mrf.mxu1  ;;  %v2391_v11 = vpop.f32.mrf.mxu0 }
 0x2a7   : > { %v2011_v51 = vadd.f32 %v6666_v41, %v5300_v54  ;;  %5437 = vmatprep.mubr.bf16.mxu0 %v2216_v10  ;;  %2873 = vadd.xlane.f32.xlu1 %v6722_v0  ;;  %v6733_v25 = vadd.f32 %v6627_v62, %v2391_v11  ;;  %v2150_v59 = vmax.f32 %v2000_v13, 0.0 }
 0x2a8   : > { %v2002_v18 = vpop.f32.mrf.mxu1  ;;  %v5343_v43 = vpop.f32.mrf.mxu0  ;;  %5438 = vmatmul.mubr.bf16.gmra.mxu0 %v2217_v49 }
 0x2a9   : > { %v2003_v30 = vadd.f32 %v6666_v41, %v2002_v18  ;;  %2867 = vadd.xlane.f32.xlu0 %v6726_v21  ;;  %v2153_v7 = vmax.f32 %v2011_v51, 0.0  ;;  %v6738_v1 = vadd.f32 %v5343_v43, %v6627_v62 }
 0x2aa   : > { %v5303_v9 = vpop.f32.mrf.mxu1  ;;  %v2404_v23 = vpop.f32.mrf.mxu0 }
 0x2ab   : > { %v2151_v31 = vmax.f32 %v2003_v30, 0.0  ;;  %2869 = vadd.xlane.f32.xlu1 %v6733_v25  ;;  %v2219_v22 = vpack.c.bf16 %v2153_v7, %v2152_v17  ;;  %v6746_v47 = vadd.f32 %v6627_v62, %v2404_v23  ;;  %v2024_v12 = vadd.f32 %v6666_v41, %v5303_v9 }
 0x2ac   : > { %v2015_v27 = vpop.f32.mrf.mxu1  ;;  %v5344_v33 = vpop.f32.mrf.mxu0 }
 0x2ad   : > { %v2218_v35 = vpack.c.bf16 %v2151_v31, %v2150_v59  ;;  %v6742_v60 = vadd.f32 %v5344_v33, %v6627_v62  ;;  %2879 = vadd.xlane.f32.xlu0 %v6738_v1  ;;  %v2016_v5 = vadd.f32 %v6666_v41, %v2015_v27  ;;  %v2156_v63 = vmax.f32 %v2024_v12, 0.0 }
 0x2ae   : > { %v5304_v15 = vpop.f32.mrf.mxu1  ;;  %v2407_v39 = vpop.f32.mrf.mxu0 }
 0x2af   : > { %v2027_v48 = vadd.f32 %v6666_v41, %v5304_v15  ;;  %5441 = vmatprep.mubr.bf16.mxu0 %v2218_v35  ;;  %2881 = vadd.xlane.f32.xlu1 %v6742_v60  ;;  %v6753_v8 = vadd.f32 %v6627_v62, %v2407_v39  ;;  %v2154_v44 = vmax.f32 %v2016_v5, 0.0 }
 0x2b0   : > { %v2018_v56 = vpop.f32.mrf.mxu1  ;;  %v5347_v4 = vpop.f32.mrf.mxu0  ;;  %5442 = vmatmul.mubr.bf16.gmra.mxu0 %v2219_v22 }
 0x2b1   : > { %v2019_v28 = vadd.f32 %v6666_v41, %v2018_v56  ;;  %2875 = vadd.xlane.f32.xlu0 %v6746_v47  ;;  %v2157_v42 = vmax.f32 %v2027_v48, 0.0  ;;  %v6758_v3 = vadd.f32 %v5347_v4, %v6627_v62 }
 0x2b2   : > { %v2420_v58 = vpop.f32.mrf.mxu0 }
 0x2b3   : > { %v2155_v32 = vmax.f32 %v2019_v28, 0.0  ;;  %2877 = vadd.xlane.f32.xlu1 %v6753_v8  ;;  %v2221_v41 = vpack.c.bf16 %v2157_v42, %v2156_v63  ;;  %v6766_v10 = vadd.f32 %v6627_v62, %v2420_v58 }
 0x2b4   : > { %v5348_v61 = vpop.f32.mrf.mxu0 }
 0x2b5   : > { %v2220_v38 = vpack.c.bf16 %v2155_v32, %v2154_v44  ;;  %v6762_v14 = vadd.f32 %v5348_v61, %v6627_v62  ;;  %2887 = vadd.xlane.f32.xlu0 %v6758_v3 }
 0x2b6   : > { %v2423_v16 = vpop.f32.mrf.mxu0 }
 0x2b7   : > { %5445 = vmatprep.mubr.bf16.mxu0 %v2220_v38  ;;  %2889 = vadd.xlane.f32.xlu1 %v6762_v14  ;;  %v6770_v54 = vadd.f32 %v6627_v62, %v2423_v16 }
 0x2b8   : > { %v5351_v49 = vpop.f32.mrf.mxu0  ;;  %5446 = vmatmul.mubr.bf16.gmra.mxu0 %v2221_v41 }
 0x2b9   : > { %2883 = vadd.xlane.f32.xlu0 %v6766_v10  ;;  %v6774_v13 = vadd.f32 %v5351_v49, %v6627_v62 }
 0x2ba   : > { %v2436_v11 = vpop.f32.mrf.mxu0 }
 0x2bb   : > { %2885 = vadd.xlane.f32.xlu1 %v6770_v54  ;;  %v6782_v43 = vadd.f32 %v6627_v62, %v2436_v11 }
 0x2bc   : > { %v5352_v51 = vpop.f32.mrf.mxu0 }
 0x2bd   : > { %v6778_v52 = vadd.f32 %v5352_v51, %v6627_v62  ;;  %2895 = vadd.xlane.f32.xlu0 %v6774_v13 }
 0x2be   : > { %v2439_v18 = vpop.f32.mrf.mxu0 }
 0x2bf   : > { %2897 = vadd.xlane.f32.xlu1 %v6778_v52  ;;  %v6786_v7 = vadd.f32 %v6627_v62, %v2439_v18 }
 0x2c0   : > { %v5355_v30 = vpop.f32.mrf.mxu0 }
 0x2c1   : > { %2891 = vadd.xlane.f32.xlu0 %v6782_v43  ;;  %v6790_v23 = vadd.f32 %v5355_v30, %v6627_v62 }
 0x2c2   : > { %v2452_v9 = vpop.f32.mrf.mxu0 }
 0x2c3   : > { %2893 = vadd.xlane.f32.xlu1 %v6786_v7  ;;  %v6798_v27 = vadd.f32 %v6627_v62, %v2452_v9 }
 0x2c4   : > { %v5356_v59 = vpop.f32.mrf.mxu0 }
 0x2c5   : > { %v6794_v31 = vadd.f32 %v5356_v59, %v6627_v62  ;;  %2903 = vadd.xlane.f32.xlu0 %v6790_v23 }
 0x2c6   : > { %v2455_v17 = vpop.f32.mrf.mxu0 }
 0x2c7   : > { %2905 = vadd.xlane.f32.xlu1 %v6794_v31  ;;  %v6802_v35 = vadd.f32 %v6627_v62, %v2455_v17 }
 0x2c8   : > { %v5359_v33 = vpop.f32.mrf.mxu0 }
 0x2c9   : > { %2899 = vadd.xlane.f32.xlu0 %v6798_v27  ;;  %v6806_v15 = vadd.f32 %v5359_v33, %v6627_v62 }
 0x2ca   : > { %v2468_v22 = vpop.f32.mrf.mxu0 }
 0x2cb   : > { %2901 = vadd.xlane.f32.xlu1 %v6802_v35  ;;  %v6814_v12 = vadd.f32 %v6627_v62, %v2468_v22 }
 0x2cc   : > { %v5360_v39 = vpop.f32.mrf.mxu0 }
 0x2cd   : > { %v6810_v5 = vadd.f32 %v5360_v39, %v6627_v62  ;;  %2911 = vadd.xlane.f32.xlu0 %v6806_v15 }
 0x2ce   : > { %v2471_v48 = vpop.f32.mrf.mxu0 }
 0x2cf   : > { %2913 = vadd.xlane.f32.xlu1 %v6810_v5  ;;  %v6818_v4 = vadd.f32 %v6627_v62, %v2471_v48 }
 0x2d0   : > { %v5363_v56 = vpop.f32.mrf.mxu0 }
 0x2d1   : > { %2907 = vadd.xlane.f32.xlu0 %v6814_v12  ;;  %v6822_v42 = vadd.f32 %v5363_v56, %v6627_v62 }
 0x2d2   : > { %v2484_v28 = vpop.f32.mrf.mxu0 }
 0x2d3   : > { %2909 = vadd.xlane.f32.xlu1 %v6818_v4  ;;  %v6830_v63 = vadd.f32 %v6627_v62, %v2484_v28 }
 0x2d4   : > { %v5364_v58 = vpop.f32.mrf.mxu0 }
 0x2d5   : > { %v6826_v44 = vadd.f32 %v5364_v58, %v6627_v62  ;;  %2919 = vadd.xlane.f32.xlu0 %v6822_v42 }
 0x2d6   : > { %v2487_v32 = vpop.f32.mrf.mxu0 }
 0x2d7   : > { %2921 = vadd.xlane.f32.xlu1 %v6826_v44  ;;  %v6834_v38 = vadd.f32 %v6627_v62, %v2487_v32 }
 0x2d8   : > { %v5367_v61 = vpop.f32.mrf.mxu0 }
 0x2d9   : > { %2915 = vadd.xlane.f32.xlu0 %v6830_v63  ;;  %v6838_v16 = vadd.f32 %v5367_v61, %v6627_v62 }
 0x2da   : > { %v2500_v41 = vpop.f32.mrf.mxu0 }
 0x2db   : > { %8891 = vst [vmem:[#allocation5_spill] sm:$0xff] %v6838_v16  ;;  %2917 = vadd.xlane.f32.xlu1 %v6834_v38  ;;  %v6846_v18 = vadd.f32 %v6627_v62, %v2500_v41 }
 0x2dc   : > { %v5368_v49 = vpop.f32.mrf.mxu0 }
 0x2dd   : > { %v6842_v11 = vadd.f32 %v5368_v49, %v6627_v62  ;;  %2927 = vadd.xlane.f32.xlu0 %v6838_v16  ;;  %8893 = vst [vmem:[#allocation7_spill] sm:$0xff] %v6846_v18 }
 0x2de   : > { %v2503_v51 = vpop.f32.mrf.mxu0 }
 0x2df   : > { %8892 = vst [vmem:[#allocation6_spill] sm:$0xff] %v6842_v11  ;;  %2929 = vadd.xlane.f32.xlu1 %v6842_v11  ;;  %v6850_v9 = vadd.f32 %v6627_v62, %v2503_v51 }
 0x2e0   : > { %v5371_v30 = vpop.f32.mrf.mxu0 }
 0x2e1   : > { %8894 = vst [vmem:[#allocation8_spill] sm:$0xff] %v6850_v9  ;;  %2923 = vadd.xlane.f32.xlu0 %v6846_v18  ;;  %v6854_v17 = vadd.f32 %v5371_v30, %v6627_v62 }
 0x2e2   : > { %v2516_v59 = vpop.f32.mrf.mxu0 }
 0x2e3   : > { %8895 = vst [vmem:[#allocation9_spill] sm:$0xff] %v6854_v17  ;;  %2925 = vadd.xlane.f32.xlu1 %v6850_v9  ;;  %v6862_v48 = vadd.f32 %v6627_v62, %v2516_v59 }
 0x2e4   : > { %v5372_v33 = vpop.f32.mrf.mxu0 }
 0x2e5   : > { %v6858_v22 = vadd.f32 %v5372_v33, %v6627_v62  ;;  %2935 = vadd.xlane.f32.xlu0 %v6854_v17  ;;  %8897 = vst [vmem:[#allocation11_spill] sm:$0xff] %v6862_v48 }
 0x2e6   : > { %v2519_v39 = vpop.f32.mrf.mxu0 }
 0x2e7   : > { %8896 = vst [vmem:[#allocation10_spill] sm:$0xff] %v6858_v22  ;;  %2937 = vadd.xlane.f32.xlu1 %v6858_v22  ;;  %v6866_v28 = vadd.f32 %v6627_v62, %v2519_v39 }
 0x2e8   : > { %v5375_v56 = vpop.f32.mrf.mxu0 }
 0x2e9   : > { %8898 = vst [vmem:[#allocation12_spill] sm:$0xff] %v6866_v28  ;;  %2931 = vadd.xlane.f32.xlu0 %v6862_v48  ;;  %v6870_v32 = vadd.f32 %v5375_v56, %v6627_v62 }
 0x2ea   : > { %v2532_v58 = vpop.f32.mrf.mxu0 }
 0x2eb   : > { %8899 = vst [vmem:[#allocation13_spill] sm:$0xff] %v6870_v32  ;;  %2933 = vadd.xlane.f32.xlu1 %v6866_v28  ;;  %v6878_v51 = vadd.f32 %v6627_v62, %v2532_v58 }
 0x2ec   : > { %v5376_v61 = vpop.f32.mrf.mxu0 }
 0x2ed   : > { %v6874_v41 = vadd.f32 %v5376_v61, %v6627_v62  ;;  %2943 = vadd.xlane.f32.xlu0 %v6870_v32  ;;  %8901 = vst [vmem:[#allocation15_spill] sm:$0xff] %v6878_v51 }
 0x2ee   : > { %v2535_v49 = vpop.f32.mrf.mxu0 }
 0x2ef   : > { %8900 = vst [vmem:[#allocation14_spill] sm:$0xff] %v6874_v41  ;;  %2945 = vadd.xlane.f32.xlu1 %v6874_v41  ;;  %v6882_v59 = vadd.f32 %v6627_v62, %v2535_v49 }
 0x2f0   : > { %v5379_v30 = vpop.f32.mrf.mxu0 }
 0x2f1   : > { %8902 = vst [vmem:[#allocation16_spill] sm:$0xff] %v6882_v59  ;;  %2939 = vadd.xlane.f32.xlu0 %v6878_v51  ;;  %v6886_v39 = vadd.f32 %v5379_v30, %v6627_v62 }
 0x2f2   : > { %v2548_v33 = vpop.f32.mrf.mxu0 }
 0x2f3   : > { %8903 = vst [vmem:[#allocation17_spill] sm:$0xff] %v6886_v39  ;;  %2941 = vadd.xlane.f32.xlu1 %v6882_v59  ;;  %v6894_v41 = vadd.f32 %v6627_v62, %v2548_v33 }
 0x2f4   : > { %v5380_v56 = vpop.f32.mrf.mxu0 }
 0x2f5   : > { %v6890_v61 = vadd.f32 %v5380_v56, %v6627_v62  ;;  %2951 = vadd.xlane.f32.xlu0 %v6886_v39  ;;  %8905 = vst [vmem:[#allocation19_spill] sm:$0xff] %v6894_v41 }
 0x2f6   : > { %v2551_v58 = vpop.f32.mrf.mxu0 }
 0x2f7   : > { %8904 = vst [vmem:[#allocation18_spill] sm:$0xff] %v6890_v61  ;;  %2953 = vadd.xlane.f32.xlu1 %v6890_v61  ;;  %v6898_v51 = vadd.f32 %v6627_v62, %v2551_v58 }
 0x2f8   : > { %v5383_v49 = vpop.f32.mrf.mxu0 }
 0x2f9   : > { %8906 = vst [vmem:[#allocation20_spill] sm:$0xff] %v6898_v51  ;;  %2947 = vadd.xlane.f32.xlu0 %v6894_v41  ;;  %v6902_v59 = vadd.f32 %v5383_v49, %v6627_v62 }
 0x2fa   : > { %v2564_v30 = vpop.f32.mrf.mxu0 }
 0x2fb   : > { %8907 = vst [vmem:[#allocation21_spill] sm:$0xff] %v6902_v59  ;;  %2949 = vadd.xlane.f32.xlu1 %v6898_v51  ;;  %v6910_v61 = vadd.f32 %v6627_v62, %v2564_v30 }
 0x2fc   : > { %v5384_v56 = vpop.f32.mrf.mxu0 }
 0x2fd   : > { %v6906_v39 = vadd.f32 %v5384_v56, %v6627_v62  ;;  %2959 = vadd.xlane.f32.xlu0 %v6902_v59  ;;  %8909 = vst [vmem:[#allocation23_spill] sm:$0xff] %v6910_v61 }
 0x2fe   : > { %v2567_v33 = vpop.f32.mrf.mxu0 }
 0x2ff   : > { %8908 = vst [vmem:[#allocation22_spill] sm:$0xff] %v6906_v39  ;;  %2961 = vadd.xlane.f32.xlu1 %v6906_v39  ;;  %v6914_v41 = vadd.f32 %v6627_v62, %v2567_v33 }
 0x300   : > { %v5387_v58 = vpop.f32.mrf.mxu0 }
 0x301   : > { %8910 = vst [vmem:[#allocation24_spill] sm:$0xff] %v6914_v41  ;;  %2955 = vadd.xlane.f32.xlu0 %v6910_v61  ;;  %v6918_v51 = vadd.f32 %v5387_v58, %v6627_v62 }
 0x302   : > { %v2580_v49 = vpop.f32.mrf.mxu0 }
 0x303   : > { %8911 = vst [vmem:[#allocation25_spill] sm:$0xff] %v6918_v51  ;;  %2957 = vadd.xlane.f32.xlu1 %v6914_v41  ;;  %v6926_v39 = vadd.f32 %v6627_v62, %v2580_v49 }
 0x304   : > { %v5388_v56 = vpop.f32.mrf.mxu0 }
 0x305   : > { %v6922_v59 = vadd.f32 %v5388_v56, %v6627_v62  ;;  %2967 = vadd.xlane.f32.xlu0 %v6918_v51  ;;  %8913 = vst [vmem:[#allocation27_spill] sm:$0xff] %v6926_v39 }
 0x306   : > { %v2583_v30 = vpop.f32.mrf.mxu0 }
 0x307   : > { %8912 = vst [vmem:[#allocation26_spill] sm:$0xff] %v6922_v59  ;;  %2969 = vadd.xlane.f32.xlu1 %v6922_v59  ;;  %v6930_v61 = vadd.f32 %v6627_v62, %v2583_v30 }
 0x308   : > { %v5391_v33 = vpop.f32.mrf.mxu0 }
 0x309   : > { %8914 = vst [vmem:[#allocation28_spill] sm:$0xff] %v6930_v61  ;;  %2963 = vadd.xlane.f32.xlu0 %v6926_v39  ;;  %v6934_v41 = vadd.f32 %v5391_v33, %v6627_v62 }
 0x30a   : > { %v2596_v58 = vpop.f32.mrf.mxu0 }
 0x30b   : > { %8915 = vst [vmem:[#allocation29_spill] sm:$0xff] %v6934_v41  ;;  %2965 = vadd.xlane.f32.xlu1 %v6930_v61  ;;  %v6942_v30 = vadd.f32 %v6627_v62, %v2596_v58 }
 0x30c   : > { %v2840_v56 = vpop.xlane.xlu1 %2839  ;;  %v5392_v51 = vpop.f32.mrf.mxu0 }
 0x30d   : > { %v6938_v32 = vadd.f32 %v5392_v51, %v6627_v62  ;;  %2975 = vadd.xlane.f32.xlu0 %v6934_v41  ;;  %8917 = vst [vmem:[#allocation31_spill] sm:$0xff] %v6942_v30  ;;  %v3093_v28 = vmul.f32 0.0078125, %v2840_v56 }
 0x30e   : > { %v2599_v49 = vpop.f32.mrf.mxu0  ;;  %v2836_v59 = vpop.xlane.xlu0 %2835 }
 0x30f   : > { %8916 = vst [vmem:[#allocation30_spill] sm:$0xff] %v6938_v32  ;;  %2977 = vadd.xlane.f32.xlu1 %v6938_v32  ;;  %v6946_v48 = vadd.f32 %v6627_v62, %v2599_v49  ;;  %v6954_v58 = vsub.f32 %v6634_v45, %v3093_v28  ;;  %v3091_v17 = vmul.f32 0.0078125, %v2836_v59 }
 0x310   : > { %v2842_v39 = vpop.xlane.xlu1 %2841  ;;  %v5395_v33 = vpop.f32.mrf.mxu0 }
 0x311   : > { %8918 = vst [vmem:[#allocation32_spill] sm:$0xff] %v6946_v48  ;;  %v3094_v61 = vmul.f32 0.0078125, %v2842_v39  ;;  %2971 = vadd.xlane.f32.xlu0 %v6942_v30  ;;  %v6950_v41 = vadd.f32 %v5395_v33, %v6627_v62  ;;  %v3349_v33 = vmul.f32 %v6954_v58, %v6954_v58 }
 0x312   : > { %v2612_v51 = vpop.f32.mrf.mxu0  ;;  %v2838_v22 = vpop.xlane.xlu0 %2837 }
 0x313   : > { %8919 = vst [vmem:[#allocation33_spill] sm:$0xff] %v6950_v41  ;;  %2973 = vadd.xlane.f32.xlu1 %v6946_v48  ;;  %v6961_v39 = vsub.f32 %v6641_v36, %v3094_v61  ;;  %v3092_v45 = vmul.f32 0.0078125, %v2838_v22  ;;  %v6972_v36 = vsub.f32 %v6637_v20, %v3091_v17 }
 0x314   : > { %v5396_v56 = vpop.f32.mrf.mxu0 }
 0x315   : > { %v6957_v32 = vadd.f32 %v5396_v56, %v6627_v62  ;;  %2983 = vadd.xlane.f32.xlu0 %v6950_v41  ;;  %v3350_v28 = vmul.f32 %v6961_v39, %v6961_v39  ;;  %v6969_v41 = vadd.f32 %v6627_v62, %v2612_v51  ;;  %v6979_v22 = vsub.f32 %v6648_v40, %v3092_v45 }
 0x316   : > { %v2615_v49 = vpop.f32.mrf.mxu0  ;;  %v2848_v30 = vpop.xlane.xlu0 %2847  ;;  %v3347_v51 = vmul.f32 %v6972_v36, %v6972_v36 }
 0x317   : > { %8920 = vst [vmem:[#allocation34_spill] sm:$0xff] %v6957_v32  ;;  %2985 = vadd.xlane.f32.xlu1 %v6957_v32  ;;  %8921 = vst [vmem:[#allocation35_spill] sm:$0xff] %v6969_v41  ;;  %v6975_v61 = vadd.f32 %v6627_v62, %v2615_v49  ;;  %v3097_v18 = vmul.f32 0.0078125, %v2848_v30  ;;  %v3348_v17 = vmul.f32 %v6979_v22, %v6979_v22 }
 0x318   : > { %v2850_v48 = vpop.xlane.xlu1 %2849  ;;  %v5399_v56 = vpop.f32.mrf.mxu0  ;;  %8923 = vst [vmem:[#allocation37_spill] sm:$0xff] %v6979_v22 }
 0x319   : > { %3479 = vadd.xlane.f32.xlu0 %v3349_v33  ;;  %8922 = vst [vmem:[#allocation36_spill] sm:$0xff] %v6975_v61  ;;  %v3098_v20 = vmul.f32 0.0078125, %v2850_v48  ;;  %v6990_v40 = vsub.f32 %v6654_v53, %v3097_v18 }
 0x31a   : > { %v2844_v9 = vpop.xlane.xlu0 %2843  ;;  %v2628_v33 = vpop.f32.mrf.mxu0 }
 0x31b   : > { %3481 = vadd.xlane.f32.xlu1 %v3350_v28  ;;  %v6997_v48 = vsub.f32 %v6657_v24, %v3098_v20  ;;  %v3095_v16 = vmul.f32 0.0078125, %v2844_v9  ;;  %v7007_v24 = vadd.f32 %v6627_v62, %v2628_v33 }
 0x31c   : > { %v2846_v59 = vpop.xlane.xlu1 %2845  ;;  %v5400_v49 = vpop.f32.mrf.mxu0 }
 0x31d   : > { %2979 = vadd.xlane.f32.xlu0 %v6969_v41  ;;  %v6987_v41 = vadd.f32 %v5399_v56, %v6627_v62  ;;  %v6993_v45 = vadd.f32 %v5400_v49, %v6627_v62  ;;  %8926 = vst [vmem:[#allocation40_spill] sm:$0xff] %v6997_v48  ;;  %v3353_v56 = vmul.f32 %v6990_v40, %v6990_v40  ;;  %v3096_v53 = vmul.f32 0.0078125, %v2846_v59 }
 0x31e   : > { %v2856_v32 = vpop.xlane.xlu0 %2855  ;;  %v3354_v18 = vmul.f32 %v6997_v48, %v6997_v48  ;;  %8927 = vst [vmem:[#allocation41_spill] sm:$0xff] %v7007_v24  ;;  %v7010_v9 = vsub.f32 %v6661_v2, %v3095_v16 }
 0x31f   : > { %2981 = vadd.xlane.f32.xlu1 %v6975_v61  ;;  %8924 = vst [vmem:[#allocation38_spill] sm:$0xff] %v6987_v41  ;;  %8925 = vst [vmem:[#allocation39_spill] sm:$0xff] %v6993_v45  ;;  %v7019_v59 = vsub.f32 %v6675_v50, %v3096_v53  ;;  %v3101_v48 = vmul.f32 0.0078125, %v2856_v32 }
 0x320   : > { %v2858_v28 = vpop.xlane.xlu1 %2857  ;;  %8928 = vst [vmem:[#allocation42_spill] sm:$0xff] %v7010_v9  ;;  %v3351_v2 = vmul.f32 %v7010_v9, %v7010_v9 }
 0x321   : > { %3475 = vadd.xlane.f32.xlu0 %v3347_v51  ;;  %v2631_v51 = vpop.f32.mrf.mxu0  ;;  %8930 = vst [vmem:[#allocation44_spill] sm:$0xff] %v7019_v59  ;;  %v3102_v33 = vmul.f32 0.0078125, %v2858_v28  ;;  %v7036_v32 = vsub.f32 %v6678_v55, %v3101_v48 }
 0x322   : > { %v2852_v11 = vpop.xlane.xlu0 %2851 }
 0x323   : > { %3477 = vadd.xlane.f32.xlu1 %v3348_v17  ;;  %v5403_v49 = vpop.f32.mrf.mxu0  ;;  %8932 = vst [vmem:[#allocation46_spill] sm:$0xff] %v7036_v32  ;;  %v7045_v28 = vsub.f32 %v6682_v19, %v3102_v33  ;;  %v3099_v9 = vmul.f32 0.0078125, %v2852_v11  ;;  %v3357_v55 = vmul.f32 %v7036_v32, %v7036_v32 }
 0x324   : > { %v2854_v30 = vpop.xlane.xlu1 %2853  ;;  %v7033_v50 = vadd.f32 %v5403_v49, %v6627_v62 }
 0x325   : > { %2991 = vadd.xlane.f32.xlu0 %v6987_v41  ;;  %8934 = vst [vmem:[#allocation48_spill] sm:$0xff] %v7045_v28  ;;  %v3100_v49 = vmul.f32 0.0078125, %v2854_v30  ;;  %v7062_v11 = vsub.f32 %v6686_v6, %v3099_v9 }
 0x326   : > { %v2864_v61 = vpop.xlane.xlu0 %2863  ;;  %8931 = vst [vmem:[#allocation45_spill] sm:$0xff] %v7033_v50 }
 0x327   : > { %2993 = vadd.xlane.f32.xlu1 %v6993_v45  ;;  %v7015_v45 = vadd.f32 %v6627_v62, %v2631_v51  ;;  %v3352_v51 = vmul.f32 %v7019_v59, %v7019_v59  ;;  %v7071_v30 = vsub.f32 %v6695_v34, %v3100_v49  ;;  %v3105_v32 = vmul.f32 0.0078125, %v2864_v61 }
 0x328   : > { %v2866_v17 = vpop.xlane.xlu1 %2865  ;;  %v3355_v6 = vmul.f32 %v7062_v11, %v7062_v11 }
 0x329   : > { %3487 = vadd.xlane.f32.xlu0 %v3353_v56  ;;  %8929 = vst [vmem:[#allocation43_spill] sm:$0xff] %v7015_v45  ;;  %v2644_v56 = vpop.f32.mrf.mxu0  ;;  %8937 = vst [vmem:[#allocation51_spill] sm:$0xff] %v7071_v30  ;;  %v7085_v34 = vsub.f32 %v6698_v46, %v3105_v32 }
 0x32a   : > { %v7004_v22 = vpop.xlane.xlu0 %2859  ;;  %v7059_v19 = vadd.f32 %v6627_v62, %v2644_v56  ;;  %v3106_v56 = vmul.f32 0.0078125, %v2866_v17 }
 0x32b   : > { %3489 = vadd.xlane.f32.xlu1 %v3354_v18  ;;  %v5404_v18 = vpop.f32.mrf.mxu0  ;;  %8938 = vst [vmem:[#allocation52_spill] sm:$0xff] %v7085_v34  ;;  %v3103_v46 = vmul.f32 0.0078125, %v7004_v22  ;;  %v3361_v32 = vmul.f32 %v7085_v34, %v7085_v34 }
 0x32c   : > { %v7012_v20 = vpop.xlane.xlu1 %2861  ;;  %8935 = vst [vmem:[#allocation49_spill] sm:$0xff] %v7059_v19 }
 0x32d   : > { %2987 = vadd.xlane.f32.xlu0 %v7007_v24  ;;  %v7116_v22 = vsub.f32 %v6706_v57, %v3103_v46 }
 0x32e   : > { %v7021_v41 = vpop.xlane.xlu0 %2871 }
 0x32f   : > { %2989 = vadd.xlane.f32.xlu1 %v7015_v45  ;;  %v7041_v45 = vadd.f32 %v5404_v18, %v6627_v62  ;;  %8943 = vst [vmem:[#allocation57_spill] sm:$0xff] %v7116_v22  ;;  %v3359_v57 = vmul.f32 %v7116_v22, %v7116_v22 }
 0x330   : > { %v7026_v16 = vpop.xlane.xlu1 %2873 }
 0x331   : > { %3483 = vadd.xlane.f32.xlu0 %v3351_v2  ;;  %8933 = vst [vmem:[#allocation47_spill] sm:$0xff] %v7041_v45  ;;  %v2647_v2 = vpop.f32.mrf.mxu0 }
 0x332   : > { %v7030_v24 = vpop.xlane.xlu0 %2867 }
 0x333   : > { %3485 = vadd.xlane.f32.xlu1 %v3352_v51  ;;  %v3358_v51 = vmul.f32 %v7045_v28, %v7045_v28  ;;  %v5407_v18 = vpop.f32.mrf.mxu0 }
 0x334   : > { %v7038_v53 = vpop.xlane.xlu1 %2869  ;;  %v7088_v61 = vadd.f32 %v5407_v18, %v6627_v62 }
 0x335   : > { %2999 = vadd.xlane.f32.xlu0 %v7033_v50 }
 0x336   : > { %v7047_v59 = vpop.xlane.xlu0 %2879  ;;  %8939 = vst [vmem:[#allocation53_spill] sm:$0xff] %v7088_v61 }
 0x337   : > { %3001 = vadd.xlane.f32.xlu1 %v7041_v45  ;;  %v7067_v45 = vadd.f32 %v6627_v62, %v2647_v2  ;;  %v3356_v2 = vmul.f32 %v7071_v30, %v7071_v30 }
 0x338   : > { %v7052_v48 = vpop.xlane.xlu1 %2881 }
 0x339   : > { %3495 = vadd.xlane.f32.xlu0 %v3357_v55  ;;  %8936 = vst [vmem:[#allocation50_spill] sm:$0xff] %v7067_v45  ;;  %v2660_v55 = vpop.f32.mrf.mxu0 }
 0x33a   : > { %v7056_v50 = vpop.xlane.xlu0 %2875 }
 0x33b   : > { %3497 = vadd.xlane.f32.xlu1 %v3358_v51  ;;  %v5408_v51 = vpop.f32.mrf.mxu0 }
 0x33c   : > { %v7064_v33 = vpop.xlane.xlu1 %2877  ;;  %v7096_v17 = vadd.f32 %v5408_v51, %v6627_v62 }
 0x33d   : > { %2995 = vadd.xlane.f32.xlu0 %v7059_v19 }
 0x33e   : > { %v7073_v28 = vpop.xlane.xlu0 %2887  ;;  %8941 = vst [vmem:[#allocation55_spill] sm:$0xff] %v7096_v17 }
 0x33f   : > { %2997 = vadd.xlane.f32.xlu1 %v7067_v45  ;;  %v7093_v45 = vsub.f32 %v6702_v26, %v3106_v56  ;;  %v3104_v26 = vmul.f32 0.0078125, %v7012_v20 }
 0x340   : > { %v7078_v9 = vpop.xlane.xlu1 %2889 }
 0x341   : > { %3491 = vadd.xlane.f32.xlu0 %v3355_v6  ;;  %8940 = vst [vmem:[#allocation54_spill] sm:$0xff] %v7093_v45  ;;  %v2663_v6 = vpop.f32.mrf.mxu0  ;;  %v3362_v56 = vmul.f32 %v7093_v45, %v7093_v45  ;;  %v7121_v34 = vsub.f32 %v6715_v37, %v3104_v26  ;;  %v3110_v37 = vmul.f32 0.0078125, %v7026_v16 }
 0x342   : > { %v7082_v19 = vpop.xlane.xlu0 %2883  ;;  %v7124_v20 = vadd.f32 %v6627_v62, %v2663_v6 }
 0x343   : > { %3493 = vadd.xlane.f32.xlu1 %v3356_v2  ;;  %v5411_v2 = vpop.f32.mrf.mxu0  ;;  %8944 = vst [vmem:[#allocation58_spill] sm:$0xff] %v7121_v34  ;;  %v3360_v6 = vmul.f32 %v7121_v34, %v7121_v34  ;;  %v7149_v22 = vsub.f32 %v6722_v0, %v3110_v37  ;;  %v3108_v0 = vmul.f32 0.0078125, %v7038_v53 }
 0x344   : > { %v7090_v49 = vpop.xlane.xlu1 %2885  ;;  %8945 = vst [vmem:[#allocation59_spill] sm:$0xff] %v7124_v20 }
 0x345   : > { %3007 = vadd.xlane.f32.xlu0 %v7088_v61  ;;  %v7113_v61 = vadd.f32 %v6627_v62, %v2660_v55  ;;  %v3109_v55 = vmul.f32 0.0078125, %v7021_v41  ;;  %v7144_v41 = vadd.f32 %v5411_v2, %v6627_v62  ;;  %8948 = vst [vmem:[#allocation62_spill] sm:$0xff] %v7149_v22  ;;  %v3366_v37 = vmul.f32 %v7149_v22, %v7149_v22 }
 0x346   : > { %v7099_v30 = vpop.xlane.xlu0 %2895 }
 0x347   : > { %3009 = vadd.xlane.f32.xlu1 %v7096_v17  ;;  %8942 = vst [vmem:[#allocation56_spill] sm:$0xff] %v7113_v61  ;;  %8947 = vst [vmem:[#allocation61_spill] sm:$0xff] %v7144_v41 }
 0x348   : > { %v7105_v18 = vpop.xlane.xlu1 %2897 }
 0x349   : > { %3503 = vadd.xlane.f32.xlu0 %v3361_v32  ;;  %v2676_v32 = vpop.f32.mrf.mxu0 }
 0x34a   : > { %v7110_v51 = vpop.xlane.xlu0 %2891 }
 0x34b   : > { %3505 = vadd.xlane.f32.xlu1 %v3362_v56  ;;  %v5412_v26 = vpop.f32.mrf.mxu0 }
 0x34c   : > { %v7118_v17 = vpop.xlane.xlu1 %2893  ;;  %v7152_v16 = vadd.f32 %v5412_v26, %v6627_v62 }
 0x34d   : > { %3003 = vadd.xlane.f32.xlu0 %v7113_v61  ;;  %v7141_v61 = vsub.f32 %v6718_v29, %v3109_v55  ;;  %v3107_v29 = vmul.f32 0.0078125, %v7030_v24 }
 0x34e   : > { %v7127_v45 = vpop.xlane.xlu0 %2903  ;;  %8949 = vst [vmem:[#allocation63_spill] sm:$0xff] %v7152_v16 }
 0x34f   : > { %3005 = vadd.xlane.f32.xlu1 %v7124_v20  ;;  %8946 = vst [vmem:[#allocation60_spill] sm:$0xff] %v7141_v61  ;;  %v3365_v2 = vmul.f32 %v7141_v61, %v7141_v61  ;;  %v7172_v24 = vsub.f32 %v6726_v21, %v3107_v29  ;;  %v7177_v61 = vsub.f32 %v6733_v25, %v3108_v0  ;;  %v3114_v25 = vmul.f32 0.0078125, %v7052_v48 }
 0x350   : > { %v7133_v46 = vpop.xlane.xlu1 %2905 }
 0x351   : > { %3499 = vadd.xlane.f32.xlu0 %v3359_v57  ;;  %v2679_v57 = vpop.f32.mrf.mxu0  ;;  %8951 = vst [vmem:[#allocation65_spill] sm:$0xff] %v7172_v24  ;;  %8952 = vst [vmem:[#allocation66_spill] sm:$0xff] %v7177_v61  ;;  %v3363_v21 = vmul.f32 %v7172_v24, %v7172_v24 }
 0x352   : > { %v7138_v56 = vpop.xlane.xlu0 %2899  ;;  %v7180_v53 = vadd.f32 %v6627_v62, %v2679_v57 }
 0x353   : > { %3501 = vadd.xlane.f32.xlu1 %v3360_v6  ;;  %v5415_v6 = vpop.f32.mrf.mxu0 }
 0x354   : > { %v7146_v20 = vpop.xlane.xlu1 %2901  ;;  %8953 = vst [vmem:[#allocation67_spill] sm:$0xff] %v7180_v53 }
 0x355   : > { %3015 = vadd.xlane.f32.xlu0 %v7144_v41  ;;  %v7169_v41 = vadd.f32 %v6627_v62, %v2676_v32  ;;  %v3113_v32 = vmul.f32 0.0078125, %v7047_v59  ;;  %v3364_v62 = vmul.f32 %v7177_v61, %v7177_v61  ;;  %v7202_v59 = vld [vmem:[%s8733_s5] ss:$0 sm:$0xff]  ;;  %v3111_v61 = vmul.f32 0.0078125, %v7056_v50 }
 0x356   : > { %v7155_v34 = vpop.xlane.xlu0 %2911 }
 0x357   : > { %3017 = vadd.xlane.f32.xlu1 %v7152_v16  ;;  %8950 = vst [vmem:[#allocation64_spill] sm:$0xff] %v7169_v41  ;;  %v7233_v50 = vsub.f32 %v6746_v47, %v3111_v61 }
 0x358   : > { %v7161_v55 = vpop.xlane.xlu1 %2913 }
 0x359   : > { %3511 = vadd.xlane.f32.xlu0 %v3365_v2  ;;  %v2692_v2 = vpop.f32.mrf.mxu0  ;;  %8959 = vst [vmem:[#allocation73_spill] sm:$0xff] %v7233_v50  ;;  %v3367_v47 = vmul.f32 %v7233_v50, %v7233_v50 }
 0x35a   : > { %v7166_v26 = vpop.xlane.xlu0 %2907  ;;  %v7230_v24 = vadd.f32 %v7202_v59, %v2692_v2  ;;  %v3117_v2 = vmul.f32 0.0078125, %v7073_v28 }
 0x35b   : > { %3513 = vadd.xlane.f32.xlu1 %v3366_v37  ;;  %v5416_v57 = vpop.f32.mrf.mxu0  ;;  %v7197_v37 = vsub.f32 %v6738_v1, %v3113_v32 }
 0x35c   : > { %v7174_v16 = vpop.xlane.xlu1 %2909  ;;  %8958 = vst [vmem:[#allocation72_spill] sm:$0xff] %v7230_v24 }
 0x35d   : > { %3011 = vadd.xlane.f32.xlu0 %v7169_v41  ;;  %8954 = vst [vmem:[#allocation68_spill] sm:$0xff] %v7197_v37  ;;  %v7213_v41 = vadd.f32 %v7202_v59, %v5416_v57  ;;  %v2695_v1 = vpop.f32.mrf.mxu0 }
 0x35e   : > { %v7183_v22 = vpop.xlane.xlu0 %2919 }
 0x35f   : > { %3013 = vadd.xlane.f32.xlu1 %v7180_v53  ;;  %v7205_v53 = vadd.f32 %v7202_v59, %v5415_v6  ;;  %8957 = vst [vmem:[#allocation71_spill] sm:$0xff] %v7213_v41  ;;  %v3369_v6 = vmul.f32 %v7197_v37, %v7197_v37  ;;  %v5419_v57 = vpop.f32.mrf.mxu0 }
 0x360   : > { %v7189_v29 = vpop.xlane.xlu1 %2921  ;;  %v7261_v28 = vadd.f32 %v7202_v59, %v5419_v57 }
 0x361   : > { %3507 = vadd.xlane.f32.xlu0 %v3363_v21  ;;  %8955 = vst [vmem:[#allocation69_spill] sm:$0xff] %v7205_v53  ;;  %v7210_v21 = vsub.f32 %v6742_v60, %v3114_v25  ;;  %v3112_v60 = vmul.f32 0.0078125, %v7064_v33  ;;  %v7241_v33 = vadd.f32 %v7202_v59, %v2695_v1 }
 0x362   : > { %v7194_v0 = vpop.xlane.xlu0 %2915  ;;  %8963 = vst [vmem:[#allocation77_spill] sm:$0xff] %v7261_v28 }
 0x363   : > { %3509 = vadd.xlane.f32.xlu1 %v3364_v62  ;;  %8956 = vst [vmem:[#allocation70_spill] sm:$0xff] %v7210_v21  ;;  %v3370_v25 = vmul.f32 %v7210_v21, %v7210_v21  ;;  %v7238_v37 = vsub.f32 %v6753_v8, %v3112_v60  ;;  %8961 = vst [vmem:[#allocation75_spill] sm:$0xff] %v7241_v33  ;;  %v3118_v8 = vmul.f32 0.0078125, %v7078_v9 }
 0x364   : > { %v7207_v48 = vpop.xlane.xlu1 %2917 }
 0x365   : > { %3023 = vadd.xlane.f32.xlu0 %v7205_v53  ;;  %8960 = vst [vmem:[#allocation74_spill] sm:$0xff] %v7238_v37  ;;  %v3368_v1 = vmul.f32 %v7238_v37, %v7238_v37  ;;  %v7266_v50 = vsub.f32 %v6762_v14, %v3118_v8  ;;  %v3116_v14 = vmul.f32 0.0078125, %v7090_v49 }
 0x366   : > { %v7216_v32 = vpop.xlane.xlu0 %2927 }
 0x367   : > { %3025 = vadd.xlane.f32.xlu1 %v7213_v41  ;;  %8964 = vst [vmem:[#allocation78_spill] sm:$0xff] %v7266_v50  ;;  %v3374_v8 = vmul.f32 %v7266_v50, %v7266_v50 }
 0x368   : > { %v7222_v62 = vpop.xlane.xlu1 %2929 }
 0x369   : > { %3519 = vadd.xlane.f32.xlu0 %v3369_v6  ;;  %v2708_v6 = vpop.f32.mrf.mxu0 }
 0x36a   : > { %v7227_v53 = vpop.xlane.xlu0 %2923 }
 0x36b   : > { %3521 = vadd.xlane.f32.xlu1 %v3370_v25  ;;  %v5420_v60 = vpop.f32.mrf.mxu0 }
 0x36c   : > { %v7235_v41 = vpop.xlane.xlu1 %2925  ;;  %v7269_v9 = vadd.f32 %v7202_v59, %v5420_v60 }
 0x36d   : > { %3019 = vadd.xlane.f32.xlu0 %v7230_v24  ;;  %v7258_v24 = vsub.f32 %v6758_v3, %v3117_v2  ;;  %v3115_v3 = vmul.f32 0.0078125, %v7082_v19 }
 0x36e   : > { %v7244_v21 = vpop.xlane.xlu0 %2935  ;;  %8965 = vst [vmem:[#allocation79_spill] sm:$0xff] %v7269_v9 }
 0x36f   : > { %3021 = vadd.xlane.f32.xlu1 %v7241_v33  ;;  %8962 = vst [vmem:[#allocation76_spill] sm:$0xff] %v7258_v24  ;;  %v3373_v57 = vmul.f32 %v7258_v24, %v7258_v24  ;;  %v7289_v19 = vsub.f32 %v6766_v10, %v3115_v3  ;;  %v7294_v24 = vsub.f32 %v6770_v54, %v3116_v14  ;;  %v3122_v54 = vmul.f32 0.0078125, %v7105_v18 }
 0x370   : > { %v7250_v61 = vpop.xlane.xlu1 %2937 }
 0x371   : > { %3515 = vadd.xlane.f32.xlu0 %v3367_v47  ;;  %v2711_v47 = vpop.f32.mrf.mxu0  ;;  %8967 = vst [vmem:[#allocation81_spill] sm:$0xff] %v7289_v19  ;;  %8968 = vst [vmem:[#allocation82_spill] sm:$0xff] %v7294_v24  ;;  %v3371_v10 = vmul.f32 %v7289_v19, %v7289_v19  ;;  %v7322_v19 = vsub.f32 %v6778_v52, %v3122_v54  ;;  %v3120_v52 = vmul.f32 0.0078125, %v7118_v17 }
 0x372   : > { %v7255_v25 = vpop.xlane.xlu0 %2931  ;;  %v7297_v49 = vadd.f32 %v7202_v59, %v2711_v47  ;;  %v3372_v47 = vmul.f32 %v7294_v24, %v7294_v24 }
 0x373   : > { %3517 = vadd.xlane.f32.xlu1 %v3368_v1  ;;  %v5423_v1 = vpop.f32.mrf.mxu0  ;;  %8972 = vst [vmem:[#allocation86_spill] sm:$0xff] %v7322_v19  ;;  %v3378_v54 = vmul.f32 %v7322_v19, %v7322_v19 }
 0x374   : > { %v7263_v33 = vpop.xlane.xlu1 %2933  ;;  %8969 = vst [vmem:[#allocation83_spill] sm:$0xff] %v7297_v49 }
 0x375   : > { %3031 = vadd.xlane.f32.xlu0 %v7261_v28  ;;  %v7286_v28 = vadd.f32 %v7202_v59, %v2708_v6  ;;  %v3121_v6 = vmul.f32 0.0078125, %v7099_v30  ;;  %v7317_v30 = vadd.f32 %v7202_v59, %v5423_v1 }
 0x376   : > { %v7272_v37 = vpop.xlane.xlu0 %2943 }
 0x377   : > { %3033 = vadd.xlane.f32.xlu1 %v7269_v9  ;;  %8966 = vst [vmem:[#allocation80_spill] sm:$0xff] %v7286_v28  ;;  %8971 = vst [vmem:[#allocation85_spill] sm:$0xff] %v7317_v30 }
 0x378   : > { %v7278_v2 = vpop.xlane.xlu1 %2945 }
 0x379   : > { %3527 = vadd.xlane.f32.xlu0 %v3373_v57  ;;  %v2724_v57 = vpop.f32.mrf.mxu0 }
 0x37a   : > { %v7283_v60 = vpop.xlane.xlu0 %2939 }
 0x37b   : > { %3529 = vadd.xlane.f32.xlu1 %v3374_v8  ;;  %v5424_v14 = vpop.f32.mrf.mxu0 }
 0x37c   : > { %v7291_v9 = vpop.xlane.xlu1 %2941  ;;  %v7325_v18 = vadd.f32 %v7202_v59, %v5424_v14 }
 0x37d   : > { %3027 = vadd.xlane.f32.xlu0 %v7286_v28  ;;  %v7314_v28 = vsub.f32 %v6774_v13, %v3121_v6  ;;  %v3119_v13 = vmul.f32 0.0078125, %v7110_v51 }
 0x37e   : > { %v7300_v50 = vpop.xlane.xlu0 %2951  ;;  %8973 = vst [vmem:[#allocation87_spill] sm:$0xff] %v7325_v18 }
 0x37f   : > { %3029 = vadd.xlane.f32.xlu1 %v7297_v49  ;;  %8970 = vst [vmem:[#allocation84_spill] sm:$0xff] %v7314_v28  ;;  %v3377_v1 = vmul.f32 %v7314_v28, %v7314_v28  ;;  %v7345_v51 = vsub.f32 %v6782_v43, %v3119_v13  ;;  %v7350_v28 = vsub.f32 %v6786_v7, %v3120_v52  ;;  %v3126_v7 = vmul.f32 0.0078125, %v7133_v46 }
 0x380   : > { %v7306_v3 = vpop.xlane.xlu1 %2953 }
 0x381   : > { %3523 = vadd.xlane.f32.xlu0 %v3371_v10  ;;  %v2727_v10 = vpop.f32.mrf.mxu0  ;;  %8975 = vst [vmem:[#allocation89_spill] sm:$0xff] %v7345_v51  ;;  %8976 = vst [vmem:[#allocation90_spill] sm:$0xff] %v7350_v28  ;;  %v3375_v43 = vmul.f32 %v7345_v51, %v7345_v51  ;;  %v7378_v51 = vsub.f32 %v6794_v31, %v3126_v7  ;;  %v3124_v31 = vmul.f32 0.0078125, %v7146_v20 }
 0x382   : > { %v7311_v8 = vpop.xlane.xlu0 %2947  ;;  %v7353_v17 = vadd.f32 %v7202_v59, %v2727_v10  ;;  %v3376_v10 = vmul.f32 %v7350_v28, %v7350_v28 }
 0x383   : > { %3525 = vadd.xlane.f32.xlu1 %v3372_v47  ;;  %v5427_v47 = vpop.f32.mrf.mxu0  ;;  %8980 = vst [vmem:[#allocation94_spill] sm:$0xff] %v7378_v51  ;;  %v3382_v7 = vmul.f32 %v7378_v51, %v7378_v51 }
 0x384   : > { %v7319_v49 = vpop.xlane.xlu1 %2949  ;;  %8977 = vst [vmem:[#allocation91_spill] sm:$0xff] %v7353_v17 }
 0x385   : > { %3039 = vadd.xlane.f32.xlu0 %v7317_v30  ;;  %v7342_v30 = vadd.f32 %v7202_v59, %v2724_v57  ;;  %v3125_v57 = vmul.f32 0.0078125, %v7127_v45  ;;  %v7373_v45 = vadd.f32 %v7202_v59, %v5427_v47 }
 0x386   : > { %v7328_v24 = vpop.xlane.xlu0 %2959 }
 0x387   : > { %3041 = vadd.xlane.f32.xlu1 %v7325_v18  ;;  %8974 = vst [vmem:[#allocation88_spill] sm:$0xff] %v7342_v30  ;;  %8979 = vst [vmem:[#allocation93_spill] sm:$0xff] %v7373_v45 }
 0x388   : > { %v7334_v6 = vpop.xlane.xlu1 %2961 }
 0x389   : > { %3535 = vadd.xlane.f32.xlu0 %v3377_v1  ;;  %v2740_v1 = vpop.f32.mrf.mxu0 }
 0x38a   : > { %v7339_v14 = vpop.xlane.xlu0 %2955 }
 0x38b   : > { %3537 = vadd.xlane.f32.xlu1 %v3378_v54  ;;  %v5428_v52 = vpop.f32.mrf.mxu0 }
 0x38c   : > { %v7347_v18 = vpop.xlane.xlu1 %2957  ;;  %v7381_v46 = vadd.f32 %v7202_v59, %v5428_v52 }
 0x38d   : > { %3035 = vadd.xlane.f32.xlu0 %v7342_v30  ;;  %v7370_v30 = vsub.f32 %v6790_v23, %v3125_v57  ;;  %v3123_v23 = vmul.f32 0.0078125, %v7138_v56 }
 0x38e   : > { %v7356_v19 = vpop.xlane.xlu0 %2967  ;;  %8981 = vst [vmem:[#allocation95_spill] sm:$0xff] %v7381_v46 }
 0x38f   : > { %3037 = vadd.xlane.f32.xlu1 %v7353_v17  ;;  %8978 = vst [vmem:[#allocation92_spill] sm:$0xff] %v7370_v30  ;;  %v3381_v47 = vmul.f32 %v7370_v30, %v7370_v30  ;;  %v7401_v56 = vsub.f32 %v6798_v27, %v3123_v23  ;;  %v7406_v30 = vsub.f32 %v6802_v35, %v3124_v31  ;;  %v3130_v35 = vmul.f32 0.0078125, %v7161_v55 }
 0x390   : > { %v7362_v13 = vpop.xlane.xlu1 %2969 }
 0x391   : > { %3531 = vadd.xlane.f32.xlu0 %v3375_v43  ;;  %v2743_v43 = vpop.f32.mrf.mxu0  ;;  %8983 = vst [vmem:[#allocation97_spill] sm:$0xff] %v7401_v56  ;;  %8985 = vst [vmem:[#allocation99_spill] sm:$0xff] %v7406_v30  ;;  %v3379_v27 = vmul.f32 %v7401_v56, %v7401_v56  ;;  %v7430_v56 = vsub.f32 %v6810_v5, %v3130_v35  ;;  %v3128_v35 = vmul.f32 0.0078125, %v7174_v16 }
 0x392   : > { %v7367_v54 = vpop.xlane.xlu0 %2963  ;;  %v7409_v20 = vadd.f32 %v7202_v59, %v2743_v43  ;;  %v3380_v43 = vmul.f32 %v7406_v30, %v7406_v30 }
 0x393   : > { %3533 = vadd.xlane.f32.xlu1 %v3376_v10  ;;  %v5431_v10 = vpop.f32.mrf.mxu0 }
 0x394   : > { %v7375_v17 = vpop.xlane.xlu1 %2965  ;;  %8986 = vst [vmem:[#allocation100_spill] sm:$0xff] %v7409_v20 }
 0x395   : > { %3047 = vadd.xlane.f32.xlu0 %v7373_v45  ;;  %v7398_v45 = vadd.f32 %v7202_v59, %v2740_v1  ;;  %v3129_v1 = vmul.f32 0.0078125, %v7155_v34  ;;  %v7427_v34 = vadd.f32 %v7202_v59, %v5431_v10 }
 0x396   : > { %v7384_v28 = vpop.xlane.xlu0 %2975 }
 0x397   : > { %3049 = vadd.xlane.f32.xlu1 %v7381_v46  ;;  %8982 = vst [vmem:[#allocation96_spill] sm:$0xff] %v7398_v45  ;;  %8989 = vst [vmem:[#allocation103_spill] sm:$0xff] %v7427_v34 }
 0x398   : > { %v7390_v57 = vpop.xlane.xlu1 %2977 }
 0x399   : > { %3543 = vadd.xlane.f32.xlu0 %v3381_v47  ;;  %v2756_v47 = vpop.f32.mrf.mxu0 }
 0x39a   : > { %v7395_v52 = vpop.xlane.xlu0 %2971 }
 0x39b   : > { %3545 = vadd.xlane.f32.xlu1 %v3382_v7  ;;  %v5432_v31 = vpop.f32.mrf.mxu0 }
 0x39c   : > { %v7403_v46 = vpop.xlane.xlu1 %2973  ;;  %v7433_v55 = vadd.f32 %v7202_v59, %v5432_v31 }
 0x39d   : > { %8984 = vst [vmem:[#allocation98_spill] sm:$0xff] %v7403_v46  ;;  %3043 = vadd.xlane.f32.xlu0 %v7398_v45  ;;  %v7424_v45 = vsub.f32 %v6806_v15, %v3129_v1  ;;  %v2759_v30 = vpop.f32.mrf.mxu0  ;;  %v3127_v15 = vmul.f32 0.0078125, %v7166_v26  ;;  %v7448_v26 = vadd.f32 %v7202_v59, %v2756_v47  ;;  %v3133_v47 = vmul.f32 0.0078125, %v7183_v22 }
 0x39e   : > { %v7412_v51 = vpop.xlane.xlu0 %2983  ;;  %8990 = vst [vmem:[#allocation104_spill] sm:$0xff] %v7433_v55  ;;  %v7457_v16 = vadd.f32 %v7202_v59, %v2759_v30  ;;  %v3134_v30 = vmul.f32 0.0078125, %v7189_v29 }
 0x39f   : > { %8987 = vst [vmem:[#allocation101_spill] sm:$0xff] %v7412_v51  ;;  %3045 = vadd.xlane.f32.xlu1 %v7409_v20  ;;  %v3385_v5 = vmul.f32 %v7424_v45, %v7424_v45  ;;  %8991 = vst [vmem:[#allocation105_spill] sm:$0xff] %v7448_v26 }
 0x3a0   : > { %v7418_v23 = vpop.xlane.xlu1 %2985  ;;  %8992 = vst [vmem:[#allocation106_spill] sm:$0xff] %v7457_v16 }
 0x3a1   : > { %8988 = vst [vmem:[#allocation102_spill] sm:$0xff] %v7418_v23  ;;  %3539 = vadd.xlane.f32.xlu0 %v3379_v27 }
 0x3a2   : > { %v3480_v7 = vpop.xlane.xlu0 %3479 }
 0x3a3   : > { %v3733_v20 = vmul.f32 0.0078125, %v3480_v7  ;;  %3541 = vadd.xlane.f32.xlu1 %v3380_v43 }
 0x3a4   : > { %v3482_v51 = vpop.xlane.xlu1 %3481 }
 0x3a5   : > { %v3861_v27 = vadd.f32 1e-05, %v3733_v20  ;;  %v3734_v23 = vmul.f32 0.0078125, %v3482_v51  ;;  %3055 = vadd.xlane.f32.xlu0 %v7427_v34  ;;  %v3386_v51 = vmul.f32 %v7430_v56, %v7430_v56  ;;  %v5435_v20 = vpop.f32.mrf.mxu0 }
 0x3a6   : > { %v7436_v46 = vpop.xlane.xlu0 %2979 }
 0x3a7   : > { %5518 = vrsqrt.f32 %v3861_v27  ;;  %v3862_v10 = vadd.f32 1e-05, %v3734_v23  ;;  %3057 = vadd.xlane.f32.xlu1 %v7433_v55  ;;  %v7451_v23 = vsub.f32 %v6814_v12, %v3127_v15  ;;  %v7454_v27 = vsub.f32 %v6818_v4, %v3128_v35  ;;  %v2772_v55 = vpop.f32.mrf.mxu0 }
 0x3a8   : > { %v7442_v1 = vpop.xlane.xlu1 %2981  ;;  %v7472_v35 = vsub.f32 %v6822_v42, %v3133_v47 }
 0x3a9   : > { %5520 = vrsqrt.f32 %v3862_v10  ;;  %3551 = vadd.xlane.f32.xlu0 %v3385_v5  ;;  %v3383_v4 = vmul.f32 %v7451_v23, %v7451_v23  ;;  %v3384_v22 = vmul.f32 %v7454_v27, %v7454_v27 }
 0x3aa   : > { %v3476_v43 = vpop.xlane.xlu0 %3475  ;;  %8993 = vst [vmem:[#allocation107_spill] sm:$0xff] %v7472_v35 }
 0x3ab   : > { %v3731_v31 = vmul.f32 0.0078125, %v3476_v43  ;;  %3553 = vadd.xlane.f32.xlu1 %v3386_v51  ;;  %v5436_v51 = vpop.f32.mrf.mxu0 }
 0x3ac   : > { %v3478_v7 = vpop.xlane.xlu1 %3477  ;;  %v7487_v42 = vadd.f32 %v7202_v59, %v5436_v51  ;;  %v3389_v51 = vmul.f32 %v7472_v35, %v7472_v35 }
 0x3ad   : > { %v3859_v10 = vadd.f32 1e-05, %v3731_v31  ;;  %v3732_v5 = vmul.f32 0.0078125, %v3478_v7  ;;  %3051 = vadd.xlane.f32.xlu0 %v7448_v26  ;;  %v7476_v31 = vadd.f32 %v7202_v59, %v5435_v20 }
 0x3ae   : > { %v7461_v34 = vpop.xlane.xlu0 %2991  ;;  %8995 = vst [vmem:[#allocation109_spill] sm:$0xff] %v7487_v42 }
 0x3af   : > { %5522 = vrsqrt.f32 %v3859_v10  ;;  %v3860_v12 = vadd.f32 1e-05, %v3732_v5  ;;  %3053 = vadd.xlane.f32.xlu1 %v7457_v16  ;;  %8994 = vst [vmem:[#allocation108_spill] sm:$0xff] %v7476_v31  ;;  %v7479_v10 = vsub.f32 %v6826_v44, %v3134_v30  ;;  %v7484_v5 = vld [vmem:[%s8733_s5 + $0x1] ss:$0 sm:$0xff]  ;;  %v3131_v44 = vmul.f32 0.0078125, %v7194_v0  ;;  %v2775_v30 = vpop.f32.mrf.mxu0 }
 0x3b0   : > { %v7467_v15 = vpop.xlane.xlu1 %2993  ;;  %v3132_v0 = vmul.f32 0.0078125, %v7207_v48 }
 0x3b1   : > { %5524 = vrsqrt.f32 %v3860_v12  ;;  %3547 = vadd.xlane.f32.xlu0 %v3383_v4  ;;  %v3390_v35 = vmul.f32 %v7479_v10, %v7479_v10 }
 0x3b2   : > { %v3488_v43 = vpop.xlane.xlu0 %3487 }
 0x3b3   : > { %v3737_v7 = vmul.f32 0.0078125, %v3488_v43  ;;  %3549 = vadd.xlane.f32.xlu1 %v3384_v22  ;;  %v7497_v43 = vld [vmem:[%s8733_s5 + $0x2] ss:$0 sm:$0xff] }
 0x3b4   : > { %v5519_v29 = vpop.eup %5518  ;;  %v3490_v12 = vpop.xlane.xlu1 %3489 }
 0x3b5   : > { %v4117_v20 = vmul.f32 %v5519_v29, %v6954_v58  ;;  %v3865_v47 = vadd.f32 1e-05, %v3737_v7  ;;  %v3738_v4 = vmul.f32 0.0078125, %v3490_v12  ;;  %3063 = vadd.xlane.f32.xlu0 %v7476_v31 }
 0x3b6   : > { %v5521_v22 = vpop.eup %5520  ;;  %v7499_v16 = vpop.xlane.xlu0 %2987 }
 0x3b7   : > { %v4249_v58 = vmul.f32 %v7484_v5, %v4117_v20  ;;  %v4118_v7 = vmul.f32 %v5521_v22, %v6961_v39  ;;  %5526 = vrsqrt.f32 %v3865_v47  ;;  %v3866_v29 = vadd.f32 1e-05, %v3738_v4  ;;  %3065 = vadd.xlane.f32.xlu1 %v7487_v42  ;;  %v5439_v39 = vpop.f32.mrf.mxu0 }
 0x3b8   : > { %v7507_v12 = vpop.xlane.xlu1 %2989  ;;  %v7514_v20 = vsub.f32 %v6830_v63, %v3131_v44  ;;  %v7517_v4 = vadd.f32 %v7202_v59, %v2772_v55  ;;  %v7527_v44 = vadd.f32 %v7202_v59, %v2775_v30  ;;  %v8999_v30 = vld [vmem:[#allocation37_spill] sm:$0xff] }
 0x3b9   : > { %v4381_v31 = vadd.f32 %v7497_v43, %v4249_v58  ;;  %v4250_v26 = vmul.f32 %v7484_v5, %v4118_v7  ;;  %5528 = vrsqrt.f32 %v3866_v29  ;;  %3559 = vadd.xlane.f32.xlu0 %v3389_v51  ;;  %v7524_v58 = vsub.f32 %v6834_v38, %v3132_v0 }
 0x3ba   : > { %v3484_v47 = vpop.xlane.xlu0 %3483  ;;  %8996 = vst [vmem:[#allocation110_spill] sm:$0xff] %v7517_v4  ;;  %8998 = vst [vmem:[#allocation112_spill] sm:$0xff] %v7527_v44  ;;  %v3387_v38 = vmul.f32 %v7514_v20, %v7514_v20 }
 0x3bb   : > { %4509 = vst [vmem:[%s7519_s13 + $0x10] sm:$0xff] %v4381_v31  ;;  %v4382_v48 = vadd.f32 %v7497_v43, %v4250_v26  ;;  %v3735_v22 = vmul.f32 0.0078125, %v3484_v47  ;;  %3561 = vadd.xlane.f32.xlu1 %v3390_v35  ;;  %8997 = vst [vmem:[#allocation111_spill] sm:$0xff] %v7524_v58  ;;  %v3137_v26 = vmul.f32 0.0078125, %v7216_v32  ;;  %v2788_v47 = vpop.f32.mrf.mxu0 }
 0x3bc   : > { %v5523_v51 = vpop.eup %5522  ;;  %v3486_v63 = vpop.xlane.xlu1 %3485 }
 0x3bd   : > { %4510 = vst [vmem:[%s7519_s13 + $0x18] sm:$0xff] %v4382_v48  ;;  %v4115_v55 = vmul.f32 %v5523_v51, %v6972_v36  ;;  %v3863_v7 = vadd.f32 1e-05, %v3735_v22  ;;  %v3736_v29 = vmul.f32 0.0078125, %v3486_v63  ;;  %3059 = vadd.xlane.f32.xlu0 %v7517_v4  ;;  %v3138_v22 = vmul.f32 0.0078125, %v7222_v62  ;;  %v9000_v4 = vld [vmem:[#allocation5_spill] sm:$0xff] }
 0x3be   : > { %v5525_v31 = vpop.eup %5524  ;;  %v7533_v35 = vpop.xlane.xlu0 %2999 }
 0x3bf   : > { %v4247_v0 = vmul.f32 %v7484_v5, %v4115_v55  ;;  %v4116_v48 = vmul.f32 %v5525_v31, %v8999_v30  ;;  %5530 = vrsqrt.f32 %v3863_v7  ;;  %v3864_v36 = vadd.f32 1e-05, %v3736_v29  ;;  %3061 = vadd.xlane.f32.xlu1 %v7527_v44  ;;  %v5440_v7 = vpop.f32.mrf.mxu0  ;;  %v9003_v44 = vld [vmem:[#allocation6_spill] sm:$0xff] }
 0x3c0   : > { %v7541_v51 = vpop.xlane.xlu1 %3001  ;;  %v3388_v55 = vmul.f32 %v7524_v58, %v7524_v58  ;;  %v7548_v31 = vsub.f32 %v9000_v4, %v3137_v26  ;;  %v7551_v30 = vadd.f32 %v7202_v59, %v5439_v39  ;;  %v7559_v42 = vadd.f32 %v7202_v59, %v5440_v7  ;;  %v9006_v7 = vld [vmem:[#allocation40_spill] sm:$0xff] }
 0x3c1   : > { %v4379_v32 = vadd.f32 %v7497_v43, %v4247_v0  ;;  %v4248_v63 = vmul.f32 %v7484_v5, %v4116_v48  ;;  %5532 = vrsqrt.f32 %v3864_v36  ;;  %3555 = vadd.xlane.f32.xlu0 %v3387_v38  ;;  %v7556_v36 = vsub.f32 %v9003_v44, %v3138_v22 }
 0x3c2   : > { %9001 = vst [vmem:[#allocation37_spill] sm:$0xff] %v7548_v31  ;;  %v3496_v29 = vpop.xlane.xlu0 %3495  ;;  %9002 = vst [vmem:[#allocation5_spill] sm:$0xff] %v7551_v30  ;;  %v3393_v44 = vmul.f32 %v7548_v31, %v7548_v31 }
 0x3c3   : > { %4507 = vst [vmem:[%s7519_s13] sm:$0xff] %v4379_v32  ;;  %v4380_v62 = vadd.f32 %v7497_v43, %v4248_v63  ;;  %v3741_v0 = vmul.f32 0.0078125, %v3496_v29  ;;  %3557 = vadd.xlane.f32.xlu1 %v3388_v55  ;;  %9004 = vst [vmem:[#allocation6_spill] sm:$0xff] %v7556_v36  ;;  %v3135_v32 = vmul.f32 0.0078125, %v7227_v53  ;;  %v2791_v63 = vpop.f32.mrf.mxu0 }
 0x3c4   : > { %v5527_v48 = vpop.eup %5526  ;;  %v3498_v38 = vpop.xlane.xlu1 %3497  ;;  %9005 = vst [vmem:[#allocation113_spill] sm:$0xff] %v7559_v42 }
 0x3c5   : > { %4508 = vst [vmem:[%s7519_s13 + $0x8] sm:$0xff] %v4380_v62  ;;  %v4121_v4 = vmul.f32 %v5527_v48, %v6990_v40  ;;  %v3869_v26 = vadd.f32 1e-05, %v3741_v0  ;;  %v3742_v58 = vmul.f32 0.0078125, %v3498_v38  ;;  %3071 = vadd.xlane.f32.xlu0 %v7551_v30  ;;  %v3136_v62 = vmul.f32 0.0078125, %v7235_v41 }
 0x3c6   : > { %v5529_v39 = vpop.eup %5528  ;;  %v7565_v55 = vpop.xlane.xlu0 %2995  ;;  %v3394_v38 = vmul.f32 %v7556_v36, %v7556_v36  ;;  %v7591_v36 = vadd.f32 %v7202_v59, %v2791_v63  ;;  %v9014_v63 = vld [vmem:[#allocation44_spill] sm:$0xff] }
 0x3c7   : > { %v4253_v22 = vmul.f32 %v7484_v5, %v4121_v4  ;;  %v4122_v29 = vmul.f32 %v5529_v39, %v9006_v7  ;;  %5534 = vrsqrt.f32 %v3869_v26  ;;  %v3870_v40 = vadd.f32 1e-05, %v3742_v58  ;;  %3073 = vadd.xlane.f32.xlu1 %v7559_v42  ;;  %v9007_v4 = vld [vmem:[#allocation7_spill] sm:$0xff]  ;;  %v5443_v58 = vpop.f32.mrf.mxu0  ;;  %v9010_v42 = vld [vmem:[#allocation8_spill] sm:$0xff] }
 0x3c8   : > { %v7573_v0 = vpop.xlane.xlu1 %2997  ;;  %v7580_v39 = vsub.f32 %v9007_v4, %v3135_v32  ;;  %v7583_v7 = vadd.f32 %v7202_v59, %v2788_v47  ;;  %9012 = vst [vmem:[#allocation114_spill] sm:$0xff] %v7591_v36  ;;  %v9013_v32 = vld [vmem:[#allocation42_spill] sm:$0xff] }
 0x3c9   : > { %v4385_v53 = vadd.f32 %v7497_v43, %v4253_v22  ;;  %v4254_v48 = vmul.f32 %v7484_v5, %v4122_v29  ;;  %5536 = vrsqrt.f32 %v3870_v40  ;;  %3567 = vadd.xlane.f32.xlu0 %v3393_v44  ;;  %v7588_v40 = vsub.f32 %v9010_v42, %v3136_v62 }
 0x3ca   : > { %9008 = vst [vmem:[#allocation40_spill] sm:$0xff] %v7580_v39  ;;  %v3492_v26 = vpop.xlane.xlu0 %3491  ;;  %9009 = vst [vmem:[#allocation7_spill] sm:$0xff] %v7583_v7  ;;  %v3391_v42 = vmul.f32 %v7580_v39, %v7580_v39  ;;  %v9017_v39 = vld [vmem:[#allocation10_spill] sm:$0xff] }
 0x3cb   : > { %4513 = vst [vmem:[%s7519_s13 + $0x30] sm:$0xff] %v4385_v53  ;;  %v4386_v41 = vadd.f32 %v7497_v43, %v4254_v48  ;;  %v3739_v22 = vmul.f32 0.0078125, %v3492_v26  ;;  %3569 = vadd.xlane.f32.xlu1 %v3394_v38  ;;  %9011 = vst [vmem:[#allocation8_spill] sm:$0xff] %v7588_v40  ;;  %v3141_v53 = vmul.f32 0.0078125, %v7244_v21  ;;  %v2804_v48 = vpop.f32.mrf.mxu0 }
 0x3cc   : > { %v5531_v29 = vpop.eup %5530  ;;  %v3494_v44 = vpop.xlane.xlu1 %3493 }
 0x3cd   : > { %4514 = vst [vmem:[%s7519_s13 + $0x38] sm:$0xff] %v4386_v41  ;;  %v4119_v4 = vmul.f32 %v5531_v29, %v9013_v32  ;;  %v3867_v30 = vadd.f32 1e-05, %v3739_v22  ;;  %v3740_v31 = vmul.f32 0.0078125, %v3494_v44  ;;  %3067 = vadd.xlane.f32.xlu0 %v7583_v7  ;;  %v3142_v22 = vmul.f32 0.0078125, %v7250_v61 }
 0x3ce   : > { %v5533_v47 = vpop.eup %5532  ;;  %v7597_v38 = vpop.xlane.xlu0 %3007  ;;  %v3392_v32 = vmul.f32 %v7588_v40, %v7588_v40 }
 0x3cf   : > { %v4251_v62 = vmul.f32 %v7484_v5, %v4119_v4  ;;  %v4120_v26 = vmul.f32 %v5533_v47, %v9014_v63  ;;  %5538 = vrsqrt.f32 %v3867_v30  ;;  %v3868_v41 = vadd.f32 1e-05, %v3740_v31  ;;  %3069 = vadd.xlane.f32.xlu1 %v7591_v36  ;;  %v9015_v4 = vld [vmem:[#allocation9_spill] sm:$0xff]  ;;  %v5444_v31 = vpop.f32.mrf.mxu0 }
 0x3d0   : > { %v7605_v29 = vpop.xlane.xlu1 %3009  ;;  %v7612_v47 = vsub.f32 %v9015_v4, %v3141_v53  ;;  %v7615_v63 = vadd.f32 %v7202_v59, %v5443_v58  ;;  %v7623_v40 = vadd.f32 %v7202_v59, %v5444_v31  ;;  %v9020_v53 = vld [vmem:[#allocation46_spill] sm:$0xff]  ;;  %v9021_v31 = vld [vmem:[#allocation48_spill] sm:$0xff] }
 0x3d1   : > { %v4383_v21 = vadd.f32 %v7497_v43, %v4251_v62  ;;  %v4252_v44 = vmul.f32 %v7484_v5, %v4120_v26  ;;  %5540 = vrsqrt.f32 %v3868_v41  ;;  %3563 = vadd.xlane.f32.xlu0 %v3391_v42  ;;  %v7620_v41 = vsub.f32 %v9017_v39, %v3142_v22 }
 0x3d2   : > { %9016 = vst [vmem:[#allocation42_spill] sm:$0xff] %v7612_v47  ;;  %v3504_v30 = vpop.xlane.xlu0 %3503  ;;  %9019 = vst [vmem:[#allocation9_spill] sm:$0xff] %v7623_v40  ;;  %v3397_v39 = vmul.f32 %v7612_v47, %v7612_v47  ;;  %v9025_v47 = vld [vmem:[#allocation12_spill] sm:$0xff] }
 0x3d3   : > { %4511 = vst [vmem:[%s7519_s13 + $0x20] sm:$0xff] %v4383_v21  ;;  %v4384_v61 = vadd.f32 %v7497_v43, %v4252_v44  ;;  %v3745_v62 = vmul.f32 0.0078125, %v3504_v30  ;;  %3565 = vadd.xlane.f32.xlu1 %v3392_v32  ;;  %9018 = vst [vmem:[#allocation44_spill] sm:$0xff] %v7620_v41  ;;  %v3139_v21 = vmul.f32 0.0078125, %v7255_v25  ;;  %v2807_v44 = vpop.f32.mrf.mxu0 }
 0x3d4   : > { %v5535_v26 = vpop.eup %5534  ;;  %v3506_v42 = vpop.xlane.xlu1 %3505 }
 0x3d5   : > { %4512 = vst [vmem:[%s7519_s13 + $0x28] sm:$0xff] %v4384_v61  ;;  %v4125_v4 = vmul.f32 %v5535_v26, %v9020_v53  ;;  %v3873_v36 = vadd.f32 1e-05, %v3745_v62  ;;  %v3746_v7 = vmul.f32 0.0078125, %v3506_v42  ;;  %3079 = vadd.xlane.f32.xlu0 %v7615_v63  ;;  %v3140_v62 = vmul.f32 0.0078125, %v7263_v33 }
 0x3d6   : > { %v5537_v58 = vpop.eup %5536  ;;  %v7629_v32 = vpop.xlane.xlu0 %3003  ;;  %v3398_v53 = vmul.f32 %v7620_v41, %v7620_v41  ;;  %v7655_v41 = vadd.f32 %v7202_v59, %v2807_v44  ;;  %v9028_v44 = vld [vmem:[#allocation51_spill] sm:$0xff] }
 0x3d7   : > { %v4257_v22 = vmul.f32 %v7484_v5, %v4125_v4  ;;  %v4126_v30 = vmul.f32 %v5537_v58, %v9021_v31  ;;  %5542 = vrsqrt.f32 %v3873_v36  ;;  %v3874_v61 = vadd.f32 1e-05, %v3746_v7  ;;  %3081 = vadd.xlane.f32.xlu1 %v7623_v40  ;;  %v9022_v4 = vld [vmem:[#allocation11_spill] sm:$0xff]  ;;  %v5447_v36 = vpop.f32.mrf.mxu0 }
 0x3d8   : > { %v7637_v26 = vpop.xlane.xlu1 %3005  ;;  %v7644_v58 = vsub.f32 %v9022_v4, %v3139_v21  ;;  %v7647_v31 = vadd.f32 %v7202_v59, %v2804_v48  ;;  %9027 = vst [vmem:[#allocation11_spill] sm:$0xff] %v7655_v41 }
 0x3d9   : > { %v4389_v25 = vadd.f32 %v7497_v43, %v4257_v22  ;;  %v4258_v42 = vmul.f32 %v7484_v5, %v4126_v30  ;;  %5544 = vrsqrt.f32 %v3874_v61  ;;  %3575 = vadd.xlane.f32.xlu0 %v3397_v39  ;;  %v7652_v61 = vsub.f32 %v9025_v47, %v3140_v62 }
 0x3da   : > { %9023 = vst [vmem:[#allocation10_spill] sm:$0xff] %v7644_v58  ;;  %v3500_v7 = vpop.xlane.xlu0 %3499  ;;  %9024 = vst [vmem:[#allocation46_spill] sm:$0xff] %v7647_v31  ;;  %v3395_v47 = vmul.f32 %v7644_v58, %v7644_v58  ;;  %v9031_v58 = vld [vmem:[#allocation14_spill] sm:$0xff] }
 0x3db   : > { %4517 = vst [vmem:[%s7519_s13 + $0x50] sm:$0xff] %v4389_v25  ;;  %v4390_v33 = vadd.f32 %v7497_v43, %v4258_v42  ;;  %v3743_v22 = vmul.f32 0.0078125, %v3500_v7  ;;  %3577 = vadd.xlane.f32.xlu1 %v3398_v53  ;;  %9026 = vst [vmem:[#allocation48_spill] sm:$0xff] %v7652_v61  ;;  %v3145_v25 = vmul.f32 0.0078125, %v7272_v37  ;;  %v2820_v42 = vpop.f32.mrf.mxu0 }
 0x3dc   : > { %v5539_v30 = vpop.eup %5538  ;;  %v3502_v39 = vpop.xlane.xlu1 %3501 }
 0x3dd   : > { %4518 = vst [vmem:[%s7519_s13 + $0x58] sm:$0xff] %v4390_v33  ;;  %v4123_v21 = vmul.f32 %v5539_v30, %v7062_v11  ;;  %v3871_v4 = vadd.f32 1e-05, %v3743_v22  ;;  %v3744_v40 = vmul.f32 0.0078125, %v3502_v39  ;;  %3075 = vadd.xlane.f32.xlu0 %v7647_v31  ;;  %v3146_v33 = vmul.f32 0.0078125, %v7278_v2 }
 0x3de   : > { %v5541_v48 = vpop.eup %5540  ;;  %v7661_v53 = vpop.xlane.xlu0 %3015  ;;  %v3396_v39 = vmul.f32 %v7652_v61, %v7652_v61 }
 0x3df   : > { %v4255_v62 = vmul.f32 %v7484_v5, %v4123_v21  ;;  %v4124_v7 = vmul.f32 %v5541_v48, %v9028_v44  ;;  %5546 = vrsqrt.f32 %v3871_v4  ;;  %v3872_v11 = vadd.f32 1e-05, %v3744_v40  ;;  %3077 = vadd.xlane.f32.xlu1 %v7655_v41  ;;  %v9029_v21 = vld [vmem:[#allocation13_spill] sm:$0xff]  ;;  %v5448_v40 = vpop.f32.mrf.mxu0 }
 0x3e0   : > { %v7669_v22 = vpop.xlane.xlu1 %3017  ;;  %v7676_v48 = vsub.f32 %v9029_v21, %v3145_v25  ;;  %v7679_v44 = vadd.f32 %v7202_v59, %v5447_v36  ;;  %v7687_v61 = vadd.f32 %v7202_v59, %v5448_v40  ;;  %v9034_v25 = vld [vmem:[#allocation52_spill] sm:$0xff] }
 0x3e1   : > { %v4387_v37 = vadd.f32 %v7497_v43, %v4255_v62  ;;  %v4256_v30 = vmul.f32 %v7484_v5, %v4124_v7  ;;  %5548 = vrsqrt.f32 %v3872_v11  ;;  %3571 = vadd.xlane.f32.xlu0 %v3395_v47  ;;  %v7684_v11 = vsub.f32 %v9031_v58, %v3146_v33 }
 0x3e2   : > { %9030 = vst [vmem:[#allocation12_spill] sm:$0xff] %v7676_v48  ;;  %v3512_v4 = vpop.xlane.xlu0 %3511  ;;  %9033 = vst [vmem:[#allocation13_spill] sm:$0xff] %v7687_v61  ;;  %v3401_v58 = vmul.f32 %v7676_v48, %v7676_v48 }
 0x3e3   : > { %4515 = vst [vmem:[%s7519_s13 + $0x40] sm:$0xff] %v4387_v37  ;;  %v4388_v2 = vadd.f32 %v7497_v43, %v4256_v30  ;;  %v3749_v62 = vmul.f32 0.0078125, %v3512_v4  ;;  %3573 = vadd.xlane.f32.xlu1 %v3396_v39  ;;  %9032 = vst [vmem:[#allocation51_spill] sm:$0xff] %v7684_v11  ;;  %v3143_v37 = vmul.f32 0.0078125, %v7283_v60  ;;  %v9035_v39 = vld [vmem:[#allocation54_spill] sm:$0xff] }
 0x3e4   : > { %v5543_v7 = vpop.eup %5542  ;;  %v3514_v47 = vpop.xlane.xlu1 %3513 }
 0x3e5   : > { %4516 = vst [vmem:[%s7519_s13 + $0x48] sm:$0xff] %v4388_v2  ;;  %v4129_v21 = vmul.f32 %v5543_v7, %v9034_v25  ;;  %v3877_v41 = vadd.f32 1e-05, %v3749_v62  ;;  %v3750_v31 = vmul.f32 0.0078125, %v3514_v47  ;;  %3087 = vadd.xlane.f32.xlu0 %v7679_v44  ;;  %v3144_v2 = vmul.f32 0.0078125, %v7291_v9  ;;  %v9036_v25 = vld [vmem:[#allocation15_spill] sm:$0xff] }
 0x3e6   : > { %v5545_v36 = vpop.eup %5544  ;;  %v7693_v30 = vpop.xlane.xlu0 %3011  ;;  %v3402_v47 = vmul.f32 %v7684_v11, %v7684_v11  ;;  %v7712_v9 = vadd.f32 %v7202_v59, %v2820_v42  ;;  %v3150_v11 = vmul.f32 0.0078125, %v7306_v3 }
 0x3e7   : > { %v4261_v33 = vmul.f32 %v7484_v5, %v4129_v21  ;;  %v4130_v40 = vmul.f32 %v5545_v36, %v9035_v39  ;;  %5550 = vrsqrt.f32 %v3877_v41  ;;  %v3878_v4 = vadd.f32 1e-05, %v3750_v31  ;;  %3089 = vadd.xlane.f32.xlu1 %v7687_v61  ;;  %v2823_v41 = vpop.f32.mrf.mxu0 }
 0x3e8   : > { %v7701_v62 = vpop.xlane.xlu1 %3013  ;;  %v7708_v21 = vsub.f32 %v9036_v25, %v3143_v37  ;;  %v3149_v31 = vmul.f32 0.0078125, %v7300_v50  ;;  %v7721_v25 = vadd.f32 %v7202_v59, %v2823_v41  ;;  %v9039_v50 = vld [vmem:[#allocation57_spill] sm:$0xff]  ;;  %v9042_v41 = vld [vmem:[#allocation58_spill] sm:$0xff] }
 0x3e9   : > { %v4393_v60 = vadd.f32 %v7497_v43, %v4261_v33  ;;  %v4262_v7 = vmul.f32 %v7484_v5, %v4130_v40  ;;  %5552 = vrsqrt.f32 %v3878_v4  ;;  %3583 = vadd.xlane.f32.xlu0 %v3401_v58  ;;  %v9037_v40 = vld [vmem:[#allocation16_spill] sm:$0xff] }
 0x3ea   : > { %v3508_v36 = vpop.xlane.xlu0 %3507  ;;  %v7717_v4 = vsub.f32 %v9037_v40, %v3144_v2  ;;  %v3147_v2 = vmul.f32 0.0078125, %v7311_v8  ;;  %v3399_v3 = vmul.f32 %v7708_v21, %v7708_v21 }
 0x3eb   : > { %4521 = vst [vmem:[%s7519_s13 + $0x70] sm:$0xff] %v4393_v60  ;;  %v4394_v33 = vadd.f32 %v7497_v43, %v4262_v7  ;;  %v3747_v39 = vmul.f32 0.0078125, %v3508_v36  ;;  %3585 = vadd.xlane.f32.xlu1 %v3402_v47  ;;  %v9040_v7 = vld [vmem:[#allocation17_spill] sm:$0xff] }
 0x3ec   : > { %v5547_v58 = vpop.eup %5546  ;;  %9038 = vst [vmem:[#allocation14_spill] sm:$0xff] %v7717_v4  ;;  %v3510_v37 = vpop.xlane.xlu1 %3509  ;;  %v7727_v47 = vsub.f32 %v9040_v7, %v3149_v31  ;;  %v3148_v31 = vmul.f32 0.0078125, %v7319_v49 }
 0x3ed   : > { %4522 = vst [vmem:[%s7519_s13 + $0x78] sm:$0xff] %v4394_v33  ;;  %v4127_v48 = vmul.f32 %v5547_v58, %v9039_v50  ;;  %v3875_v42 = vadd.f32 1e-05, %v3747_v39  ;;  %v3748_v61 = vmul.f32 0.0078125, %v3510_v37  ;;  %3083 = vadd.xlane.f32.xlu0 %v7712_v9  ;;  %v9043_v58 = vld [vmem:[#allocation18_spill] sm:$0xff] }
 0x3ee   : > { %v5549_v60 = vpop.eup %5548  ;;  %9041 = vst [vmem:[#allocation52_spill] sm:$0xff] %v7727_v47  ;;  %v7730_v36 = vpop.xlane.xlu0 %3023  ;;  %v7738_v40 = vsub.f32 %v9043_v58, %v3150_v11  ;;  %v3153_v11 = vmul.f32 0.0078125, %v7328_v24  ;;  %v3154_v58 = vmul.f32 0.0078125, %v7334_v6  ;;  %v9047_v24 = vld [vmem:[#allocation60_spill] sm:$0xff]  ;;  %v9050_v6 = vld [vmem:[#allocation62_spill] sm:$0xff] }
 0x3ef   : > { %v4259_v59 = vmul.f32 %v7484_v5, %v4127_v48  ;;  %v4128_v33 = vmul.f32 %v5549_v60, %v9042_v41  ;;  %5554 = vrsqrt.f32 %v3875_v42  ;;  %v3876_v39 = vadd.f32 1e-05, %v3748_v61  ;;  %3085 = vadd.xlane.f32.xlu1 %v7721_v25  ;;  %v9045_v61 = vld [vmem:[#allocation19_spill] sm:$0xff] }
 0x3f0   : > { %9044 = vst [vmem:[#allocation54_spill] sm:$0xff] %v7738_v40  ;;  %v7741_v8 = vpop.xlane.xlu1 %3025  ;;  %v3400_v48 = vmul.f32 %v7717_v4, %v7717_v4  ;;  %v7748_v42 = vsub.f32 %v9045_v61, %v3147_v2  ;;  %v3406_v2 = vmul.f32 %v7738_v40, %v7738_v40 }
 0x3f1   : > { %v4391_v37 = vadd.f32 %v7497_v43, %v4259_v59  ;;  %v4260_v50 = vmul.f32 %v7484_v5, %v4128_v33  ;;  %5556 = vrsqrt.f32 %v3876_v39  ;;  %3579 = vadd.xlane.f32.xlu0 %v3399_v3  ;;  %v3405_v59 = vmul.f32 %v7727_v47, %v7727_v47  ;;  %v9046_v33 = vld [vmem:[#allocation20_spill] sm:$0xff] }
 0x3f2   : > { %v3520_v60 = vpop.xlane.xlu0 %3519  ;;  %v7756_v3 = vsub.f32 %v9046_v33, %v3148_v31  ;;  %v3151_v47 = vmul.f32 0.0078125, %v7339_v14  ;;  %v3403_v33 = vmul.f32 %v7748_v42, %v7748_v42 }
 0x3f3   : > { %4519 = vst [vmem:[%s7519_s13 + $0x60] sm:$0xff] %v4391_v37  ;;  %v4392_v49 = vadd.f32 %v7497_v43, %v4260_v50  ;;  %v3753_v7 = vmul.f32 0.0078125, %v3520_v60  ;;  %3581 = vadd.xlane.f32.xlu1 %v3400_v48  ;;  %v9048_v60 = vld [vmem:[#allocation21_spill] sm:$0xff] }
 0x3f4   : > { %v5551_v41 = vpop.eup %5550  ;;  %v3522_v39 = vpop.xlane.xlu1 %3521  ;;  %v7764_v4 = vsub.f32 %v9048_v60, %v3153_v11  ;;  %v3404_v14 = vmul.f32 %v7756_v3, %v7756_v3  ;;  %v9051_v11 = vld [vmem:[#allocation22_spill] sm:$0xff] }
 0x3f5   : > { %4520 = vst [vmem:[%s7519_s13 + $0x68] sm:$0xff] %v4392_v49  ;;  %v4133_v37 = vmul.f32 %v5551_v41, %v9047_v24  ;;  %v3881_v61 = vadd.f32 1e-05, %v3753_v7  ;;  %v3754_v50 = vmul.f32 0.0078125, %v3522_v39  ;;  %3591 = vadd.xlane.f32.xlu0 %v3405_v59  ;;  %v3152_v59 = vmul.f32 0.0078125, %v7347_v18 }
 0x3f6   : > { %v5553_v48 = vpop.eup %5552  ;;  %9049 = vst [vmem:[#allocation15_spill] sm:$0xff] %v7764_v4  ;;  %v7767_v31 = vpop.xlane.xlu0 %3019  ;;  %v7779_v39 = vsub.f32 %v9051_v11, %v3154_v58  ;;  %v3157_v18 = vmul.f32 0.0078125, %v7356_v19  ;;  %v3409_v58 = vmul.f32 %v7764_v4, %v7764_v4  ;;  %v3155_v4 = vmul.f32 0.0078125, %v7367_v54 }
 0x3f7   : > { %v4265_v40 = vmul.f32 %v7484_v5, %v4133_v37  ;;  %v4134_v49 = vmul.f32 %v5553_v48, %v9050_v6  ;;  %5558 = vrsqrt.f32 %v3881_v61  ;;  %v3882_v7 = vadd.f32 1e-05, %v3754_v50  ;;  %3593 = vadd.xlane.f32.xlu1 %v3406_v2  ;;  %v9052_v61 = vld [vmem:[#allocation23_spill] sm:$0xff]  ;;  %v9054_v6 = vld [vmem:[#allocation24_spill] sm:$0xff] }
 0x3f8   : > { %v7774_v41 = vpop.xlane.xlu1 %3021  ;;  %v7784_v50 = vsub.f32 %v9052_v61, %v3151_v47  ;;  %v7792_v11 = vsub.f32 %v9054_v6, %v3152_v59  ;;  %v9056_v47 = vld [vmem:[#allocation65_spill] sm:$0xff]  ;;  %v9060_v6 = vld [vmem:[#allocation26_spill] sm:$0xff] }
 0x3f9   : > { %v4397_v24 = vadd.f32 %v7497_v43, %v4265_v40  ;;  %v4266_v37 = vmul.f32 %v7484_v5, %v4134_v49  ;;  %5560 = vrsqrt.f32 %v3882_v7  ;;  %3587 = vadd.xlane.f32.xlu0 %v3403_v33  ;;  %v3158_v33 = vmul.f32 0.0078125, %v7362_v13 }
 0x3fa   : > { %9053 = vst [vmem:[#allocation16_spill] sm:$0xff] %v7784_v50  ;;  %v3516_v2 = vpop.xlane.xlu0 %3515  ;;  %9055 = vst [vmem:[#allocation57_spill] sm:$0xff] %v7792_v11  ;;  %v3407_v13 = vmul.f32 %v7784_v50, %v7784_v50  ;;  %v3408_v54 = vmul.f32 %v7792_v11, %v7792_v11 }
 0x3fb   : > { %4525 = vst [vmem:[%s7519_s13 + $0x90] sm:$0xff] %v4397_v24  ;;  %v4398_v48 = vadd.f32 %v7497_v43, %v4266_v37  ;;  %v3751_v60 = vmul.f32 0.0078125, %v3516_v2  ;;  %3589 = vadd.xlane.f32.xlu1 %v3404_v14  ;;  %v3410_v24 = vmul.f32 %v7779_v39, %v7779_v39  ;;  %v9057_v37 = vld [vmem:[#allocation25_spill] sm:$0xff] }
 0x3fc   : > { %v5555_v40 = vpop.eup %5554  ;;  %v3518_v49 = vpop.xlane.xlu1 %3517  ;;  %v7800_v2 = vsub.f32 %v9057_v37, %v3157_v18 }
 0x3fd   : > { %4526 = vst [vmem:[%s7519_s13 + $0x98] sm:$0xff] %v4398_v48  ;;  %v4131_v7 = vmul.f32 %v5555_v40, %v9056_v47  ;;  %v3879_v19 = vadd.f32 1e-05, %v3751_v60  ;;  %v3752_v61 = vmul.f32 0.0078125, %v3518_v49  ;;  %3599 = vadd.xlane.f32.xlu0 %v3409_v58  ;;  %v9059_v40 = vld [vmem:[#allocation66_spill] sm:$0xff]  ;;  %v7810_v49 = vsub.f32 %v9060_v6, %v3158_v33 }
 0x3fe   : > { %v5557_v14 = vpop.eup %5556  ;;  %9058 = vst [vmem:[#allocation17_spill] sm:$0xff] %v7800_v2  ;;  %v7803_v59 = vpop.xlane.xlu0 %3031  ;;  %v3156_v47 = vmul.f32 0.0078125, %v7375_v17  ;;  %v3161_v33 = vmul.f32 0.0078125, %v7384_v28  ;;  %v3413_v17 = vmul.f32 %v7800_v2, %v7800_v2  ;;  %v9066_v28 = vld [vmem:[#allocation68_spill] sm:$0xff]  ;;  %v3159_v2 = vmul.f32 0.0078125, %v7395_v52 }
 0x3ff   : > { %v4263_v48 = vmul.f32 %v7484_v5, %v4131_v7  ;;  %v4132_v60 = vmul.f32 %v5557_v14, %v9059_v40  ;;  %5562 = vrsqrt.f32 %v3879_v19  ;;  %v3880_v58 = vadd.f32 1e-05, %v3752_v61  ;;  %3601 = vadd.xlane.f32.xlu1 %v3410_v24  ;;  %9061 = vst [vmem:[#allocation58_spill] sm:$0xff] %v7810_v49  ;;  %v9062_v19 = vld [vmem:[#allocation27_spill] sm:$0xff] }
 0x400   : > { %v7812_v18 = vpop.xlane.xlu1 %3033  ;;  %v7820_v61 = vsub.f32 %v9062_v19, %v3155_v4  ;;  %v9064_v4 = vld [vmem:[#allocation28_spill] sm:$0xff] }
 0x401   : > { %v4395_v37 = vadd.f32 %v7497_v43, %v4263_v48  ;;  %v4264_v7 = vmul.f32 %v7484_v5, %v4132_v60  ;;  %5564 = vrsqrt.f32 %v3880_v58  ;;  %3595 = vadd.xlane.f32.xlu0 %v3407_v13  ;;  %v3162_v60 = vmul.f32 0.0078125, %v7390_v57 }
 0x402   : > { %9063 = vst [vmem:[#allocation18_spill] sm:$0xff] %v7820_v61  ;;  %v3528_v24 = vpop.xlane.xlu0 %3527  ;;  %v3414_v13 = vmul.f32 %v7810_v49, %v7810_v49  ;;  %v7831_v58 = vsub.f32 %v9064_v4, %v3156_v47  ;;  %v3411_v49 = vmul.f32 %v7820_v61, %v7820_v61  ;;  %v9069_v4 = vld [vmem:[#allocation70_spill] sm:$0xff] }
 0x403   : > { %4523 = vst [vmem:[%s7519_s13 + $0x80] sm:$0xff] %v4395_v37  ;;  %v4396_v14 = vadd.f32 %v7497_v43, %v4264_v7  ;;  %v3757_v40 = vmul.f32 0.0078125, %v3528_v24  ;;  %3597 = vadd.xlane.f32.xlu1 %v3408_v54  ;;  %v9067_v24 = vld [vmem:[#allocation29_spill] sm:$0xff] }
 0x404   : > { %v5559_v48 = vpop.eup %5558  ;;  %v3530_v6 = vpop.xlane.xlu1 %3529  ;;  %9065 = vst [vmem:[#allocation19_spill] sm:$0xff] %v7831_v58  ;;  %v7836_v11 = vsub.f32 %v9067_v24, %v3161_v33  ;;  %v9072_v33 = vld [vmem:[#allocation98_spill] sm:$0xff] }
 0x405   : > { %4524 = vst [vmem:[%s7519_s13 + $0x88] sm:$0xff] %v4396_v14  ;;  %v4137_v37 = vmul.f32 %v5559_v48, %v9066_v28  ;;  %v3885_v19 = vadd.f32 1e-05, %v3757_v40  ;;  %v3758_v7 = vmul.f32 0.0078125, %v3530_v6  ;;  %3607 = vadd.xlane.f32.xlu0 %v3413_v17  ;;  %v9070_v17 = vld [vmem:[#allocation30_spill] sm:$0xff]  ;;  %v3160_v6 = vmul.f32 0.0078125, %v9072_v33 }
 0x406   : > { %v5561_v54 = vpop.eup %5560  ;;  %9068 = vst [vmem:[#allocation20_spill] sm:$0xff] %v7836_v11  ;;  %v7839_v57 = vpop.xlane.xlu0 %3027  ;;  %v7846_v48 = vsub.f32 %v9070_v17, %v3162_v60 }
 0x407   : > { %v4269_v47 = vmul.f32 %v7484_v5, %v4137_v37  ;;  %v4138_v14 = vmul.f32 %v5561_v54, %v9069_v4  ;;  %5566 = vrsqrt.f32 %v3885_v19  ;;  %v3886_v40 = vadd.f32 1e-05, %v3758_v7  ;;  %3609 = vadd.xlane.f32.xlu1 %v3414_v13  ;;  %v9073_v19 = vld [vmem:[#allocation31_spill] sm:$0xff]  ;;  %v9074_v13 = vld [vmem:[#allocation101_spill] sm:$0xff] }
 0x408   : > { %9071 = vst [vmem:[#allocation60_spill] sm:$0xff] %v7846_v48  ;;  %v7849_v28 = vpop.xlane.xlu1 %3029  ;;  %v3412_v37 = vmul.f32 %v7831_v58, %v7831_v58  ;;  %v7856_v7 = vsub.f32 %v9073_v19, %v3159_v2  ;;  %v3165_v60 = vmul.f32 0.0078125, %v9074_v13  ;;  %v3418_v2 = vmul.f32 %v7846_v48, %v7846_v48  ;;  %v9076_v19 = vld [vmem:[#allocation102_spill] sm:$0xff]  ;;  %v9077_v13 = vld [vmem:[#allocation73_spill] sm:$0xff] }
 0x409   : > { %v4401_v52 = vadd.f32 %v7497_v43, %v4269_v47  ;;  %v4270_v24 = vmul.f32 %v7484_v5, %v4138_v14  ;;  %5568 = vrsqrt.f32 %v3886_v40  ;;  %3603 = vadd.xlane.f32.xlu0 %v3411_v49  ;;  %v3417_v47 = vmul.f32 %v7836_v11, %v7836_v11  ;;  %v9075_v40 = vld [vmem:[#allocation32_spill] sm:$0xff] }
 0x40a   : > { %v3524_v54 = vpop.xlane.xlu0 %3523  ;;  %v7864_v49 = vsub.f32 %v9075_v40, %v3160_v6  ;;  %v3166_v58 = vmul.f32 0.0078125, %v9076_v19  ;;  %v3163_v11 = vmul.f32 0.0078125, %v7436_v46  ;;  %v3415_v40 = vmul.f32 %v7856_v7, %v7856_v7  ;;  %v9080_v19 = vld [vmem:[#allocation74_spill] sm:$0xff] }
 0x40b   : > { %4529 = vst [vmem:[%s7519_s13 + $0xb0] sm:$0xff] %v4401_v52  ;;  %v4402_v4 = vadd.f32 %v7497_v43, %v4270_v24  ;;  %v3755_v17 = vmul.f32 0.0078125, %v3524_v54  ;;  %3605 = vadd.xlane.f32.xlu1 %v3412_v37  ;;  %v9078_v54 = vld [vmem:[#allocation33_spill] sm:$0xff] }
 0x40c   : > { %v5563_v14 = vpop.eup %5562  ;;  %v3526_v33 = vpop.xlane.xlu1 %3525  ;;  %v7872_v50 = vsub.f32 %v9078_v54, %v3165_v60  ;;  %v3416_v46 = vmul.f32 %v7864_v49, %v7864_v49  ;;  %v9081_v60 = vld [vmem:[#allocation34_spill] sm:$0xff] }
 0x40d   : > { %4530 = vst [vmem:[%s7519_s13 + $0xb8] sm:$0xff] %v4402_v4  ;;  %v4135_v52 = vmul.f32 %v5563_v14, %v9077_v13  ;;  %v3883_v61 = vadd.f32 1e-05, %v3755_v17  ;;  %v3756_v24 = vmul.f32 0.0078125, %v3526_v33  ;;  %3615 = vadd.xlane.f32.xlu0 %v3417_v47  ;;  %v3164_v47 = vmul.f32 0.0078125, %v7442_v1 }
 0x40e   : > { %v5565_v37 = vpop.eup %5564  ;;  %9079 = vst [vmem:[#allocation21_spill] sm:$0xff] %v7872_v50  ;;  %v7875_v6 = vpop.xlane.xlu0 %3039  ;;  %v7887_v33 = vsub.f32 %v9081_v60, %v3166_v58  ;;  %v3169_v1 = vmul.f32 0.0078125, %v7461_v34  ;;  %v3421_v58 = vmul.f32 %v7872_v50, %v7872_v50  ;;  %v3167_v50 = vmul.f32 0.0078125, %v7499_v16 }
 0x40f   : > { %v4267_v48 = vmul.f32 %v7484_v5, %v4135_v52  ;;  %v4136_v4 = vmul.f32 %v5565_v37, %v9080_v19  ;;  %5570 = vrsqrt.f32 %v3883_v61  ;;  %v3884_v17 = vadd.f32 1e-05, %v3756_v24  ;;  %3617 = vadd.xlane.f32.xlu1 %v3418_v2  ;;  %v9082_v61 = vld [vmem:[#allocation35_spill] sm:$0xff]  ;;  %v9083_v19 = vld [vmem:[#allocation36_spill] sm:$0xff] }
 0x410   : > { %v7882_v14 = vpop.xlane.xlu1 %3041  ;;  %v7892_v24 = vsub.f32 %v9082_v61, %v3163_v11  ;;  %v7900_v60 = vsub.f32 %v9083_v19, %v3164_v47  ;;  %v9085_v11 = vld [vmem:[#allocation76_spill] sm:$0xff]  ;;  %v9089_v19 = vld [vmem:[#allocation39_spill] sm:$0xff] }
 0x411   : > { %v4399_v13 = vadd.f32 %v7497_v43, %v4267_v48  ;;  %v4268_v52 = vmul.f32 %v7484_v5, %v4136_v4  ;;  %5572 = vrsqrt.f32 %v3884_v17  ;;  %3611 = vadd.xlane.f32.xlu0 %v3415_v40  ;;  %v3170_v40 = vmul.f32 0.0078125, %v7467_v15 }
 0x412   : > { %v3536_v2 = vpop.xlane.xlu0 %3535  ;;  %9084 = vst [vmem:[#allocation62_spill] sm:$0xff] %v7900_v60  ;;  %v3419_v15 = vmul.f32 %v7892_v24, %v7892_v24  ;;  %v3420_v16 = vmul.f32 %v7900_v60, %v7900_v60 }
 0x413   : > { %4527 = vst [vmem:[%s7519_s13 + $0xa0] sm:$0xff] %v4399_v13  ;;  %v4400_v37 = vadd.f32 %v7497_v43, %v4268_v52  ;;  %v3761_v54 = vmul.f32 0.0078125, %v3536_v2  ;;  %3613 = vadd.xlane.f32.xlu1 %v3416_v46  ;;  %v3422_v13 = vmul.f32 %v7887_v33, %v7887_v33  ;;  %v9086_v52 = vld [vmem:[#allocation38_spill] sm:$0xff] }
 0x414   : > { %v5567_v48 = vpop.eup %5566  ;;  %v3538_v4 = vpop.xlane.xlu1 %3537  ;;  %v7908_v2 = vsub.f32 %v9086_v52, %v3169_v1 }
 0x415   : > { %4528 = vst [vmem:[%s7519_s13 + $0xa8] sm:$0xff] %v4400_v37  ;;  %v4141_v17 = vmul.f32 %v5567_v48, %v9085_v11  ;;  %v3889_v34 = vadd.f32 1e-05, %v3761_v54  ;;  %v3762_v61 = vmul.f32 0.0078125, %v3538_v4  ;;  %3623 = vadd.xlane.f32.xlu0 %v3421_v58  ;;  %v9088_v48 = vld [vmem:[#allocation78_spill] sm:$0xff]  ;;  %v7918_v4 = vsub.f32 %v9089_v19, %v3170_v40 }
 0x416   : > { %v5569_v46 = vpop.eup %5568  ;;  %9087 = vst [vmem:[#allocation22_spill] sm:$0xff] %v7908_v2  ;;  %v7911_v47 = vpop.xlane.xlu0 %3035  ;;  %v3168_v11 = vmul.f32 0.0078125, %v7507_v12  ;;  %v3173_v40 = vmul.f32 0.0078125, %v7533_v35  ;;  %v3425_v12 = vmul.f32 %v7908_v2, %v7908_v2  ;;  %v9093_v35 = vld [vmem:[#allocation81_spill] sm:$0xff]  ;;  %v3171_v2 = vmul.f32 0.0078125, %v7565_v55 }
 0x417   : > { %v4273_v37 = vmul.f32 %v7484_v5, %v4141_v17  ;;  %v4142_v54 = vmul.f32 %v5569_v46, %v9088_v48  ;;  %5574 = vrsqrt.f32 %v3889_v34  ;;  %v3890_v58 = vadd.f32 1e-05, %v3762_v61  ;;  %3625 = vadd.xlane.f32.xlu1 %v3422_v13  ;;  %9090 = vst [vmem:[#allocation23_spill] sm:$0xff] %v7918_v4  ;;  %v9091_v34 = vld [vmem:[#allocation41_spill] sm:$0xff] }
 0x418   : > { %v7920_v1 = vpop.xlane.xlu1 %3037  ;;  %v7928_v61 = vsub.f32 %v9091_v34, %v3167_v50  ;;  %v9092_v50 = vld [vmem:[#allocation43_spill] sm:$0xff] }
 0x419   : > { %v4405_v52 = vadd.f32 %v7497_v43, %v4273_v37  ;;  %v4274_v17 = vmul.f32 %v7484_v5, %v4142_v54  ;;  %5576 = vrsqrt.f32 %v3890_v58  ;;  %3619 = vadd.xlane.f32.xlu0 %v3419_v15  ;;  %v3174_v54 = vmul.f32 0.0078125, %v7541_v51 }
 0x41a   : > { %v3532_v13 = vpop.xlane.xlu0 %3531  ;;  %v3426_v15 = vmul.f32 %v7918_v4, %v7918_v4  ;;  %v7939_v58 = vsub.f32 %v9092_v50, %v3168_v11  ;;  %v3423_v4 = vmul.f32 %v7928_v61, %v7928_v61  ;;  %v9096_v50 = vld [vmem:[#allocation82_spill] sm:$0xff] }
 0x41b   : > { %4533 = vst [vmem:[%s7519_s13 + $0xd0] sm:$0xff] %v4405_v52  ;;  %v4406_v46 = vadd.f32 %v7497_v43, %v4274_v17  ;;  %v3759_v48 = vmul.f32 0.0078125, %v3532_v13  ;;  %3621 = vadd.xlane.f32.xlu1 %v3420_v16  ;;  %v9094_v13 = vld [vmem:[#allocation45_spill] sm:$0xff] }
 0x41c   : > { %v5571_v37 = vpop.eup %5570  ;;  %v3534_v19 = vpop.xlane.xlu1 %3533  ;;  %v7944_v60 = vsub.f32 %v9094_v13, %v3173_v40  ;;  %v3172_v40 = vmul.f32 0.0078125, %v7573_v0 }
 0x41d   : > { %4534 = vst [vmem:[%s7519_s13 + $0xd8] sm:$0xff] %v4406_v46  ;;  %v4139_v52 = vmul.f32 %v5571_v37, %v9093_v35  ;;  %v3887_v34 = vadd.f32 1e-05, %v3759_v48  ;;  %v3760_v17 = vmul.f32 0.0078125, %v3534_v19  ;;  %3631 = vadd.xlane.f32.xlu0 %v3425_v12  ;;  %v9097_v12 = vld [vmem:[#allocation47_spill] sm:$0xff] }
 0x41e   : > { %v5573_v16 = vpop.eup %5572  ;;  %9095 = vst [vmem:[#allocation24_spill] sm:$0xff] %v7944_v60  ;;  %v7947_v51 = vpop.xlane.xlu0 %3047  ;;  %v7954_v37 = vsub.f32 %v9097_v12, %v3174_v54  ;;  %v3177_v54 = vmul.f32 0.0078125, %v7597_v38  ;;  %v3429_v13 = vmul.f32 %v7944_v60, %v7944_v60  ;;  %v9101_v38 = vld [vmem:[#allocation84_spill] sm:$0xff]  ;;  %v3175_v60 = vmul.f32 0.0078125, %v7629_v32 }
 0x41f   : > { %v4271_v11 = vmul.f32 %v7484_v5, %v4139_v52  ;;  %v4140_v46 = vmul.f32 %v5573_v16, %v9096_v50  ;;  %5578 = vrsqrt.f32 %v3887_v34  ;;  %v3888_v48 = vadd.f32 1e-05, %v3760_v17  ;;  %3633 = vadd.xlane.f32.xlu1 %v3426_v15  ;;  %v9099_v34 = vld [vmem:[#allocation49_spill] sm:$0xff]  ;;  %v9100_v50 = vld [vmem:[#allocation50_spill] sm:$0xff] }
 0x420   : > { %9098 = vst [vmem:[#allocation65_spill] sm:$0xff] %v7954_v37  ;;  %v7957_v19 = vpop.xlane.xlu1 %3049  ;;  %v3424_v52 = vmul.f32 %v7939_v58, %v7939_v58  ;;  %v7964_v17 = vsub.f32 %v9099_v34, %v3171_v2  ;;  %v3430_v2 = vmul.f32 %v7954_v37, %v7954_v37  ;;  %v9102_v34 = vld [vmem:[#allocation53_spill] sm:$0xff] }
 0x421   : > { %v4403_v55 = vadd.f32 %v7497_v43, %v4271_v11  ;;  %v4272_v35 = vmul.f32 %v7484_v5, %v4140_v46  ;;  %5580 = vrsqrt.f32 %v3888_v48  ;;  %3627 = vadd.xlane.f32.xlu0 %v3423_v4  ;;  %v7972_v4 = vsub.f32 %v9100_v50, %v3172_v40 }
 0x422   : > { %v3544_v15 = vpop.xlane.xlu0 %3543  ;;  %v3178_v48 = vmul.f32 0.0078125, %v7605_v29  ;;  %v3427_v50 = vmul.f32 %v7964_v17, %v7964_v17  ;;  %v9104_v29 = vld [vmem:[#allocation86_spill] sm:$0xff] }
 0x423   : > { %4531 = vst [vmem:[%s7519_s13 + $0xc0] sm:$0xff] %v4403_v55  ;;  %v4404_v0 = vadd.f32 %v7497_v43, %v4272_v35  ;;  %v3765_v16 = vmul.f32 0.0078125, %v3544_v15  ;;  %3629 = vadd.xlane.f32.xlu1 %v3424_v52  ;;  %v7980_v15 = vsub.f32 %v9102_v34, %v3177_v54  ;;  %v3428_v32 = vmul.f32 %v7972_v4, %v7972_v4  ;;  %v9105_v54 = vld [vmem:[#allocation55_spill] sm:$0xff] }
 0x424   : > { %v5575_v11 = vpop.eup %5574  ;;  %v3546_v46 = vpop.xlane.xlu1 %3545 }
 0x425   : > { %4532 = vst [vmem:[%s7519_s13 + $0xc8] sm:$0xff] %v4404_v0  ;;  %v4145_v12 = vmul.f32 %v5575_v11, %v9101_v38  ;;  %v3893_v55 = vadd.f32 1e-05, %v3765_v16  ;;  %v3766_v35 = vmul.f32 0.0078125, %v3546_v46  ;;  %3639 = vadd.xlane.f32.xlu0 %v3429_v13  ;;  %9103 = vst [vmem:[#allocation25_spill] sm:$0xff] %v7980_v15  ;;  %v3176_v13 = vmul.f32 0.0078125, %v7637_v26 }
 0x426   : > { %v5577_v52 = vpop.eup %5576  ;;  %v7983_v40 = vpop.xlane.xlu0 %3043  ;;  %v7995_v46 = vsub.f32 %v9105_v54, %v3178_v48  ;;  %v9106_v26 = vld [vmem:[#allocation56_spill] sm:$0xff] }
 0x427   : > { %v4277_v37 = vmul.f32 %v7484_v5, %v4145_v12  ;;  %v4146_v0 = vmul.f32 %v5577_v52, %v9104_v29  ;;  %5582 = vrsqrt.f32 %v3893_v55  ;;  %v3894_v16 = vadd.f32 1e-05, %v3766_v35  ;;  %3641 = vadd.xlane.f32.xlu1 %v3430_v2  ;;  %v8001_v5 = vld [vmem:[%s8733_s5 + $0x1] ss:$0 sm:$0xff] }
 0x428   : > { %v7990_v11 = vpop.xlane.xlu1 %3045  ;;  %v8005_v2 = vsub.f32 %v9106_v26, %v3175_v60  ;;  %v3181_v55 = vmul.f32 0.0078125, %v7661_v53  ;;  %v3433_v52 = vmul.f32 %v7980_v15, %v7980_v15  ;;  %v3182_v53 = vmul.f32 0.0078125, %v7669_v22  ;;  %v9110_v26 = vld [vmem:[#allocation61_spill] sm:$0xff] }
 0x429   : > { %v4409_v38 = vadd.f32 %v7497_v43, %v4277_v37  ;;  %v4278_v12 = vmul.f32 %v8001_v5, %v4146_v0  ;;  %5584 = vrsqrt.f32 %v3894_v16  ;;  %3635 = vadd.xlane.f32.xlu0 %v3427_v50  ;;  %v8012_v43 = vld [vmem:[%s8733_s5 + $0x2] ss:$0 sm:$0xff]  ;;  %v9107_v50 = vld [vmem:[#allocation59_spill] sm:$0xff]  ;;  %v3179_v15 = vmul.f32 0.0078125, %v7693_v30 }
 0x42a   : > { %v3540_v35 = vpop.xlane.xlu0 %3539  ;;  %v8018_v60 = vsub.f32 %v9107_v50, %v3176_v13  ;;  %v9109_v0 = vld [vmem:[#allocation89_spill] sm:$0xff]  ;;  %v3431_v22 = vmul.f32 %v8005_v2, %v8005_v2  ;;  %v9113_v50 = vld [vmem:[#allocation63_spill] sm:$0xff] }
 0x42b   : > { %4537 = vst [vmem:[%s7519_s13 + $0xf0] sm:$0xff] %v4409_v38  ;;  %v4410_v37 = vadd.f32 %v8012_v43, %v4278_v12  ;;  %v3763_v48 = vmul.f32 0.0078125, %v3540_v35  ;;  %3637 = vadd.xlane.f32.xlu1 %v3428_v32  ;;  %v3434_v12 = vmul.f32 %v7995_v46, %v7995_v46  ;;  %v8026_v35 = vsub.f32 %v9110_v26, %v3181_v55 }
 0x42c   : > { %v5579_v34 = vpop.eup %5578  ;;  %9108 = vst [vmem:[#allocation66_spill] sm:$0xff] %v8018_v60  ;;  %v3542_v29 = vpop.xlane.xlu1 %3541  ;;  %v3432_v30 = vmul.f32 %v8018_v60, %v8018_v60 }
 0x42d   : > { %4538 = vst [vmem:[%s7519_s13 + $0xf8] sm:$0xff] %v4410_v37  ;;  %v4143_v16 = vmul.f32 %v5579_v34, %v9109_v0  ;;  %v3891_v54 = vadd.f32 1e-05, %v3763_v48  ;;  %v3764_v38 = vmul.f32 0.0078125, %v3542_v29  ;;  %3647 = vadd.xlane.f32.xlu0 %v3433_v52  ;;  %9111 = vst [vmem:[#allocation26_spill] sm:$0xff] %v8026_v35  ;;  %v9112_v34 = vld [vmem:[#allocation90_spill] sm:$0xff]  ;;  %v8036_v29 = vsub.f32 %v9113_v50, %v3182_v53 }
 0x42e   : > { %v5581_v32 = vpop.eup %5580  ;;  %v8029_v13 = vpop.xlane.xlu0 %3055  ;;  %v3180_v0 = vmul.f32 0.0078125, %v7701_v62  ;;  %v3185_v53 = vmul.f32 0.0078125, %v7730_v36  ;;  %v3437_v62 = vmul.f32 %v8026_v35, %v8026_v35  ;;  %v9117_v36 = vld [vmem:[#allocation92_spill] sm:$0xff]  ;;  %v3183_v35 = vmul.f32 0.0078125, %v7767_v31 }
 0x42f   : > { %v4275_v37 = vmul.f32 %v8001_v5, %v4143_v16  ;;  %v4144_v48 = vmul.f32 %v5581_v32, %v9112_v34  ;;  %5586 = vrsqrt.f32 %v3891_v54  ;;  %v3892_v52 = vadd.f32 1e-05, %v3764_v38  ;;  %3649 = vadd.xlane.f32.xlu1 %v3434_v12  ;;  %9114 = vst [vmem:[#allocation27_spill] sm:$0xff] %v8036_v29  ;;  %v9115_v54 = vld [vmem:[#allocation64_spill] sm:$0xff] }
 0x430   : > { %v8038_v55 = vpop.xlane.xlu1 %3057  ;;  %v8046_v38 = vsub.f32 %v9115_v54, %v3179_v15  ;;  %v9116_v15 = vld [vmem:[#allocation67_spill] sm:$0xff] }
 0x431   : > { %v4407_v26 = vadd.f32 %v8012_v43, %v4275_v37  ;;  %v4276_v16 = vmul.f32 %v8001_v5, %v4144_v48  ;;  %5588 = vrsqrt.f32 %v3892_v52  ;;  %3643 = vadd.xlane.f32.xlu0 %v3431_v22  ;;  %v3186_v48 = vmul.f32 0.0078125, %v7741_v8 }
 0x432   : > { %v3552_v12 = vpop.xlane.xlu0 %3551  ;;  %v3438_v22 = vmul.f32 %v8036_v29, %v8036_v29  ;;  %v8057_v52 = vsub.f32 %v9116_v15, %v3180_v0  ;;  %v3435_v29 = vmul.f32 %v8046_v38, %v8046_v38  ;;  %v9120_v15 = vld [vmem:[#allocation94_spill] sm:$0xff] }
 0x433   : > { %4535 = vst [vmem:[%s7519_s13 + $0xe0] sm:$0xff] %v4407_v26  ;;  %v4408_v32 = vadd.f32 %v8012_v43, %v4276_v16  ;;  %v3769_v34 = vmul.f32 0.0078125, %v3552_v12  ;;  %3645 = vadd.xlane.f32.xlu1 %v3432_v30  ;;  %v9118_v12 = vld [vmem:[#allocation69_spill] sm:$0xff] }
 0x434   : > { %v5583_v37 = vpop.eup %5582  ;;  %v3554_v50 = vpop.xlane.xlu1 %3553  ;;  %v8062_v60 = vsub.f32 %v9118_v12, %v3185_v53  ;;  %v3184_v53 = vmul.f32 0.0078125, %v7774_v41 }
 0x435   : > { %4536 = vst [vmem:[%s7519_s13 + $0xe8] sm:$0xff] %v4408_v32  ;;  %v4149_v26 = vmul.f32 %v5583_v37, %v9117_v36  ;;  %v3897_v54 = vadd.f32 1e-05, %v3769_v34  ;;  %v3770_v16 = vmul.f32 0.0078125, %v3554_v50  ;;  %3655 = vadd.xlane.f32.xlu0 %v3437_v62  ;;  %v9121_v62 = vld [vmem:[#allocation71_spill] sm:$0xff] }
 0x436   : > { %v5585_v30 = vpop.eup %5584  ;;  %9119 = vst [vmem:[#allocation28_spill] sm:$0xff] %v8062_v60  ;;  %v8065_v8 = vpop.xlane.xlu0 %3051  ;;  %v8072_v37 = vsub.f32 %v9121_v62, %v3186_v48  ;;  %v3189_v48 = vmul.f32 0.0078125, %v7803_v59  ;;  %v3441_v12 = vmul.f32 %v8062_v60, %v8062_v60  ;;  %v9125_v59 = vld [vmem:[#allocation97_spill] sm:$0xff]  ;;  %v3187_v60 = vmul.f32 0.0078125, %v7839_v57 }
 0x437   : > { %v4281_v0 = vmul.f32 %v8001_v5, %v4149_v26  ;;  %v4150_v32 = vmul.f32 %v5585_v30, %v9120_v15  ;;  %5590 = vrsqrt.f32 %v3897_v54  ;;  %v3898_v34 = vadd.f32 1e-05, %v3770_v16  ;;  %3657 = vadd.xlane.f32.xlu1 %v3438_v22  ;;  %v9123_v54 = vld [vmem:[#allocation72_spill] sm:$0xff]  ;;  %v9124_v15 = vld [vmem:[#allocation75_spill] sm:$0xff] }
 0x438   : > { %9122 = vst [vmem:[#allocation68_spill] sm:$0xff] %v8072_v37  ;;  %v8075_v50 = vpop.xlane.xlu1 %3053  ;;  %v3436_v26 = vmul.f32 %v8057_v52, %v8057_v52  ;;  %v8082_v16 = vsub.f32 %v9123_v54, %v3183_v35  ;;  %v3442_v35 = vmul.f32 %v8072_v37, %v8072_v37  ;;  %v9126_v54 = vld [vmem:[#allocation77_spill] sm:$0xff] }
 0x439   : > { %v4413_v31 = vadd.f32 %v8012_v43, %v4281_v0  ;;  %v4282_v36 = vmul.f32 %v8001_v5, %v4150_v32  ;;  %5592 = vrsqrt.f32 %v3898_v34  ;;  %3651 = vadd.xlane.f32.xlu0 %v3435_v29  ;;  %v8090_v29 = vsub.f32 %v9124_v15, %v3184_v53 }
 0x43a   : > { %v3548_v22 = vpop.xlane.xlu0 %3547  ;;  %v3190_v34 = vmul.f32 0.0078125, %v7812_v18  ;;  %v3439_v15 = vmul.f32 %v8082_v16, %v8082_v16  ;;  %v9127_v18 = vld [vmem:[#allocation99_spill] sm:$0xff] }
 0x43b   : > { %4541 = vst [vmem:[%s7519_s13 + $0x110] sm:$0xff] %v4413_v31  ;;  %v4414_v41 = vadd.f32 %v8012_v43, %v4282_v36  ;;  %v3767_v30 = vmul.f32 0.0078125, %v3548_v22  ;;  %3653 = vadd.xlane.f32.xlu1 %v3436_v26  ;;  %v8098_v22 = vsub.f32 %v9126_v54, %v3189_v48  ;;  %v3440_v57 = vmul.f32 %v8090_v29, %v8090_v29  ;;  %v9128_v48 = vld [vmem:[#allocation79_spill] sm:$0xff] }
 0x43c   : > { %v5587_v0 = vpop.eup %5586  ;;  %v3550_v32 = vpop.xlane.xlu1 %3549 }
 0x43d   : > { %4542 = vst [vmem:[%s7519_s13 + $0x118] sm:$0xff] %v4414_v41  ;;  %v4147_v62 = vmul.f32 %v5587_v0, %v9125_v59  ;;  %v3895_v31 = vadd.f32 1e-05, %v3767_v30  ;;  %v3768_v36 = vmul.f32 0.0078125, %v3550_v32  ;;  %3663 = vadd.xlane.f32.xlu0 %v3441_v12  ;;  %v3188_v12 = vmul.f32 0.0078125, %v7849_v28 }
 0x43e   : > { %v5589_v26 = vpop.eup %5588  ;;  %v8101_v53 = vpop.xlane.xlu0 %3063  ;;  %v8113_v32 = vsub.f32 %v9128_v48, %v3190_v34  ;;  %v3193_v28 = vmul.f32 0.0078125, %v7875_v6  ;;  %v3445_v34 = vmul.f32 %v8098_v22, %v8098_v22 }
 0x43f   : > { %v4279_v37 = vmul.f32 %v8001_v5, %v4147_v62  ;;  %v4148_v41 = vmul.f32 %v5589_v26, %v9127_v18  ;;  %5594 = vrsqrt.f32 %v3895_v31  ;;  %v3896_v30 = vadd.f32 1e-05, %v3768_v36  ;;  %3665 = vadd.xlane.f32.xlu1 %v3442_v35  ;;  %v9129_v31 = vld [vmem:[#allocation80_spill] sm:$0xff]  ;;  %v9130_v18 = vld [vmem:[#allocation83_spill] sm:$0xff] }
 0x440   : > { %v8108_v0 = vpop.xlane.xlu1 %3065  ;;  %v8118_v36 = vsub.f32 %v9129_v31, %v3187_v60  ;;  %v8126_v48 = vsub.f32 %v9130_v18, %v3188_v12  ;;  %v3192_v18 = vmul.f32 0.0078125, %v7920_v1 }
 0x441   : > { %v4411_v59 = vadd.f32 %v8012_v43, %v4279_v37  ;;  %v4280_v62 = vmul.f32 %v8001_v5, %v4148_v41  ;;  %5596 = vrsqrt.f32 %v3896_v30  ;;  %3659 = vadd.xlane.f32.xlu0 %v3439_v15  ;;  %v3194_v15 = vmul.f32 0.0078125, %v7882_v14 }
 0x442   : > { %v3560_v35 = vpop.xlane.xlu0 %3559  ;;  %v3443_v14 = vmul.f32 %v8118_v36, %v8118_v36 }
 0x443   : > { %4539 = vst [vmem:[%s7519_s13 + $0x100] sm:$0xff] %v4411_v59  ;;  %v4412_v26 = vadd.f32 %v8012_v43, %v4280_v62  ;;  %v3773_v54 = vmul.f32 0.0078125, %v3560_v35  ;;  %3661 = vadd.xlane.f32.xlu1 %v3440_v57  ;;  %v3446_v59 = vmul.f32 %v8113_v32, %v8113_v32  ;;  %v9131_v62 = vld [vmem:[#allocation85_spill] sm:$0xff]  ;;  %v3191_v35 = vmul.f32 0.0078125, %v7911_v47 }
 0x444   : > { %v5591_v37 = vpop.eup %5590  ;;  %v3562_v41 = vpop.xlane.xlu1 %3561  ;;  %v8134_v31 = vsub.f32 %v9131_v62, %v3193_v28  ;;  %v3444_v47 = vmul.f32 %v8126_v48, %v8126_v48 }
 0x445   : > { %4540 = vst [vmem:[%s7519_s13 + $0x108] sm:$0xff] %v4412_v26  ;;  %v4153_v60 = vmul.f32 %v5591_v37, %v7424_v45  ;;  %v3901_v6 = vadd.f32 1e-05, %v3773_v54  ;;  %v3774_v30 = vmul.f32 0.0078125, %v3562_v41  ;;  %3671 = vadd.xlane.f32.xlu0 %v3445_v34  ;;  %v9132_v34 = vld [vmem:[#allocation87_spill] sm:$0xff] }
 0x446   : > { %v5593_v57 = vpop.eup %5592  ;;  %v8137_v12 = vpop.xlane.xlu0 %3059  ;;  %v8144_v37 = vsub.f32 %v9132_v34, %v3194_v15  ;;  %v3197_v15 = vmul.f32 0.0078125, %v7947_v51  ;;  %v3449_v1 = vmul.f32 %v8134_v31, %v8134_v31 }
 0x447   : > { %v4285_v26 = vmul.f32 %v8001_v5, %v4153_v60  ;;  %v4154_v45 = vmul.f32 %v5593_v57, %v7430_v56  ;;  %5598 = vrsqrt.f32 %v3901_v6  ;;  %v3902_v54 = vadd.f32 1e-05, %v3774_v30  ;;  %3673 = vadd.xlane.f32.xlu1 %v3446_v59  ;;  %v9134_v56 = vld [vmem:[#allocation88_spill] sm:$0xff] }
 0x448   : > { %9133 = vst [vmem:[#allocation29_spill] sm:$0xff] %v8144_v37  ;;  %v8146_v28 = vpop.xlane.xlu1 %3061  ;;  %v8154_v6 = vsub.f32 %v9134_v56, %v3191_v35  ;;  %v9135_v35 = vld [vmem:[#allocation91_spill] sm:$0xff] }
 0x449   : > { %v4417_v41 = vadd.f32 %v8012_v43, %v4285_v26  ;;  %v4286_v60 = vmul.f32 %v8001_v5, %v4154_v45  ;;  %5600 = vrsqrt.f32 %v3902_v54  ;;  %3667 = vadd.xlane.f32.xlu0 %v3443_v14  ;;  %v3198_v26 = vmul.f32 0.0078125, %v7957_v19 }
 0x44a   : > { %v3556_v30 = vpop.xlane.xlu0 %3555  ;;  %v3450_v14 = vmul.f32 %v8144_v37, %v8144_v37  ;;  %v8165_v54 = vsub.f32 %v9135_v35, %v3192_v18  ;;  %v3447_v37 = vmul.f32 %v8154_v6, %v8154_v6  ;;  %v9139_v35 = vld [vmem:[#allocation96_spill] sm:$0xff] }
 0x44b   : > { %4545 = vst [vmem:[%s7519_s13 + $0x130] sm:$0xff] %v4417_v41  ;;  %v4418_v59 = vadd.f32 %v8012_v43, %v4286_v60  ;;  %v3771_v57 = vmul.f32 0.0078125, %v3556_v30  ;;  %3669 = vadd.xlane.f32.xlu1 %v3444_v47  ;;  %v9136_v60 = vld [vmem:[#allocation93_spill] sm:$0xff]  ;;  %v3195_v30 = vmul.f32 0.0078125, %v7983_v40 }
 0x44c   : > { %v5595_v62 = vpop.eup %5594  ;;  %v3558_v45 = vpop.xlane.xlu1 %3557  ;;  %v8170_v56 = vsub.f32 %v9136_v60, %v3197_v15  ;;  %v3196_v15 = vmul.f32 0.0078125, %v7990_v11  ;;  %v9140_v60 = vld [vmem:[#allocation100_spill] sm:$0xff] }
 0x44d   : > { %4546 = vst [vmem:[%s7519_s13 + $0x138] sm:$0xff] %v4418_v59  ;;  %v4151_v51 = vmul.f32 %v5595_v62, %v7451_v23  ;;  %v3899_v34 = vadd.f32 1e-05, %v3771_v57  ;;  %v3772_v41 = vmul.f32 0.0078125, %v3558_v45  ;;  %3679 = vadd.xlane.f32.xlu0 %v3449_v1  ;;  %v9137_v57 = vld [vmem:[#allocation95_spill] sm:$0xff] }
 0x44e   : > { %v5597_v47 = vpop.eup %5596  ;;  %v8173_v19 = vpop.xlane.xlu0 %3071  ;;  %v8180_v1 = vsub.f32 %v9137_v57, %v3198_v26  ;;  %v3201_v26 = vmul.f32 0.0078125, %v8029_v13  ;;  %v9141_v13 = vld [vmem:[#allocation107_spill] sm:$0xff] }
 0x44f   : > { %v4283_v18 = vmul.f32 %v8001_v5, %v4151_v51  ;;  %v4152_v59 = vmul.f32 %v5597_v47, %v7454_v27  ;;  %5602 = vrsqrt.f32 %v3899_v34  ;;  %v3900_v23 = vadd.f32 1e-05, %v3772_v41  ;;  %3681 = vadd.xlane.f32.xlu1 %v3450_v14 }
 0x450   : > { %9138 = vst [vmem:[#allocation70_spill] sm:$0xff] %v8180_v1  ;;  %v8183_v62 = vpop.xlane.xlu1 %3073  ;;  %v3448_v27 = vmul.f32 %v8165_v54, %v8165_v54  ;;  %v8190_v51 = vsub.f32 %v9139_v35, %v3195_v30  ;;  %v3453_v41 = vmul.f32 %v8170_v56, %v8170_v56  ;;  %v3454_v30 = vmul.f32 %v8180_v1, %v8180_v1 }
 0x451   : > { %v4415_v40 = vadd.f32 %v8012_v43, %v4283_v18  ;;  %v4284_v45 = vmul.f32 %v8001_v5, %v4152_v59  ;;  %5604 = vrsqrt.f32 %v3900_v23  ;;  %3675 = vadd.xlane.f32.xlu0 %v3447_v37  ;;  %v8198_v37 = vsub.f32 %v9140_v60, %v3196_v15 }
 0x452   : > { %v3568_v14 = vpop.xlane.xlu0 %3567  ;;  %v3202_v59 = vmul.f32 0.0078125, %v8038_v55  ;;  %v3451_v60 = vmul.f32 %v8190_v51, %v8190_v51 }
 0x453   : > { %4543 = vst [vmem:[%s7519_s13 + $0x120] sm:$0xff] %v4415_v40  ;;  %v4416_v11 = vadd.f32 %v8012_v43, %v4284_v45  ;;  %v3777_v34 = vmul.f32 0.0078125, %v3568_v14  ;;  %3677 = vadd.xlane.f32.xlu1 %v3448_v27  ;;  %v9142_v27 = vld [vmem:[#allocation103_spill] sm:$0xff]  ;;  %v3199_v14 = vmul.f32 0.0078125, %v8065_v8  ;;  %v3452_v8 = vmul.f32 %v8198_v37, %v8198_v37 }
 0x454   : > { %v5599_v47 = vpop.eup %5598  ;;  %v3570_v18 = vpop.xlane.xlu1 %3569  ;;  %v8206_v35 = vsub.f32 %v9142_v27, %v3201_v26  ;;  %v9143_v26 = vld [vmem:[#allocation104_spill] sm:$0xff] }
 0x455   : > { %4544 = vst [vmem:[%s7519_s13 + $0x128] sm:$0xff] %v4416_v11  ;;  %v4157_v23 = vmul.f32 %v5599_v47, %v9141_v13  ;;  %v3905_v57 = vadd.f32 1e-05, %v3777_v34  ;;  %v3778_v40 = vmul.f32 0.0078125, %v3570_v18  ;;  %3687 = vadd.xlane.f32.xlu0 %v3453_v41  ;;  %v3200_v34 = vmul.f32 0.0078125, %v8075_v50 }
 0x456   : > { %v5601_v45 = vpop.eup %5600  ;;  %v8209_v15 = vpop.xlane.xlu0 %3067  ;;  %v8221_v47 = vsub.f32 %v9143_v26, %v3202_v59  ;;  %v3205_v50 = vmul.f32 0.0078125, %v8101_v53  ;;  %v3457_v59 = vmul.f32 %v8206_v35, %v8206_v35 }
 0x457   : > { %v4289_v1 = vmul.f32 %v8001_v5, %v4157_v23  ;;  %v4158_v55 = vmul.f32 %v5601_v45, %v7479_v10  ;;  %5606 = vrsqrt.f32 %v3905_v57  ;;  %v3906_v11 = vadd.f32 1e-05, %v3778_v40  ;;  %3689 = vadd.xlane.f32.xlu1 %v3454_v30  ;;  %v9144_v10 = vld [vmem:[#allocation105_spill] sm:$0xff]  ;;  %v9145_v45 = vld [vmem:[#allocation106_spill] sm:$0xff] }
 0x458   : > { %v8216_v41 = vpop.xlane.xlu1 %3069  ;;  %v8226_v23 = vsub.f32 %v9144_v10, %v3199_v14  ;;  %v8234_v27 = vsub.f32 %v9145_v45, %v3200_v34  ;;  %v3458_v26 = vmul.f32 %v8221_v47, %v8221_v47  ;;  %v3203_v10 = vmul.f32 0.0078125, %v8137_v12 }
 0x459   : > { %v4421_v18 = vadd.f32 %v8012_v43, %v4289_v1  ;;  %v4290_v13 = vmul.f32 %v8001_v5, %v4158_v55  ;;  %5608 = vrsqrt.f32 %v3906_v11  ;;  %3683 = vadd.xlane.f32.xlu0 %v3451_v60  ;;  %v3206_v60 = vmul.f32 0.0078125, %v8108_v0 }
 0x45a   : > { %v3564_v30 = vpop.xlane.xlu0 %3563  ;;  %9146 = vst [vmem:[#allocation30_spill] sm:$0xff] %v8234_v27  ;;  %v3455_v0 = vmul.f32 %v8226_v23, %v8226_v23  ;;  %v3204_v12 = vmul.f32 0.0078125, %v8146_v28 }
 0x45b   : > { %4549 = vst [vmem:[%s7519_s13 + $0x150] sm:$0xff] %v4421_v18  ;;  %v4422_v57 = vadd.f32 %v8012_v43, %v4290_v13  ;;  %v3775_v40 = vmul.f32 0.0078125, %v3564_v30  ;;  %3685 = vadd.xlane.f32.xlu1 %v3452_v8  ;;  %v9147_v18 = vld [vmem:[#allocation108_spill] sm:$0xff] }
 0x45c   : > { %v5603_v1 = vpop.eup %5602  ;;  %v3566_v55 = vpop.xlane.xlu1 %3565  ;;  %v8242_v13 = vsub.f32 %v9147_v18, %v3205_v50  ;;  %v3456_v50 = vmul.f32 %v8234_v27, %v8234_v27 }
 0x45d   : > { %4550 = vst [vmem:[%s7519_s13 + $0x158] sm:$0xff] %v4422_v57  ;;  %v4155_v14 = vmul.f32 %v5603_v1, %v7514_v20  ;;  %v3903_v53 = vadd.f32 1e-05, %v3775_v40  ;;  %v3776_v11 = vmul.f32 0.0078125, %v3566_v55  ;;  %3695 = vadd.xlane.f32.xlu0 %v3457_v59  ;;  %v9149_v57 = vld [vmem:[#allocation111_spill] sm:$0xff]  ;;  %v9150_v59 = vld [vmem:[#allocation109_spill] sm:$0xff] }
 0x45e   : > { %v5605_v8 = vpop.eup %5604  ;;  %9148 = vst [vmem:[#allocation98_spill] sm:$0xff] %v8242_v13  ;;  %v3080_v34 = vpop.xlane.xlu0 %3079  ;;  %v8250_v1 = vsub.f32 %v9150_v59, %v3206_v60  ;;  %v3461_v28 = vmul.f32 %v8242_v13, %v8242_v13  ;;  %v3207_v13 = vmul.f32 0.0078125, %v8209_v15 }
 0x45f   : > { %v4287_v30 = vmul.f32 %v8001_v5, %v4155_v14  ;;  %v4156_v20 = vmul.f32 %v5605_v8, %v9149_v57  ;;  %5610 = vrsqrt.f32 %v3903_v53  ;;  %v3904_v40 = vadd.f32 1e-05, %v3776_v11  ;;  %3697 = vadd.xlane.f32.xlu1 %v3458_v26  ;;  %v9152_v14 = vld [vmem:[#allocation110_spill] sm:$0xff] }
 0x460   : > { %9151 = vst [vmem:[#allocation31_spill] sm:$0xff] %v8250_v1  ;;  %v3082_v45 = vpop.xlane.xlu1 %3081  ;;  %v8258_v53 = vsub.f32 %v9152_v14, %v3203_v10  ;;  %v3209_v11 = vmul.f32 0.0078125, %v8173_v19  ;;  %v3210_v57 = vmul.f32 0.0078125, %v8183_v62  ;;  %v9153_v10 = vld [vmem:[#allocation112_spill] sm:$0xff]  ;;  %v9154_v19 = vld [vmem:[#allocation37_spill] sm:$0xff] }
 0x461   : > { %v4419_v55 = vadd.f32 %v8012_v43, %v4287_v30  ;;  %v4288_v18 = vmul.f32 %v8001_v5, %v4156_v20  ;;  %5612 = vrsqrt.f32 %v3904_v40  ;;  %3691 = vadd.xlane.f32.xlu0 %v3455_v0  ;;  %v3462_v0 = vmul.f32 %v8250_v1, %v8250_v1  ;;  %v9155_v14 = vld [vmem:[#allocation5_spill] sm:$0xff] }
 0x462   : > { %v3576_v60 = vpop.xlane.xlu0 %3575  ;;  %v8269_v40 = vsub.f32 %v9153_v10, %v3204_v12  ;;  %v3459_v27 = vmul.f32 %v8258_v53, %v8258_v53  ;;  %v9156_v12 = vld [vmem:[#allocation6_spill] sm:$0xff] }
 0x463   : > { %4547 = vst [vmem:[%s7519_s13 + $0x140] sm:$0xff] %v4419_v55  ;;  %v4420_v26 = vadd.f32 %v8012_v43, %v4288_v18  ;;  %v3781_v8 = vmul.f32 0.0078125, %v3576_v60  ;;  %3693 = vadd.xlane.f32.xlu1 %v3456_v50  ;;  %v8274_v60 = vsub.f32 %v9155_v14, %v3209_v11  ;;  %v3208_v11 = vmul.f32 0.0078125, %v8216_v41  ;;  %v9160_v14 = vld [vmem:[#allocation114_spill] sm:$0xff] }
 0x464   : > { %v5607_v30 = vpop.eup %5606  ;;  %v3578_v20 = vpop.xlane.xlu1 %3577 }
 0x465   : > { %4548 = vst [vmem:[%s7519_s13 + $0x148] sm:$0xff] %v4420_v26  ;;  %v4161_v59 = vmul.f32 %v5607_v30, %v9154_v19  ;;  %v3909_v55 = vadd.f32 1e-05, %v3781_v8  ;;  %v3782_v18 = vmul.f32 0.0078125, %v3578_v20  ;;  %3703 = vadd.xlane.f32.xlu0 %v3461_v28  ;;  %v9157_v8 = vld [vmem:[#allocation113_spill] sm:$0xff]  ;;  %v3460_v19 = vmul.f32 %v8269_v40, %v8269_v40 }
 0x466   : > { %v5609_v50 = vpop.eup %5608  ;;  %v3076_v62 = vpop.xlane.xlu0 %3075  ;;  %v8282_v28 = vsub.f32 %v9157_v8, %v3210_v57 }
 0x467   : > { %v4293_v1 = vmul.f32 %v8001_v5, %v4161_v59  ;;  %v4162_v26 = vmul.f32 %v5609_v50, %v9156_v12  ;;  %5614 = vrsqrt.f32 %v3909_v55  ;;  %v3910_v30 = vadd.f32 1e-05, %v3782_v18  ;;  %3705 = vadd.xlane.f32.xlu1 %v3462_v0  ;;  %v9159_v59 = vld [vmem:[#allocation7_spill] sm:$0xff] }
 0x468   : > { %9158 = vst [vmem:[#allocation101_spill] sm:$0xff] %v8282_v28  ;;  %v3078_v20 = vpop.xlane.xlu1 %3077  ;;  %v8290_v55 = vsub.f32 %v9159_v59, %v3207_v13  ;;  %v3213_v0 = vmul.f32 0.0078125, %v3080_v34  ;;  %v8297_v12 = vsub.f32 %v9160_v14, %v3208_v11  ;;  %v9161_v13 = vld [vmem:[#allocation40_spill] sm:$0xff]  ;;  %v3211_v59 = vmul.f32 0.0078125, %v3076_v62 }
 0x469   : > { %v4425_v15 = vadd.f32 %v8012_v43, %v4293_v1  ;;  %v4294_v10 = vmul.f32 %v8001_v5, %v4162_v26  ;;  %5616 = vrsqrt.f32 %v3910_v30  ;;  %3699 = vadd.xlane.f32.xlu0 %v3459_v27  ;;  %v3465_v1 = vmul.f32 %v8274_v60, %v8274_v60 }
 0x46a   : > { %v3572_v18 = vpop.xlane.xlu0 %3571  ;;  %v3466_v26 = vmul.f32 %v8282_v28, %v8282_v28  ;;  %v3214_v30 = vmul.f32 0.0078125, %v3082_v45  ;;  %v3463_v11 = vmul.f32 %v8290_v55, %v8290_v55  ;;  %v9162_v28 = vld [vmem:[#allocation8_spill] sm:$0xff]  ;;  %v3212_v45 = vmul.f32 0.0078125, %v3078_v20 }
 0x46b   : > { %4553 = vst [vmem:[%s7519_s13 + $0x170] sm:$0xff] %v4425_v15  ;;  %v4426_v57 = vadd.f32 %v8012_v43, %v4294_v10  ;;  %v3779_v41 = vmul.f32 0.0078125, %v3572_v18  ;;  %3701 = vadd.xlane.f32.xlu1 %v3460_v19  ;;  %v8304_v19 = vsub.f32 %v7615_v63, %v3213_v0  ;;  %v9163_v0 = vld [vmem:[#allocation9_spill] sm:$0xff] }
 0x46c   : > { %v5611_v50 = vpop.eup %5610  ;;  %v3574_v27 = vpop.xlane.xlu1 %3573 }
 0x46d   : > { %4554 = vst [vmem:[%s7519_s13 + $0x178] sm:$0xff] %v4426_v57  ;;  %v4159_v34 = vmul.f32 %v5611_v50, %v9161_v13  ;;  %v3907_v8 = vadd.f32 1e-05, %v3779_v41  ;;  %v3780_v15 = vmul.f32 0.0078125, %v3574_v27  ;;  %3711 = vadd.xlane.f32.xlu0 %v3465_v1  ;;  %v3464_v1 = vmul.f32 %v8297_v12, %v8297_v12  ;;  %v9165_v13 = vld [vmem:[#allocation46_spill] sm:$0xff] }
 0x46e   : > { %v5613_v10 = vpop.eup %5612  ;;  %v3088_v18 = vpop.xlane.xlu0 %3087  ;;  %v8315_v27 = vsub.f32 %v9163_v0, %v3214_v30 }
 0x46f   : > { %v4291_v14 = vmul.f32 %v8001_v5, %v4159_v34  ;;  %v4160_v57 = vmul.f32 %v5613_v10, %v9162_v28  ;;  %5618 = vrsqrt.f32 %v3907_v8  ;;  %v3908_v50 = vadd.f32 1e-05, %v3780_v15  ;;  %3713 = vadd.xlane.f32.xlu1 %v3466_v26  ;;  %v9166_v10 = vld [vmem:[#allocation11_spill] sm:$0xff] }
 0x470   : > { %v3090_v41 = vpop.xlane.xlu1 %3089  ;;  %9164 = vst [vmem:[#allocation32_spill] sm:$0xff] %v8315_v27  ;;  %v8318_v28 = vsub.f32 %v9165_v13, %v3211_v59  ;;  %v3469_v8 = vmul.f32 %v8304_v19, %v8304_v19 }
 0x471   : > { %v4423_v63 = vadd.f32 %v8012_v43, %v4291_v14  ;;  %v4292_v62 = vmul.f32 %v8001_v5, %v4160_v57  ;;  %5620 = vrsqrt.f32 %v3908_v50  ;;  %3707 = vadd.xlane.f32.xlu0 %v3463_v11  ;;  %v8325_v14 = vsub.f32 %v9166_v10, %v3212_v45  ;;  %v9167_v57 = vld [vmem:[#allocation42_spill] sm:$0xff] }
 0x472   : > { %v3584_v34 = vpop.xlane.xlu0 %3583 }
 0x473   : > { %4551 = vst [vmem:[%s7519_s13 + $0x160] sm:$0xff] %v4423_v63  ;;  %v4424_v20 = vadd.f32 %v8012_v43, %v4292_v62  ;;  %v3785_v26 = vmul.f32 0.0078125, %v3584_v34  ;;  %3709 = vadd.xlane.f32.xlu1 %v3464_v1  ;;  %v3470_v63 = vmul.f32 %v8315_v27, %v8315_v27  ;;  %v3467_v1 = vmul.f32 %v8318_v28, %v8318_v28  ;;  %v9168_v34 = vld [vmem:[#allocation44_spill] sm:$0xff] }
 0x474   : > { %v5615_v15 = vpop.eup %5614  ;;  %v3586_v30 = vpop.xlane.xlu1 %3585 }
 0x475   : > { %4552 = vst [vmem:[%s7519_s13 + $0x168] sm:$0xff] %v4424_v20  ;;  %v4165_v11 = vmul.f32 %v5615_v15, %v9167_v57  ;;  %v3913_v50 = vadd.f32 1e-05, %v3785_v26  ;;  %v3786_v59 = vmul.f32 0.0078125, %v3586_v30  ;;  %3719 = vadd.xlane.f32.xlu0 %v3469_v8  ;;  %v3217_v15 = vmul.f32 0.0078125, %v3088_v18 }
 0x476   : > { %v5617_v62 = vpop.eup %5616  ;;  %v3084_v0 = vpop.xlane.xlu0 %3083  ;;  %v3218_v26 = vmul.f32 0.0078125, %v3090_v41  ;;  %v3468_v30 = vmul.f32 %v8325_v14, %v8325_v14 }
 0x477   : > { %v4297_v13 = vmul.f32 %v8001_v5, %v4165_v11  ;;  %v4166_v45 = vmul.f32 %v5617_v62, %v9168_v34  ;;  %5622 = vrsqrt.f32 %v3913_v50  ;;  %v3914_v20 = vadd.f32 1e-05, %v3786_v59  ;;  %3721 = vadd.xlane.f32.xlu1 %v3470_v63 }
 0x478   : > { %v3215_v10 = vmul.f32 0.0078125, %v3084_v0  ;;  %v3086_v8 = vpop.xlane.xlu1 %3085  ;;  %v8348_v0 = vsub.f32 %v7679_v44, %v3217_v15  ;;  %v9171_v15 = vld [vmem:[#allocation48_spill] sm:$0xff] }
 0x479   : > { %v4429_v57 = vadd.f32 %v8012_v43, %v4297_v13  ;;  %v4298_v27 = vmul.f32 %v8001_v5, %v4166_v45  ;;  %5624 = vrsqrt.f32 %v3914_v20  ;;  %v3216_v11 = vmul.f32 0.0078125, %v3086_v8  ;;  %3715 = vadd.xlane.f32.xlu0 %v3467_v1  ;;  %v9169_v13 = vld [vmem:[#allocation13_spill] sm:$0xff]  ;;  %v9170_v45 = vld [vmem:[#allocation10_spill] sm:$0xff] }
 0x47a   : > { %v8340_v62 = vsub.f32 %v7712_v9, %v3215_v10  ;;  %v3580_v50 = vpop.xlane.xlu0 %3579  ;;  %v8351_v34 = vsub.f32 %v9169_v13, %v3218_v26 }
 0x47b   : > { %4557 = vst [vmem:[%s7519_s13 + $0x190] sm:$0xff] %v4429_v57  ;;  %v4430_v18 = vadd.f32 %v8012_v43, %v4298_v27  ;;  %v8345_v41 = vsub.f32 %v7721_v25, %v3216_v11  ;;  %v3783_v59 = vmul.f32 0.0078125, %v3580_v50  ;;  %3717 = vadd.xlane.f32.xlu1 %v3468_v30 }
 0x47c   : > { %v5619_v63 = vpop.eup %5618  ;;  %v3582_v1 = vpop.xlane.xlu1 %3581  ;;  %v3471_v9 = vmul.f32 %v8340_v62, %v8340_v62 }
 0x47d   : > { %4558 = vst [vmem:[%s7519_s13 + $0x198] sm:$0xff] %v4430_v18  ;;  %v4163_v20 = vmul.f32 %v5619_v63, %v9170_v45  ;;  %v3911_v27 = vadd.f32 1e-05, %v3783_v59  ;;  %v3784_v10 = vmul.f32 0.0078125, %v3582_v1  ;;  %v3472_v25 = vmul.f32 %v8345_v41, %v8345_v41 }
 0x47e   : > { %v5621_v8 = vpop.eup %5620  ;;  %3723 = vadd.xlane.f32.xlu0 %v3471_v9  ;;  %v3592_v30 = vpop.xlane.xlu0 %3591  ;;  %v3473_v18 = vmul.f32 %v8348_v0, %v8348_v0  ;;  %v3474_v59 = vmul.f32 %v8351_v34, %v8351_v34 }
 0x47f   : > { %v4295_v44 = vmul.f32 %v8001_v5, %v4163_v20  ;;  %v4164_v26 = vmul.f32 %v5621_v8, %v9171_v15  ;;  %5626 = vrsqrt.f32 %v3911_v27  ;;  %v3912_v57 = vadd.f32 1e-05, %v3784_v10  ;;  %3725 = vadd.xlane.f32.xlu1 %v3472_v25 }
 0x480   : > { %v3789_v11 = vmul.f32 0.0078125, %v3592_v30  ;;  %v3594_v50 = vpop.xlane.xlu1 %3593  ;;  %v9172_v30 = vld [vmem:[#allocation12_spill] sm:$0xff] }
 0x481   : > { %v4427_v63 = vadd.f32 %v8012_v43, %v4295_v44  ;;  %v4296_v13 = vmul.f32 %v8001_v5, %v4164_v26  ;;  %5628 = vrsqrt.f32 %v3912_v57  ;;  %v3790_v1 = vmul.f32 0.0078125, %v3594_v50 }
 0x482   : > { %v3917_v9 = vadd.f32 1e-05, %v3789_v11  ;;  %3727 = vadd.xlane.f32.xlu0 %v3473_v18  ;;  %v3588_v45 = vpop.xlane.xlu0 %3587  ;;  %v9173_v18 = vld [vmem:[#allocation51_spill] sm:$0xff] }
 0x483   : > { %4555 = vst [vmem:[%s7519_s13 + $0x180] sm:$0xff] %v4427_v63  ;;  %v4428_v20 = vadd.f32 %v8012_v43, %v4296_v13  ;;  %v3918_v27 = vadd.f32 1e-05, %v3790_v1  ;;  %v3787_v10 = vmul.f32 0.0078125, %v3588_v45  ;;  %3729 = vadd.xlane.f32.xlu1 %v3474_v59 }
 0x484   : > { %v5623_v25 = vpop.eup %5622  ;;  %5630 = vrsqrt.f32 %v3917_v9  ;;  %v3590_v8 = vpop.xlane.xlu1 %3589 }
 0x485   : > { %4556 = vst [vmem:[%s7519_s13 + $0x188] sm:$0xff] %v4428_v20  ;;  %v4169_v15 = vmul.f32 %v5623_v25, %v9172_v30  ;;  %5632 = vrsqrt.f32 %v3918_v27  ;;  %v3915_v44 = vadd.f32 1e-05, %v3787_v10  ;;  %v3788_v26 = vmul.f32 0.0078125, %v3590_v8 }
 0x486   : > { %v5625_v57 = vpop.eup %5624  ;;  %v3600_v11 = vpop.xlane.xlu0 %3599 }
 0x487   : > { %v4301_v50 = vmul.f32 %v8001_v5, %v4169_v15  ;;  %v4170_v63 = vmul.f32 %v5625_v57, %v9173_v18  ;;  %5634 = vrsqrt.f32 %v3915_v44  ;;  %v3916_v13 = vadd.f32 1e-05, %v3788_v26 }
 0x488   : > { %v3793_v59 = vmul.f32 0.0078125, %v3600_v11  ;;  %v3602_v1 = vpop.xlane.xlu1 %3601 }
 0x489   : > { %v4433_v9 = vadd.f32 %v8012_v43, %v4301_v50  ;;  %v4302_v45 = vmul.f32 %v8001_v5, %v4170_v63  ;;  %5636 = vrsqrt.f32 %v3916_v13  ;;  %v3794_v20 = vmul.f32 0.0078125, %v3602_v1  ;;  %v9174_v13 = vld [vmem:[#allocation14_spill] sm:$0xff] }
 0x48a   : > { %v3921_v27 = vadd.f32 1e-05, %v3793_v59  ;;  %v3596_v10 = vpop.xlane.xlu0 %3595 }
 0x48b   : > { %4561 = vst [vmem:[%s7519_s13 + $0x1b0] sm:$0xff] %v4433_v9  ;;  %v4434_v25 = vadd.f32 %v8012_v43, %v4302_v45  ;;  %v3922_v8 = vadd.f32 1e-05, %v3794_v20  ;;  %v3791_v30 = vmul.f32 0.0078125, %v3596_v10 }
 0x48c   : > { %v5627_v15 = vpop.eup %5626  ;;  %5638 = vrsqrt.f32 %v3921_v27  ;;  %v3598_v44 = vpop.xlane.xlu1 %3597 }
 0x48d   : > { %4562 = vst [vmem:[%s7519_s13 + $0x1b8] sm:$0xff] %v4434_v25  ;;  %v4167_v26 = vmul.f32 %v5627_v15, %v7708_v21  ;;  %5640 = vrsqrt.f32 %v3922_v8  ;;  %v3919_v57 = vadd.f32 1e-05, %v3791_v30  ;;  %v3792_v11 = vmul.f32 0.0078125, %v3598_v44  ;;  %v9175_v8 = vld [vmem:[#allocation52_spill] sm:$0xff] }
 0x48e   : > { %v5629_v50 = vpop.eup %5628  ;;  %v3608_v18 = vpop.xlane.xlu0 %3607 }
 0x48f   : > { %v4299_v63 = vmul.f32 %v8001_v5, %v4167_v26  ;;  %v4168_v59 = vmul.f32 %v5629_v50, %v9174_v13  ;;  %5642 = vrsqrt.f32 %v3919_v57  ;;  %v3920_v1 = vadd.f32 1e-05, %v3792_v11  ;;  %v9176_v57 = vld [vmem:[#allocation54_spill] sm:$0xff] }
 0x490   : > { %v3797_v9 = vmul.f32 0.0078125, %v3608_v18  ;;  %v3610_v45 = vpop.xlane.xlu1 %3609 }
 0x491   : > { %v5631_v20 = vpop.eup %5630  ;;  %v4431_v27 = vadd.f32 %v8012_v43, %v4299_v63  ;;  %v4300_v10 = vmul.f32 %v8001_v5, %v4168_v59  ;;  %5644 = vrsqrt.f32 %v3920_v1  ;;  %v3798_v21 = vmul.f32 0.0078125, %v3610_v45 }
 0x492   : > { %v5633_v25 = vpop.eup %5632  ;;  %v4173_v30 = vmul.f32 %v5631_v20, %v9175_v8  ;;  %v3925_v15 = vadd.f32 1e-05, %v3797_v9  ;;  %v3604_v44 = vpop.xlane.xlu0 %3603 }
 0x493   : > { %4559 = vst [vmem:[%s7519_s13 + $0x1a0] sm:$0xff] %v4431_v27  ;;  %v4432_v26 = vadd.f32 %v8012_v43, %v4300_v10  ;;  %v4174_v11 = vmul.f32 %v5633_v25, %v9176_v57  ;;  %v3926_v50 = vadd.f32 1e-05, %v3798_v21  ;;  %v3795_v18 = vmul.f32 0.0078125, %v3604_v44 }
 0x494   : > { %v5635_v13 = vpop.eup %5634  ;;  %v4305_v63 = vmul.f32 %v8001_v5, %v4173_v30  ;;  %5646 = vrsqrt.f32 %v3925_v15  ;;  %v3606_v59 = vpop.xlane.xlu1 %3605 }
 0x495   : > { %4560 = vst [vmem:[%s7519_s13 + $0x1a8] sm:$0xff] %v4432_v26  ;;  %v4306_v1 = vmul.f32 %v8001_v5, %v4174_v11  ;;  %v4171_v45 = vmul.f32 %v5635_v13, %v7748_v42  ;;  %5648 = vrsqrt.f32 %v3926_v50  ;;  %v3923_v9 = vadd.f32 1e-05, %v3795_v18  ;;  %v9177_v13 = vld [vmem:[#allocation15_spill] sm:$0xff] }
 0x496   : > { %v5637_v20 = vpop.eup %5636  ;;  %v4437_v27 = vadd.f32 %v8012_v43, %v4305_v63  ;;  %v3796_v10 = vmul.f32 0.0078125, %v3606_v59  ;;  %v3616_v21 = vpop.xlane.xlu0 %3615 }
 0x497   : > { %v4438_v25 = vadd.f32 %v8012_v43, %v4306_v1  ;;  %v4303_v8 = vmul.f32 %v8001_v5, %v4171_v45  ;;  %v4172_v30 = vmul.f32 %v5637_v20, %v7756_v3  ;;  %5650 = vrsqrt.f32 %v3923_v9 }
 0x498   : > { %4565 = vst [vmem:[%s7519_s13 + $0x1d0] sm:$0xff] %v4437_v27  ;;  %v3924_v15 = vadd.f32 1e-05, %v3796_v10  ;;  %v3801_v44 = vmul.f32 0.0078125, %v3616_v21  ;;  %v3618_v42 = vpop.xlane.xlu1 %3617 }
 0x499   : > { %v5639_v26 = vpop.eup %5638  ;;  %4566 = vst [vmem:[%s7519_s13 + $0x1d8] sm:$0xff] %v4438_v25  ;;  %v4435_v57 = vadd.f32 %v8012_v43, %v4303_v8  ;;  %v4304_v11 = vmul.f32 %v8001_v5, %v4172_v30  ;;  %v3802_v50 = vmul.f32 0.0078125, %v3618_v42  ;;  %v9178_v8 = vld [vmem:[#allocation16_spill] sm:$0xff] }
 0x49a   : > { %v5641_v18 = vpop.eup %5640  ;;  %v4177_v63 = vmul.f32 %v5639_v26, %v9177_v13  ;;  %5652 = vrsqrt.f32 %v3924_v15  ;;  %v3929_v59 = vadd.f32 1e-05, %v3801_v44  ;;  %v3612_v3 = vpop.xlane.xlu0 %3611 }
 0x49b   : > { %4563 = vst [vmem:[%s7519_s13 + $0x1c0] sm:$0xff] %v4435_v57  ;;  %v4436_v1 = vadd.f32 %v8012_v43, %v4304_v11  ;;  %v4178_v45 = vmul.f32 %v5641_v18, %v7779_v39  ;;  %v3930_v9 = vadd.f32 1e-05, %v3802_v50  ;;  %v3799_v20 = vmul.f32 0.0078125, %v3612_v3  ;;  %v9179_v50 = vld [vmem:[#allocation57_spill] sm:$0xff] }
 0x49c   : > { %v5643_v27 = vpop.eup %5642  ;;  %v4309_v10 = vmul.f32 %v8001_v5, %v4177_v63  ;;  %5654 = vrsqrt.f32 %v3929_v59  ;;  %v3614_v21 = vpop.xlane.xlu1 %3613 }
 0x49d   : > { %4564 = vst [vmem:[%s7519_s13 + $0x1c8] sm:$0xff] %v4436_v1  ;;  %v4310_v25 = vmul.f32 %v8001_v5, %v4178_v45  ;;  %v4175_v30 = vmul.f32 %v5643_v27, %v9178_v8  ;;  %5656 = vrsqrt.f32 %v3930_v9  ;;  %v3927_v15 = vadd.f32 1e-05, %v3799_v20  ;;  %v8417_v45 = vld [vmem:[%s8733_s5 + $0x1] ss:$0 sm:$0xff] }
 0x49e   : > { %v5645_v44 = vpop.eup %5644  ;;  %v4441_v42 = vadd.f32 %v8012_v43, %v4309_v10  ;;  %v3800_v39 = vmul.f32 0.0078125, %v3614_v21  ;;  %v3624_v26 = vpop.xlane.xlu0 %3623  ;;  %v9180_v27 = vld [vmem:[#allocation17_spill] sm:$0xff] }
 0x49f   : > { %v4442_v57 = vadd.f32 %v8012_v43, %v4310_v25  ;;  %v4307_v11 = vmul.f32 %v8001_v5, %v4175_v30  ;;  %v4176_v18 = vmul.f32 %v5645_v44, %v9179_v50  ;;  %5658 = vrsqrt.f32 %v3927_v15  ;;  %v9181_v30 = vld [vmem:[#allocation58_spill] sm:$0xff] }
 0x4a0   : > { %4569 = vst [vmem:[%s7519_s13 + $0x1f0] sm:$0xff] %v4441_v42  ;;  %v3928_v13 = vadd.f32 1e-05, %v3800_v39  ;;  %v3805_v63 = vmul.f32 0.0078125, %v3624_v26  ;;  %v3626_v59 = vpop.xlane.xlu1 %3625  ;;  %v9182_v50 = vld [vmem:[#allocation18_spill] sm:$0xff] }
 0x4a1   : > { %v5647_v3 = vpop.eup %5646  ;;  %4570 = vst [vmem:[%s7519_s13 + $0x1f8] sm:$0xff] %v4442_v57  ;;  %v4439_v1 = vadd.f32 %v8012_v43, %v4307_v11  ;;  %v4308_v9 = vmul.f32 %v8417_v45, %v4176_v18  ;;  %v3806_v5 = vmul.f32 0.0078125, %v3626_v59  ;;  %v8425_v43 = vld [vmem:[%s8733_s5 + $0x2] ss:$0 sm:$0xff] }
 0x4a2   : > { %v5649_v20 = vpop.eup %5648  ;;  %v4181_v10 = vmul.f32 %v5647_v3, %v9180_v27  ;;  %5660 = vrsqrt.f32 %v3928_v13  ;;  %v3933_v21 = vadd.f32 1e-05, %v3805_v63  ;;  %v3620_v25 = vpop.xlane.xlu0 %3619  ;;  %v9183_v27 = vld [vmem:[#allocation19_spill] sm:$0xff] }
 0x4a3   : > { %4567 = vst [vmem:[%s7519_s13 + $0x1e0] sm:$0xff] %v4439_v1  ;;  %v4440_v8 = vadd.f32 %v8425_v43, %v4308_v9  ;;  %v4182_v15 = vmul.f32 %v5649_v20, %v9181_v30  ;;  %v3934_v44 = vadd.f32 1e-05, %v3806_v5  ;;  %v3803_v42 = vmul.f32 0.0078125, %v3620_v25 }
 0x4a4   : > { %v5651_v39 = vpop.eup %5650  ;;  %v4313_v26 = vmul.f32 %v8417_v45, %v4181_v10  ;;  %5662 = vrsqrt.f32 %v3933_v21  ;;  %v3622_v57 = vpop.xlane.xlu1 %3621 }
 0x4a5   : > { %4568 = vst [vmem:[%s7519_s13 + $0x1e8] sm:$0xff] %v4440_v8  ;;  %v4314_v11 = vmul.f32 %v8417_v45, %v4182_v15  ;;  %v4179_v18 = vmul.f32 %v5651_v39, %v9182_v50  ;;  %5664 = vrsqrt.f32 %v3934_v44  ;;  %v3931_v13 = vadd.f32 1e-05, %v3803_v42  ;;  %v9185_v50 = vld [vmem:[#allocation60_spill] sm:$0xff] }
 0x4a6   : > { %v4445_v63 = vadd.f32 %v8425_v43, %v4313_v26  ;;  %v3804_v59 = vmul.f32 0.0078125, %v3622_v57  ;;  %v3632_v3 = vpop.xlane.xlu0 %3631  ;;  %v9184_v26 = vld [vmem:[#allocation20_spill] sm:$0xff] }
 0x4a7   : > { %v5653_v1 = vpop.eup %5652  ;;  %v4446_v9 = vadd.f32 %v8425_v43, %v4314_v11  ;;  %v4311_v5 = vmul.f32 %v8417_v45, %v4179_v18  ;;  %5666 = vrsqrt.f32 %v3931_v13  ;;  %v3809_v20 = vmul.f32 0.0078125, %v3632_v3 }
 0x4a8   : > { %4573 = vst [vmem:[%s7519_s13 + $0x210] sm:$0xff] %v4445_v63  ;;  %v4180_v10 = vmul.f32 %v5653_v1, %v9183_v27  ;;  %v3932_v21 = vadd.f32 1e-05, %v3804_v59  ;;  %v3634_v25 = vpop.xlane.xlu1 %3633 }
 0x4a9   : > { %v5655_v8 = vpop.eup %5654  ;;  %4574 = vst [vmem:[%s7519_s13 + $0x218] sm:$0xff] %v4446_v9  ;;  %v4443_v30 = vadd.f32 %v8425_v43, %v4311_v5  ;;  %v3937_v15 = vadd.f32 1e-05, %v3809_v20  ;;  %v3810_v44 = vmul.f32 0.0078125, %v3634_v25 }
 0x4aa   : > { %v5657_v42 = vpop.eup %5656  ;;  %v4312_v39 = vmul.f32 %v8417_v45, %v4180_v10  ;;  %v4185_v57 = vmul.f32 %v5655_v8, %v9184_v26  ;;  %5668 = vrsqrt.f32 %v3932_v21  ;;  %v3628_v11 = vpop.xlane.xlu0 %3627 }
 0x4ab   : > { %4571 = vst [vmem:[%s7519_s13 + $0x200] sm:$0xff] %v4443_v30  ;;  %v4186_v18 = vmul.f32 %v5657_v42, %v9185_v50  ;;  %5670 = vrsqrt.f32 %v3937_v15  ;;  %v3938_v13 = vadd.f32 1e-05, %v3810_v44  ;;  %v3807_v63 = vmul.f32 0.0078125, %v3628_v11 }
 0x4ac   : > { %v5659_v59 = vpop.eup %5658  ;;  %v4444_v3 = vadd.f32 %v8425_v43, %v4312_v39  ;;  %v4317_v1 = vmul.f32 %v8417_v45, %v4185_v57  ;;  %v3630_v9 = vpop.xlane.xlu1 %3629 }
 0x4ad   : > { %v4318_v5 = vmul.f32 %v8417_v45, %v4186_v18  ;;  %v4183_v20 = vmul.f32 %v5659_v59, %v7856_v7  ;;  %5672 = vrsqrt.f32 %v3938_v13  ;;  %v3935_v27 = vadd.f32 1e-05, %v3807_v63  ;;  %v9186_v63 = vld [vmem:[#allocation21_spill] sm:$0xff] }
 0x4ae   : > { %4572 = vst [vmem:[%s7519_s13 + $0x208] sm:$0xff] %v4444_v3  ;;  %v4449_v10 = vadd.f32 %v8425_v43, %v4317_v1  ;;  %v3808_v21 = vmul.f32 0.0078125, %v3630_v9  ;;  %v3640_v25 = vpop.xlane.xlu0 %3639 }
 0x4af   : > { %v5661_v8 = vpop.eup %5660  ;;  %v4450_v30 = vadd.f32 %v8425_v43, %v4318_v5  ;;  %v4315_v15 = vmul.f32 %v8417_v45, %v4183_v20  ;;  %5674 = vrsqrt.f32 %v3935_v27  ;;  %v3813_v44 = vmul.f32 0.0078125, %v3640_v25 }
 0x4b0   : > { %4577 = vst [vmem:[%s7519_s13 + $0x230] sm:$0xff] %v4449_v10  ;;  %v4184_v42 = vmul.f32 %v5661_v8, %v7864_v49  ;;  %v3936_v7 = vadd.f32 1e-05, %v3808_v21  ;;  %v3642_v39 = vpop.xlane.xlu1 %3641 }
 0x4b1   : > { %v5663_v26 = vpop.eup %5662  ;;  %4578 = vst [vmem:[%s7519_s13 + $0x238] sm:$0xff] %v4450_v30  ;;  %v4447_v57 = vadd.f32 %v8425_v43, %v4315_v15  ;;  %v3941_v11 = vadd.f32 1e-05, %v3813_v44  ;;  %v3814_v50 = vmul.f32 0.0078125, %v3642_v39 }
 0x4b2   : > { %v5665_v18 = vpop.eup %5664  ;;  %v4316_v13 = vmul.f32 %v8417_v45, %v4184_v42  ;;  %v4189_v59 = vmul.f32 %v5663_v26, %v9186_v63  ;;  %5676 = vrsqrt.f32 %v3936_v7  ;;  %v3636_v3 = vpop.xlane.xlu0 %3635 }
 0x4b3   : > { %4575 = vst [vmem:[%s7519_s13 + $0x220] sm:$0xff] %v4447_v57  ;;  %v4190_v1 = vmul.f32 %v5665_v18, %v7887_v33  ;;  %5678 = vrsqrt.f32 %v3941_v11  ;;  %v3942_v49 = vadd.f32 1e-05, %v3814_v50  ;;  %v3811_v9 = vmul.f32 0.0078125, %v3636_v3  ;;  %v9187_v57 = vld [vmem:[#allocation62_spill] sm:$0xff] }
 0x4b4   : > { %v5667_v5 = vpop.eup %5666  ;;  %v4448_v20 = vadd.f32 %v8425_v43, %v4316_v13  ;;  %v4321_v27 = vmul.f32 %v8417_v45, %v4189_v59  ;;  %v3638_v10 = vpop.xlane.xlu1 %3637  ;;  %v9188_v13 = vld [vmem:[#allocation22_spill] sm:$0xff] }
 0x4b5   : > { %v4322_v21 = vmul.f32 %v8417_v45, %v4190_v1  ;;  %v4187_v25 = vmul.f32 %v5667_v5, %v7892_v24  ;;  %5680 = vrsqrt.f32 %v3942_v49  ;;  %v3939_v8 = vadd.f32 1e-05, %v3811_v9 }
 0x4b6   : > { %4576 = vst [vmem:[%s7519_s13 + $0x228] sm:$0xff] %v4448_v20  ;;  %v4453_v33 = vadd.f32 %v8425_v43, %v4321_v27  ;;  %v3812_v30 = vmul.f32 0.0078125, %v3638_v10  ;;  %v3648_v15 = vpop.xlane.xlu0 %3647  ;;  %v9189_v20 = vld [vmem:[#allocation23_spill] sm:$0xff] }
 0x4b7   : > { %v5669_v44 = vpop.eup %5668  ;;  %v4454_v42 = vadd.f32 %v8425_v43, %v4322_v21  ;;  %v4319_v7 = vmul.f32 %v8417_v45, %v4187_v25  ;;  %5682 = vrsqrt.f32 %v3939_v8  ;;  %v3817_v39 = vmul.f32 0.0078125, %v3648_v15 }
 0x4b8   : > { %v5671_v26 = vpop.eup %5670  ;;  %4581 = vst [vmem:[%s7519_s13 + $0x250] sm:$0xff] %v4453_v33  ;;  %v4188_v24 = vmul.f32 %v5669_v44, %v9187_v57  ;;  %v3940_v11 = vadd.f32 1e-05, %v3812_v30  ;;  %v3650_v50 = vpop.xlane.xlu1 %3649 }
 0x4b9   : > { %4582 = vst [vmem:[%s7519_s13 + $0x258] sm:$0xff] %v4454_v42  ;;  %v4451_v18 = vadd.f32 %v8425_v43, %v4319_v7  ;;  %v4193_v63 = vmul.f32 %v5671_v26, %v9188_v13  ;;  %v3945_v59 = vadd.f32 1e-05, %v3817_v39  ;;  %v3818_v3 = vmul.f32 0.0078125, %v3650_v50 }
 0x4ba   : > { %v5673_v1 = vpop.eup %5672  ;;  %v4320_v49 = vmul.f32 %v8417_v45, %v4188_v24  ;;  %5684 = vrsqrt.f32 %v3940_v11  ;;  %v3644_v9 = vpop.xlane.xlu0 %3643 }
 0x4bb   : > { %4579 = vst [vmem:[%s7519_s13 + $0x240] sm:$0xff] %v4451_v18  ;;  %v4325_v5 = vmul.f32 %v8417_v45, %v4193_v63  ;;  %v4194_v27 = vmul.f32 %v5673_v1, %v9189_v20  ;;  %5686 = vrsqrt.f32 %v3945_v59  ;;  %v3946_v10 = vadd.f32 1e-05, %v3818_v3  ;;  %v9190_v59 = vld [vmem:[#allocation24_spill] sm:$0xff] }
 0x4bc   : > { %v5675_v21 = vpop.eup %5674  ;;  %v4452_v25 = vadd.f32 %v8425_v43, %v4320_v49  ;;  %v3815_v8 = vmul.f32 0.0078125, %v3644_v9  ;;  %v3646_v33 = vpop.xlane.xlu1 %3645 }
 0x4bd   : > { %v4457_v30 = vadd.f32 %v8425_v43, %v4325_v5  ;;  %v4326_v15 = vmul.f32 %v8417_v45, %v4194_v27  ;;  %v4191_v44 = vmul.f32 %v5675_v21, %v7928_v61  ;;  %5688 = vrsqrt.f32 %v3946_v10 }
 0x4be   : > { %4580 = vst [vmem:[%s7519_s13 + $0x248] sm:$0xff] %v4452_v25  ;;  %v3943_v42 = vadd.f32 1e-05, %v3815_v8  ;;  %v3816_v7 = vmul.f32 0.0078125, %v3646_v33  ;;  %v3656_v39 = vpop.xlane.xlu0 %3655 }
 0x4bf   : > { %v5677_v26 = vpop.eup %5676  ;;  %4585 = vst [vmem:[%s7519_s13 + $0x270] sm:$0xff] %v4457_v30  ;;  %v4458_v57 = vadd.f32 %v8425_v43, %v4326_v15  ;;  %v4323_v24 = vmul.f32 %v8417_v45, %v4191_v44  ;;  %v3821_v11 = vmul.f32 0.0078125, %v3656_v39 }
 0x4c0   : > { %v5679_v50 = vpop.eup %5678  ;;  %v4192_v18 = vmul.f32 %v5677_v26, %v7939_v58  ;;  %5690 = vrsqrt.f32 %v3943_v42  ;;  %v3944_v13 = vadd.f32 1e-05, %v3816_v7  ;;  %v3658_v61 = vpop.xlane.xlu1 %3657  ;;  %v9191_v58 = vld [vmem:[#allocation65_spill] sm:$0xff] }
 0x4c1   : > { %4586 = vst [vmem:[%s7519_s13 + $0x278] sm:$0xff] %v4458_v57  ;;  %v4455_v63 = vadd.f32 %v8425_v43, %v4323_v24  ;;  %v4197_v3 = vmul.f32 %v5679_v50, %v9190_v59  ;;  %v3949_v1 = vadd.f32 1e-05, %v3821_v11  ;;  %v3822_v49 = vmul.f32 0.0078125, %v3658_v61  ;;  %v9192_v59 = vld [vmem:[#allocation25_spill] sm:$0xff] }
 0x4c2   : > { %v5681_v9 = vpop.eup %5680  ;;  %v4324_v5 = vmul.f32 %v8417_v45, %v4192_v18  ;;  %5692 = vrsqrt.f32 %v3944_v13  ;;  %v3652_v20 = vpop.xlane.xlu0 %3651 }
 0x4c3   : > { %4583 = vst [vmem:[%s7519_s13 + $0x260] sm:$0xff] %v4455_v63  ;;  %v4329_v27 = vmul.f32 %v8417_v45, %v4197_v3  ;;  %v4198_v10 = vmul.f32 %v5681_v9, %v9191_v58  ;;  %5694 = vrsqrt.f32 %v3949_v1  ;;  %v3950_v21 = vadd.f32 1e-05, %v3822_v49 }
 0x4c4   : > { %v5683_v25 = vpop.eup %5682  ;;  %v4456_v8 = vadd.f32 %v8425_v43, %v4324_v5  ;;  %v3819_v33 = vmul.f32 0.0078125, %v3652_v20  ;;  %v3654_v30 = vpop.xlane.xlu1 %3653 }
 0x4c5   : > { %v4461_v15 = vadd.f32 %v8425_v43, %v4329_v27  ;;  %v4330_v44 = vmul.f32 %v8417_v45, %v4198_v10  ;;  %v4195_v42 = vmul.f32 %v5683_v25, %v7964_v17  ;;  %5696 = vrsqrt.f32 %v3950_v21 }
 0x4c6   : > { %4584 = vst [vmem:[%s7519_s13 + $0x268] sm:$0xff] %v4456_v8  ;;  %v3947_v7 = vadd.f32 1e-05, %v3819_v33  ;;  %v3820_v39 = vmul.f32 0.0078125, %v3654_v30  ;;  %v3664_v26 = vpop.xlane.xlu0 %3663 }
 0x4c7   : > { %v5685_v57 = vpop.eup %5684  ;;  %4589 = vst [vmem:[%s7519_s13 + $0x290] sm:$0xff] %v4461_v15  ;;  %v4462_v24 = vadd.f32 %v8425_v43, %v4330_v44  ;;  %v4327_v11 = vmul.f32 %v8417_v45, %v4195_v42  ;;  %v3825_v50 = vmul.f32 0.0078125, %v3664_v26 }
 0x4c8   : > { %v5687_v18 = vpop.eup %5686  ;;  %v4196_v13 = vmul.f32 %v5685_v57, %v7972_v4  ;;  %5698 = vrsqrt.f32 %v3947_v7  ;;  %v3948_v61 = vadd.f32 1e-05, %v3820_v39  ;;  %v3666_v17 = vpop.xlane.xlu1 %3665 }
 0x4c9   : > { %4590 = vst [vmem:[%s7519_s13 + $0x298] sm:$0xff] %v4462_v24  ;;  %v4459_v63 = vadd.f32 %v8425_v43, %v4327_v11  ;;  %v4201_v3 = vmul.f32 %v5687_v18, %v9192_v59  ;;  %v3953_v1 = vadd.f32 1e-05, %v3825_v50  ;;  %v3826_v49 = vmul.f32 0.0078125, %v3666_v17  ;;  %v9193_v50 = vld [vmem:[#allocation66_spill] sm:$0xff] }
 0x4ca   : > { %v5689_v9 = vpop.eup %5688  ;;  %v4328_v5 = vmul.f32 %v8417_v45, %v4196_v13  ;;  %5700 = vrsqrt.f32 %v3948_v61  ;;  %v3660_v20 = vpop.xlane.xlu0 %3659  ;;  %v9194_v61 = vld [vmem:[#allocation26_spill] sm:$0xff] }
 0x4cb   : > { %4587 = vst [vmem:[%s7519_s13 + $0x280] sm:$0xff] %v4459_v63  ;;  %v4333_v27 = vmul.f32 %v8417_v45, %v4201_v3  ;;  %v4202_v4 = vmul.f32 %v5689_v9, %v7995_v46  ;;  %5702 = vrsqrt.f32 %v3953_v1  ;;  %v3954_v58 = vadd.f32 1e-05, %v3826_v49 }
 0x4cc   : > { %v4460_v10 = vadd.f32 %v8425_v43, %v4328_v5  ;;  %v3823_v21 = vmul.f32 0.0078125, %v3660_v20  ;;  %v3662_v25 = vpop.xlane.xlu1 %3661  ;;  %v9195_v5 = vld [vmem:[#allocation27_spill] sm:$0xff] }
 0x4cd   : > { %v5691_v8 = vpop.eup %5690  ;;  %v4465_v33 = vadd.f32 %v8425_v43, %v4333_v27  ;;  %v4334_v30 = vmul.f32 %v8417_v45, %v4202_v4  ;;  %5704 = vrsqrt.f32 %v3954_v58  ;;  %v3824_v15 = vmul.f32 0.0078125, %v3662_v25 }
 0x4ce   : > { %4588 = vst [vmem:[%s7519_s13 + $0x288] sm:$0xff] %v4460_v10  ;;  %v4199_v44 = vmul.f32 %v5691_v8, %v8005_v2  ;;  %v3951_v42 = vadd.f32 1e-05, %v3823_v21  ;;  %v3672_v46 = vpop.xlane.xlu0 %3671 }
 0x4cf   : > { %v5693_v7 = vpop.eup %5692  ;;  %4593 = vst [vmem:[%s7519_s13 + $0x2b0] sm:$0xff] %v4465_v33  ;;  %v4466_v39 = vadd.f32 %v8425_v43, %v4334_v30  ;;  %v3952_v26 = vadd.f32 1e-05, %v3824_v15  ;;  %v3829_v57 = vmul.f32 0.0078125, %v3672_v46 }
 0x4d0   : > { %v5695_v24 = vpop.eup %5694  ;;  %v4331_v11 = vmul.f32 %v8417_v45, %v4199_v44  ;;  %v4200_v18 = vmul.f32 %v5693_v7, %v9193_v50  ;;  %5706 = vrsqrt.f32 %v3951_v42  ;;  %v3674_v13 = vpop.xlane.xlu1 %3673  ;;  %v9196_v50 = vld [vmem:[#allocation28_spill] sm:$0xff] }
 0x4d1   : > { %4594 = vst [vmem:[%s7519_s13 + $0x2b8] sm:$0xff] %v4466_v39  ;;  %v4205_v17 = vmul.f32 %v5695_v24, %v9194_v61  ;;  %5708 = vrsqrt.f32 %v3952_v26  ;;  %v3957_v2 = vadd.f32 1e-05, %v3829_v57  ;;  %v3830_v63 = vmul.f32 0.0078125, %v3674_v13 }
 0x4d2   : > { %v5697_v59 = vpop.eup %5696  ;;  %v4463_v3 = vadd.f32 %v8425_v43, %v4331_v11  ;;  %v4332_v1 = vmul.f32 %v8417_v45, %v4200_v18  ;;  %v3668_v49 = vpop.xlane.xlu0 %3667 }
 0x4d3   : > { %v4337_v9 = vmul.f32 %v8417_v45, %v4205_v17  ;;  %v4206_v20 = vmul.f32 %v5697_v59, %v9195_v5  ;;  %5710 = vrsqrt.f32 %v3957_v2  ;;  %v3958_v27 = vadd.f32 1e-05, %v3830_v63 }
 0x4d4   : > { %4591 = vst [vmem:[%s7519_s13 + $0x2a0] sm:$0xff] %v4463_v3  ;;  %v4464_v4 = vadd.f32 %v8425_v43, %v4332_v1  ;;  %v3827_v58 = vmul.f32 0.0078125, %v3668_v49  ;;  %v3670_v10 = vpop.xlane.xlu1 %3669  ;;  %v9197_v3 = vld [vmem:[#allocation68_spill] sm:$0xff] }
 0x4d5   : > { %v5699_v21 = vpop.eup %5698  ;;  %v4469_v25 = vadd.f32 %v8425_v43, %v4337_v9  ;;  %v4338_v8 = vmul.f32 %v8417_v45, %v4206_v20  ;;  %5712 = vrsqrt.f32 %v3958_v27  ;;  %v3828_v33 = vmul.f32 0.0078125, %v3670_v10 }
 0x4d6   : > { %4592 = vst [vmem:[%s7519_s13 + $0x2a8] sm:$0xff] %v4464_v4  ;;  %v4203_v30 = vmul.f32 %v5699_v21, %v8046_v38  ;;  %v3955_v15 = vadd.f32 1e-05, %v3827_v58  ;;  %v3680_v44 = vpop.xlane.xlu0 %3679 }
 0x4d7   : > { %v5701_v42 = vpop.eup %5700  ;;  %4597 = vst [vmem:[%s7519_s13 + $0x2d0] sm:$0xff] %v4469_v25  ;;  %v4470_v46 = vadd.f32 %v8425_v43, %v4338_v8  ;;  %v3956_v7 = vadd.f32 1e-05, %v3828_v33  ;;  %v3833_v39 = vmul.f32 0.0078125, %v3680_v44 }
 0x4d8   : > { %v5703_v26 = vpop.eup %5702  ;;  %v4335_v57 = vmul.f32 %v8417_v45, %v4203_v30  ;;  %v4204_v24 = vmul.f32 %v5701_v42, %v8057_v52  ;;  %5714 = vrsqrt.f32 %v3955_v15  ;;  %v3682_v11 = vpop.xlane.xlu1 %3681 }
 0x4d9   : > { %4598 = vst [vmem:[%s7519_s13 + $0x2d8] sm:$0xff] %v4470_v46  ;;  %v4209_v18 = vmul.f32 %v5703_v26, %v9196_v50  ;;  %5716 = vrsqrt.f32 %v3956_v7  ;;  %v3961_v38 = vadd.f32 1e-05, %v3833_v39  ;;  %v3834_v13 = vmul.f32 0.0078125, %v3682_v11 }
 0x4da   : > { %v5705_v61 = vpop.eup %5704  ;;  %v4467_v17 = vadd.f32 %v8425_v43, %v4335_v57  ;;  %v4336_v2 = vmul.f32 %v8417_v45, %v4204_v24  ;;  %v3676_v63 = vpop.xlane.xlu0 %3675 }
 0x4db   : > { %v4341_v59 = vmul.f32 %v8417_v45, %v4209_v18  ;;  %v4210_v52 = vmul.f32 %v5705_v61, %v9197_v3  ;;  %5718 = vrsqrt.f32 %v3961_v38  ;;  %v3962_v1 = vadd.f32 1e-05, %v3834_v13 }
 0x4dc   : > { %4595 = vst [vmem:[%s7519_s13 + $0x2c0] sm:$0xff] %v4467_v17  ;;  %v4468_v49 = vadd.f32 %v8425_v43, %v4336_v2  ;;  %v3831_v9 = vmul.f32 0.0078125, %v3676_v63  ;;  %v3678_v5 = vpop.xlane.xlu1 %3677 }
 0x4dd   : > { %v5707_v20 = vpop.eup %5706  ;;  %v4473_v27 = vadd.f32 %v8425_v43, %v4341_v59  ;;  %v4342_v4 = vmul.f32 %v8417_v45, %v4210_v52  ;;  %5720 = vrsqrt.f32 %v3962_v1  ;;  %v3832_v58 = vmul.f32 0.0078125, %v3678_v5 }
 0x4de   : > { %v5709_v10 = vpop.eup %5708  ;;  %4596 = vst [vmem:[%s7519_s13 + $0x2c8] sm:$0xff] %v4468_v49  ;;  %v4207_v21 = vmul.f32 %v5707_v20, %v8082_v16  ;;  %v3959_v25 = vadd.f32 1e-05, %v3831_v9  ;;  %v3688_v8 = vpop.xlane.xlu0 %3687 }
 0x4df   : > { %4601 = vst [vmem:[%s7519_s13 + $0x2f0] sm:$0xff] %v4473_v27  ;;  %v4474_v33 = vadd.f32 %v8425_v43, %v4342_v4  ;;  %v4208_v30 = vmul.f32 %v5709_v10, %v8090_v29  ;;  %v3960_v15 = vadd.f32 1e-05, %v3832_v58  ;;  %v3837_v44 = vmul.f32 0.0078125, %v3688_v8 }
 0x4e0   : > { %v5711_v42 = vpop.eup %5710  ;;  %v4339_v46 = vmul.f32 %v8417_v45, %v4207_v21  ;;  %5722 = vrsqrt.f32 %v3959_v25  ;;  %v3690_v7 = vpop.xlane.xlu1 %3689 }
 0x4e1   : > { %4602 = vst [vmem:[%s7519_s13 + $0x2f8] sm:$0xff] %v4474_v33  ;;  %v4340_v39 = vmul.f32 %v8417_v45, %v4208_v30  ;;  %v4213_v16 = vmul.f32 %v5711_v42, %v8098_v22  ;;  %5724 = vrsqrt.f32 %v3960_v15  ;;  %v3965_v26 = vadd.f32 1e-05, %v3837_v44  ;;  %v9198_v44 = vld [vmem:[#allocation29_spill] sm:$0xff] }
 0x4e2   : > { %v5713_v57 = vpop.eup %5712  ;;  %v4471_v24 = vadd.f32 %v8425_v43, %v4339_v46  ;;  %v3838_v29 = vmul.f32 0.0078125, %v3690_v7  ;;  %v3684_v11 = vpop.xlane.xlu0 %3683 }
 0x4e3   : > { %v4472_v50 = vadd.f32 %v8425_v43, %v4340_v39  ;;  %v4345_v18 = vmul.f32 %v8417_v45, %v4213_v16  ;;  %v4214_v38 = vmul.f32 %v5713_v57, %v8113_v32  ;;  %5726 = vrsqrt.f32 %v3965_v26 }
 0x4e4   : > { %4599 = vst [vmem:[%s7519_s13 + $0x2e0] sm:$0xff] %v4471_v24  ;;  %v3966_v13 = vadd.f32 1e-05, %v3838_v29  ;;  %v3835_v61 = vmul.f32 0.0078125, %v3684_v11  ;;  %v3686_v22 = vpop.xlane.xlu1 %3685 }
 0x4e5   : > { %v5715_v17 = vpop.eup %5714  ;;  %4600 = vst [vmem:[%s7519_s13 + $0x2e8] sm:$0xff] %v4472_v50  ;;  %v4477_v2 = vadd.f32 %v8425_v43, %v4345_v18  ;;  %v4346_v63 = vmul.f32 %v8417_v45, %v4214_v38  ;;  %v3836_v59 = vmul.f32 0.0078125, %v3686_v22 }
 0x4e6   : > { %v5717_v3 = vpop.eup %5716  ;;  %v4211_v52 = vmul.f32 %v5715_v17, %v8118_v36  ;;  %5728 = vrsqrt.f32 %v3966_v13  ;;  %v3963_v1 = vadd.f32 1e-05, %v3835_v61  ;;  %v3696_v32 = vpop.xlane.xlu0 %3695 }
 0x4e7   : > { %4605 = vst [vmem:[%s7519_s13 + $0x310] sm:$0xff] %v4477_v2  ;;  %v4478_v49 = vadd.f32 %v8425_v43, %v4346_v63  ;;  %v4212_v9 = vmul.f32 %v5717_v3, %v8126_v48  ;;  %v3964_v5 = vadd.f32 1e-05, %v3836_v59  ;;  %v3841_v20 = vmul.f32 0.0078125, %v3696_v32 }
 0x4e8   : > { %v5719_v27 = vpop.eup %5718  ;;  %v4343_v4 = vmul.f32 %v8417_v45, %v4211_v52  ;;  %5730 = vrsqrt.f32 %v3963_v1  ;;  %v3698_v58 = vpop.xlane.xlu1 %3697 }
 0x4e9   : > { %4606 = vst [vmem:[%s7519_s13 + $0x318] sm:$0xff] %v4478_v49  ;;  %v4344_v10 = vmul.f32 %v8417_v45, %v4212_v9  ;;  %v4217_v36 = vmul.f32 %v5719_v27, %v8134_v31  ;;  %5732 = vrsqrt.f32 %v3964_v5  ;;  %v3969_v21 = vadd.f32 1e-05, %v3841_v20  ;;  %v9199_v5 = vld [vmem:[#allocation70_spill] sm:$0xff] }
 0x4ea   : > { %v5721_v25 = vpop.eup %5720  ;;  %v4475_v8 = vadd.f32 %v8425_v43, %v4343_v4  ;;  %v3842_v48 = vmul.f32 0.0078125, %v3698_v58  ;;  %v3692_v33 = vpop.xlane.xlu0 %3691 }
 0x4eb   : > { %v4476_v30 = vadd.f32 %v8425_v43, %v4344_v10  ;;  %v4349_v15 = vmul.f32 %v8417_v45, %v4217_v36  ;;  %v4218_v42 = vmul.f32 %v5721_v25, %v9198_v44  ;;  %5734 = vrsqrt.f32 %v3969_v21 }
 0x4ec   : > { %4603 = vst [vmem:[%s7519_s13 + $0x300] sm:$0xff] %v4475_v8  ;;  %v3970_v46 = vadd.f32 1e-05, %v3842_v48  ;;  %v3839_v7 = vmul.f32 0.0078125, %v3692_v33  ;;  %v3694_v31 = vpop.xlane.xlu1 %3693 }
 0x4ed   : > { %v5723_v39 = vpop.eup %5722  ;;  %4604 = vst [vmem:[%s7519_s13 + $0x308] sm:$0xff] %v4476_v30  ;;  %v4481_v16 = vadd.f32 %v8425_v43, %v4349_v15  ;;  %v4350_v26 = vmul.f32 %v8417_v45, %v4218_v42  ;;  %v3840_v57 = vmul.f32 0.0078125, %v3694_v31 }
 0x4ee   : > { %v5725_v24 = vpop.eup %5724  ;;  %v4215_v29 = vmul.f32 %v5723_v39, %v8154_v6  ;;  %5736 = vrsqrt.f32 %v3970_v46  ;;  %v3967_v11 = vadd.f32 1e-05, %v3839_v7  ;;  %v3704_v50 = vpop.xlane.xlu0 %3703 }
 0x4ef   : > { %4609 = vst [vmem:[%s7519_s13 + $0x330] sm:$0xff] %v4481_v16  ;;  %v4482_v18 = vadd.f32 %v8425_v43, %v4350_v26  ;;  %v4216_v38 = vmul.f32 %v5725_v24, %v8165_v54  ;;  %v3968_v13 = vadd.f32 1e-05, %v3840_v57  ;;  %v3845_v61 = vmul.f32 0.0078125, %v3704_v50 }
 0x4f0   : > { %v5727_v22 = vpop.eup %5726  ;;  %v4347_v17 = vmul.f32 %v8417_v45, %v4215_v29  ;;  %5738 = vrsqrt.f32 %v3967_v11  ;;  %v3706_v2 = vpop.xlane.xlu1 %3705 }
 0x4f1   : > { %4610 = vst [vmem:[%s7519_s13 + $0x338] sm:$0xff] %v4482_v18  ;;  %v4348_v63 = vmul.f32 %v8417_v45, %v4216_v38  ;;  %v4221_v6 = vmul.f32 %v5727_v22, %v8170_v56  ;;  %5740 = vrsqrt.f32 %v3968_v13  ;;  %v3973_v59 = vadd.f32 1e-05, %v3845_v61 }
 0x4f2   : > { %v4479_v3 = vadd.f32 %v8425_v43, %v4347_v17  ;;  %v3846_v52 = vmul.f32 0.0078125, %v3706_v2  ;;  %v3700_v54 = vpop.xlane.xlu0 %3699 }
 0x4f3   : > { %v5729_v1 = vpop.eup %5728  ;;  %v4480_v32 = vadd.f32 %v8425_v43, %v4348_v63  ;;  %v4353_v49 = vmul.f32 %v8417_v45, %v4221_v6  ;;  %5742 = vrsqrt.f32 %v3973_v59  ;;  %v3843_v9 = vmul.f32 0.0078125, %v3700_v54  ;;  %v9200_v59 = vld [vmem:[#allocation30_spill] sm:$0xff] }
 0x4f4   : > { %4607 = vst [vmem:[%s7519_s13 + $0x320] sm:$0xff] %v4479_v3  ;;  %v4222_v20 = vmul.f32 %v5729_v1, %v9199_v5  ;;  %v3974_v27 = vadd.f32 1e-05, %v3846_v52  ;;  %v3702_v56 = vpop.xlane.xlu1 %3701  ;;  %v9201_v5 = vld [vmem:[#allocation98_spill] sm:$0xff] }
 0x4f5   : > { %v5731_v4 = vpop.eup %5730  ;;  %4608 = vst [vmem:[%s7519_s13 + $0x328] sm:$0xff] %v4480_v32  ;;  %v4485_v58 = vadd.f32 %v8425_v43, %v4353_v49  ;;  %v3971_v10 = vadd.f32 1e-05, %v3843_v9  ;;  %v3844_v36 = vmul.f32 0.0078125, %v3702_v56 }
 0x4f6   : > { %v5733_v21 = vpop.eup %5732  ;;  %v4354_v25 = vmul.f32 %v8417_v45, %v4222_v20  ;;  %v4219_v8 = vmul.f32 %v5731_v4, %v8190_v51  ;;  %5744 = vrsqrt.f32 %v3974_v27  ;;  %v3712_v48 = vpop.xlane.xlu0 %3711 }
 0x4f7   : > { %4613 = vst [vmem:[%s7519_s13 + $0x350] sm:$0xff] %v4485_v58  ;;  %v4220_v33 = vmul.f32 %v5733_v21, %v8198_v37  ;;  %5746 = vrsqrt.f32 %v3971_v10  ;;  %v3972_v30 = vadd.f32 1e-05, %v3844_v36  ;;  %v3849_v15 = vmul.f32 0.0078125, %v3712_v48 }
 0x4f8   : > { %v5735_v44 = vpop.eup %5734  ;;  %v4486_v42 = vadd.f32 %v8425_v43, %v4354_v25  ;;  %v4351_v46 = vmul.f32 %v8417_v45, %v4219_v8  ;;  %v3714_v7 = vpop.xlane.xlu1 %3713  ;;  %v9202_v8 = vld [vmem:[#allocation31_spill] sm:$0xff] }
 0x4f9   : > { %v4352_v31 = vmul.f32 %v8417_v45, %v4220_v33  ;;  %v4225_v51 = vmul.f32 %v5735_v44, %v8206_v35  ;;  %5748 = vrsqrt.f32 %v3972_v30  ;;  %v3977_v39 = vadd.f32 1e-05, %v3849_v15 }
 0x4fa   : > { %4614 = vst [vmem:[%s7519_s13 + $0x358] sm:$0xff] %v4486_v42  ;;  %v4483_v37 = vadd.f32 %v8425_v43, %v4351_v46  ;;  %v3850_v16 = vmul.f32 0.0078125, %v3714_v7  ;;  %v3708_v26 = vpop.xlane.xlu0 %3707 }
 0x4fb   : > { %v5737_v57 = vpop.eup %5736  ;;  %v4484_v24 = vadd.f32 %v8425_v43, %v4352_v31  ;;  %v4357_v29 = vmul.f32 %v8417_v45, %v4225_v51  ;;  %5750 = vrsqrt.f32 %v3977_v39  ;;  %v3847_v11 = vmul.f32 0.0078125, %v3708_v26 }
 0x4fc   : > { %4611 = vst [vmem:[%s7519_s13 + $0x340] sm:$0xff] %v4483_v37  ;;  %v4226_v50 = vmul.f32 %v5737_v57, %v8221_v47  ;;  %v3978_v35 = vadd.f32 1e-05, %v3850_v16  ;;  %v3710_v18 = vpop.xlane.xlu1 %3709 }
 0x4fd   : > { %v5739_v38 = vpop.eup %5738  ;;  %4612 = vst [vmem:[%s7519_s13 + $0x348] sm:$0xff] %v4484_v24  ;;  %v4489_v13 = vadd.f32 %v8425_v43, %v4357_v29  ;;  %v3975_v61 = vadd.f32 1e-05, %v3847_v11  ;;  %v3848_v22 = vmul.f32 0.0078125, %v3710_v18 }
 0x4fe   : > { %v5741_v17 = vpop.eup %5740  ;;  %v4358_v2 = vmul.f32 %v8417_v45, %v4226_v50  ;;  %v4223_v63 = vmul.f32 %v5739_v38, %v8226_v23  ;;  %5752 = vrsqrt.f32 %v3978_v35  ;;  %v3720_v6 = vpop.xlane.xlu0 %3719 }
 0x4ff   : > { %4617 = vst [vmem:[%s7519_s13 + $0x370] sm:$0xff] %v4489_v13  ;;  %v4224_v3 = vmul.f32 %v5741_v17, %v9200_v59  ;;  %5754 = vrsqrt.f32 %v3975_v61  ;;  %v3976_v47 = vadd.f32 1e-05, %v3848_v22  ;;  %v3853_v52 = vmul.f32 0.0078125, %v3720_v6  ;;  %v9203_v17 = vld [vmem:[#allocation101_spill] sm:$0xff] }
 0x500   : > { %v5743_v54 = vpop.eup %5742  ;;  %v4490_v1 = vadd.f32 %v8425_v43, %v4358_v2  ;;  %v4355_v32 = vmul.f32 %v8417_v45, %v4223_v63  ;;  %v3722_v49 = vpop.xlane.xlu1 %3721 }
 0x501   : > { %v4356_v9 = vmul.f32 %v8417_v45, %v4224_v3  ;;  %v4229_v23 = vmul.f32 %v5743_v54, %v9201_v5  ;;  %5756 = vrsqrt.f32 %v3976_v47  ;;  %v3981_v20 = vadd.f32 1e-05, %v3853_v52 }
 0x502   : > { %4618 = vst [vmem:[%s7519_s13 + $0x378] sm:$0xff] %v4490_v1  ;;  %v4487_v27 = vadd.f32 %v8425_v43, %v4355_v32  ;;  %v3854_v56 = vmul.f32 0.0078125, %v3722_v49  ;;  %v3716_v4 = vpop.xlane.xlu0 %3715 }
 0x503   : > { %v5745_v58 = vpop.eup %5744  ;;  %v4488_v10 = vadd.f32 %v8425_v43, %v4356_v9  ;;  %v4361_v36 = vmul.f32 %v8417_v45, %v4229_v23  ;;  %5758 = vrsqrt.f32 %v3981_v20  ;;  %v3851_v21 = vmul.f32 0.0078125, %v3716_v4 }
 0x504   : > { %v5747_v25 = vpop.eup %5746  ;;  %4615 = vst [vmem:[%s7519_s13 + $0x360] sm:$0xff] %v4487_v27  ;;  %v4230_v48 = vmul.f32 %v5745_v58, %v9202_v8  ;;  %v3982_v33 = vadd.f32 1e-05, %v3854_v56  ;;  %v3718_v30 = vpop.xlane.xlu1 %3717 }
 0x505   : > { %4616 = vst [vmem:[%s7519_s13 + $0x368] sm:$0xff] %v4488_v10  ;;  %v4493_v15 = vadd.f32 %v8425_v43, %v4361_v36  ;;  %v4227_v44 = vmul.f32 %v5747_v25, %v8258_v53  ;;  %v3979_v42 = vadd.f32 1e-05, %v3851_v21  ;;  %v3852_v46 = vmul.f32 0.0078125, %v3718_v30  ;;  %v9204_v10 = vld [vmem:[#allocation32_spill] sm:$0xff] }
 0x506   : > { %v5749_v7 = vpop.eup %5748  ;;  %v4362_v31 = vmul.f32 %v8417_v45, %v4230_v48  ;;  %5760 = vrsqrt.f32 %v3982_v33 }
 0x507   : > { %4621 = vst [vmem:[%s7519_s13 + $0x390] sm:$0xff] %v4493_v15  ;;  %v4359_v51 = vmul.f32 %v8417_v45, %v4227_v44  ;;  %v4228_v39 = vmul.f32 %v5749_v7, %v8269_v40  ;;  %5762 = vrsqrt.f32 %v3979_v42  ;;  %v3980_v37 = vadd.f32 1e-05, %v3852_v46  ;;  %v3724_v16 = vpop.xlane.xlu0 %3723  ;;  %v5782_v44 = vld [vmem:[%s8733_s5 + $0x2] ss:$0 sm:$0xff] }
 0x508   : > { %v5751_v26 = vpop.eup %5750  ;;  %v4494_v57 = vadd.f32 %v8425_v43, %v4362_v31  ;;  %v3855_v53 = vmul.f32 0.0078125, %v3724_v16  ;;  %v3726_v24 = vpop.xlane.xlu1 %3725 }
 0x509   : > { %v4491_v29 = vadd.f32 %v8425_v43, %v4359_v51  ;;  %v4360_v11 = vmul.f32 %v8417_v45, %v4228_v39  ;;  %v4233_v50 = vmul.f32 %v5751_v26, %v8274_v60  ;;  %5764 = vrsqrt.f32 %v3980_v37 }
 0x50a   : > { %4622 = vst [vmem:[%s7519_s13 + $0x398] sm:$0xff] %v4494_v57  ;;  %v3983_v35 = vadd.f32 1e-05, %v3855_v53  ;;  %v3856_v40 = vmul.f32 0.0078125, %v3726_v24 }
 0x50b   : > { %v5753_v18 = vpop.eup %5752  ;;  %4619 = vst [vmem:[%s7519_s13 + $0x380] sm:$0xff] %v4491_v29  ;;  %v4492_v38 = vadd.f32 %v8425_v43, %v4360_v11  ;;  %v4365_v13 = vmul.f32 %v8417_v45, %v4233_v50  ;;  %v3728_v61 = vpop.xlane.xlu0 %3727 }
 0x50c   : > { %v5755_v22 = vpop.eup %5754  ;;  %v4234_v2 = vmul.f32 %v5753_v18, %v9203_v17  ;;  %5766 = vrsqrt.f32 %v3983_v35  ;;  %v3984_v63 = vadd.f32 1e-05, %v3856_v40  ;;  %v3857_v6 = vmul.f32 0.0078125, %v3728_v61  ;;  %v3730_v60 = vpop.xlane.xlu1 %3729 }
 0x50d   : > { %4620 = vst [vmem:[%s7519_s13 + $0x388] sm:$0xff] %v4492_v38  ;;  %v4497_v59 = vadd.f32 %v8425_v43, %v4365_v13  ;;  %v4231_v3 = vmul.f32 %v5755_v22, %v8290_v55  ;;  %v3858_v47 = vmul.f32 0.0078125, %v3730_v60 }
 0x50e   : > { %v5757_v52 = vpop.eup %5756  ;;  %v4366_v54 = vmul.f32 %v8417_v45, %v4234_v2  ;;  %5768 = vrsqrt.f32 %v3984_v63  ;;  %v3985_v1 = vadd.f32 1e-05, %v3857_v6 }
 0x50f   : > { %4625 = vst [vmem:[%s7519_s13 + $0x3b0] sm:$0xff] %v4497_v59  ;;  %v4363_v32 = vmul.f32 %v8417_v45, %v4231_v3  ;;  %v4232_v49 = vmul.f32 %v5757_v52, %v8297_v12  ;;  %v3986_v9 = vadd.f32 1e-05, %v3858_v47 }
 0x510   : > { %v5759_v5 = vpop.eup %5758  ;;  %v4498_v23 = vadd.f32 %v8425_v43, %v4366_v54  ;;  %5770 = vrsqrt.f32 %v3985_v1 }
 0x511   : > { %v4495_v55 = vadd.f32 %v8425_v43, %v4363_v32  ;;  %v4364_v20 = vmul.f32 %v8417_v45, %v4232_v49  ;;  %v4237_v27 = vmul.f32 %v5759_v5, %v8304_v19  ;;  %5772 = vrsqrt.f32 %v3986_v9  ;;  %v5781_v19 = vld [vmem:[%s8733_s5 + $0x1] ss:$0 sm:$0xff] }
 0x512   : > { %4626 = vst [vmem:[%s7519_s13 + $0x3b8] sm:$0xff] %v4498_v23 }
 0x513   : > { %v5761_v56 = vpop.eup %5760  ;;  %4623 = vst [vmem:[%s7519_s13 + $0x3a0] sm:$0xff] %v4495_v55  ;;  %v4496_v4 = vadd.f32 %v8425_v43, %v4364_v20  ;;  %v4369_v12 = vmul.f32 %v8417_v45, %v4237_v27 }
 0x514   : > { %v5763_v58 = vpop.eup %5762  ;;  %v4238_v36 = vmul.f32 %v5761_v56, %v9204_v10 }
 0x515   : > { %4624 = vst [vmem:[%s7519_s13 + $0x3a8] sm:$0xff] %v4496_v4  ;;  %v4501_v21 = vadd.f32 %v8425_v43, %v4369_v12  ;;  %v4235_v25 = vmul.f32 %v5763_v58, %v8318_v28 }
 0x516   : > { %v5765_v8 = vpop.eup %5764  ;;  %v4370_v48 = vmul.f32 %v5781_v19, %v4238_v36 }
 0x517   : > { %4629 = vst [vmem:[%s7519_s13 + $0x3d0] sm:$0xff] %v4501_v21  ;;  %v4367_v33 = vmul.f32 %v5781_v19, %v4235_v25  ;;  %v4236_v45 = vmul.f32 %v5765_v8, %v8325_v14 }
 0x518   : > { %v4502_v30 = vadd.f32 %v8425_v43, %v4370_v48 }
 0x519   : > { %v5767_v15 = vpop.eup %5766  ;;  %v4499_v42 = vadd.f32 %v5782_v44, %v4367_v33  ;;  %v4368_v28 = vmul.f32 %v5781_v19, %v4236_v45 }
 0x51a   : > { %4630 = vst [vmem:[%s7519_s13 + $0x3d8] sm:$0xff] %v4502_v30  ;;  %v4239_v46 = vmul.f32 %v5767_v15, %v8340_v62 }
 0x51b   : > { %v5769_v7 = vpop.eup %5768  ;;  %4627 = vst [vmem:[%s7519_s13 + $0x3c0] sm:$0xff] %v4499_v42  ;;  %v4500_v31 = vadd.f32 %v5782_v44, %v4368_v28 }
 0x51c   : > { %v4371_v14 = vmul.f32 %v5781_v19, %v4239_v46  ;;  %v4240_v43 = vmul.f32 %v5769_v7, %v8345_v41 }
 0x51d   : > { %v5771_v51 = vpop.eup %5770  ;;  %4628 = vst [vmem:[%s7519_s13 + $0x3c8] sm:$0xff] %v4500_v31 }
 0x51e   : > { %v5773_v39 = vpop.eup %5772  ;;  %v4503_v37 = vadd.f32 %v5782_v44, %v4371_v14  ;;  %v4372_v16 = vmul.f32 %v5781_v19, %v4240_v43  ;;  %v4241_v26 = vmul.f32 %v5771_v51, %v8348_v0 }
 0x51f   : > { %v4242_v57 = vmul.f32 %v5773_v39, %v8351_v34 }
 0x520   : > { %4631 = vst [vmem:[%s7519_s13 + $0x3e0] sm:$0xff] %v4503_v37  ;;  %v4504_v62 = vadd.f32 %v5782_v44, %v4372_v16  ;;  %v4373_v53 = vmul.f32 %v5781_v19, %v4241_v26 }
 0x521   : > { %v4374_v24 = vmul.f32 %v5781_v19, %v4242_v57 }
 0x522   : > { %4632 = vst [vmem:[%s7519_s13 + $0x3e8] sm:$0xff] %v4504_v62  ;;  %v4505_v41 = vadd.f32 %v5782_v44, %v4373_v53 }
 0x523   : > { %v4506_v0 = vadd.f32 %v5782_v44, %v4374_v24 }
 0x524   : > { %4633 = vst [vmem:[%s7519_s13 + $0x3f0] sm:$0xff] %v4505_v41 }
 0x525   : > { %4634 = vst [vmem:[%s7519_s13 + $0x3f8] sm:$0xff] %v4506_v0 }
 0x526   : > { %5796 = shalt.err (!%p5793_p3)
}
 0x527   : > { %s5797_s28 = scalar_lea.hbm %s8680_s16, 16384  ;;  %s5801_s9 = scalar_lea.hbm %s8734_s6, 32768 }
 0x528   : > { %p5798_p4 = scmp.ne.s32.totalorder %s8680_s16, %s5797_s28  ;;  %p5802_p9 = scmp.lt.s32.totalorder %s8680_s16, %s8734_s6 }
 0x529   : > { %p5803_p10 = scmp.lt.s32.totalorder %s5801_s9, %s5797_s28 }
 0x52a   : > { %p5799_p7 = pnand %p5798_p4, %p5921_p5 }
 0x52b   : > { %p5804_p11 = por %p5803_p10, %p5802_p9 }
 0x52c   : > { %p5800_p8 = pneg %p5799_p7 }
 0x52e   : > { %p5805_p12 = pnand %p5804_p11, %p5800_p8 }
 0x530   : > { %5808 = shalt.err (!%p5805_p12)
}
 0x531   : > { %s5846_s12 = smov 128   ;;  %s5847_s19 = smov 8  }
 0x532   : > { %5457 = dma.vmem_to_hbm [thread:$0]  (%p5921_p5), %s8682_s14, 16384, %s8680_s16, %s8688_s25, %s5846_s12, %s5846_s12, %s5847_s19  }
 0x533 PF: > { %p5463_p13 = scmp.ge.s32.totalorder %s5843_s24, 2  ;;  %s4664_s15 = sand.u32 1, %s5831_s21  }
 0x534   : > { %s4665_s17 = scalar_lea.sflag [#allocation3], %s4664_s15 }
 0x535   : > { %p5460_p0 = pnand %p5463_p13, %p5925_p6 }
 0x537   : > { %p5461_p1 = pneg %p5460_p0 }
 0x539   : > { %5826 = dma.done.wait (%p5461_p1), %s4665_s17, 16384  }
 0x53a   : > { %5828 = vsyncadd (%p5461_p1), %s4665_s17, 4294950912  ;;  %p16_p2 = scmp.ge.s32.totalorder %s5908_s27, 4   ;;  %s9205_s21 = smov %s5835_s22 }
 0x53b   : > { %s9206_s22 = smov %s5839_s23  ;;  %s9207_s23 = smov %s5919_s30 }
 0x53c   : > { %s9208_s24 = smov %s5908_s27  ;;  %18 = sbr.rel (!%p16_p2) target bundleno = 3 (0x3), region = 79 }
 0x541   :  { %4670 = vsyncpa [#allocation3], 1 }
 0x542   :  { %4672 = vsyncpa [#allocation3 + $0x1], 1 }

</bundles_post_ra>
